<compile_context>
chip_gen: v7x
topology: tpu7x:2x2x1
jax: 0.10.0
libtpu: 0.0.40
codegen_flags: <defaults>
</compile_context>

<pallas_src>
import functools

import jax
import jax.numpy as jnp
from jax import lax
from jax.experimental import pallas as pl
from jax.experimental.pallas import tpu as pltpu

# PyTorch LSTM gate order is (i, f, g, o); kernel layout uses (i, f, o, g) so the three sigmoid
# gates form one contiguous 3H lane slice and tanh(g) is the trailing H slice.
_GATE_PERM = (0, 1, 3, 2)


def _vmem_limit_bytes():
    # Re-derive per chip (v7x has 64 MiB physical VMEM vs 128 MiB on v5e/v6e); leave headroom.
    try:
        cap = int(pltpu.get_tpu_info().vmem_capacity_bytes)
    except Exception:  # conservative fallback if the query is unavailable
        cap = 64 * 1024 * 1024
    return int(max(32 * 1024 * 1024, min(cap - 16 * 1024 * 1024, 96 * 1024 * 1024)))


# -----------------------------------------------------------------------------
# Fused kernel (one program per batch tile):
#   x     : (T, Bt, E)  bf16, time-major
#   mask  : (Bt, T, 1)  f32
#   wih_f, wih_b : (E, 4H) bf16   per-direction input weights, gate blocks [i|f|o|g]
#   whh_f, whh_b : (H, 4H) f32    per-direction hidden weights
#   b_f, b_b     : (1, 4H) f32
#   wfc   : (2H, Kpad) bf16  (zero-padded to 128 lanes), bfc : (1, Kpad) f32
# Outputs: logits (Bt, T, Kpad), softmax_weight (Bt, T, T)
# -----------------------------------------------------------------------------
def _fused_bilstm_attn_kernel(use_att, x_ref, mask_ref, wihf_ref, wihb_ref,
                              whhf_ref, whhb_ref, bf_ref, bb_ref,
                              wfc_ref, bfc_ref, logits_ref, sw_ref):
    T, Bt, E = x_ref.shape
    H4 = whhf_ref.shape[1]
    H = H4 // 4
    H2 = 2 * H
    H3 = 3 * H

    # ---- 1. Hoisted input projection (bf16 MXU, f32 accumulate), both directions.
    #         Kept time-major so the per-step fetch below is a clean leading-axis slice.
    x2d = x_ref[...].reshape(T * Bt, E)                                            # bf16
    gx_f = (jnp.dot(x2d, wihf_ref[...], preferred_element_type=jnp.float32)
            + bf_ref[...]).reshape(T, Bt, H4)
    gx_b = (jnp.dot(x2d, wihb_ref[...], preferred_element_type=jnp.float32)
            + bb_ref[...]).reshape(T, Bt, H4)

    whh_f = whhf_ref[...]                                   # f32: recurrence math stays f32
    whh_b = whhb_ref[...]

    # ---- 2. Fused fwd/bwd recurrence, statically unrolled (T small & static).
    #         Two independent (Bt,H)x(H,4H) MXU dep chains per step; backward stream indexed
    #         with a static reversed time index (no per-step select, no runtime reverse).
    h_f = jnp.zeros((Bt, H), jnp.float32)
    c_f = jnp.zeros((Bt, H), jnp.float32)
    h_b = jnp.zeros((Bt, H), jnp.float32)
    c_b = jnp.zeros((Bt, H), jnp.float32)
    hs_f = []
    hs_b = []
    for t in range(T):
        g_fwd = gx_f[t] + jnp.dot(h_f, whh_f, preferred_element_type=jnp.float32)       # (Bt,4H)
        g_bwd = gx_b[T - 1 - t] + jnp.dot(h_b, whh_b, preferred_element_type=jnp.float32)
        s_f = jax.nn.sigmoid(g_fwd[:, :H3])
        t_f = jnp.tanh(g_fwd[:, H3:])
        s_b = jax.nn.sigmoid(g_bwd[:, :H3])
        t_b = jnp.tanh(g_bwd[:, H3:])
        c_f = s_f[:, H:H2] * c_f + s_f[:, :H] * t_f
        h_f = s_f[:, H2:H3] * jnp.tanh(c_f)
        c_b = s_b[:, H:H2] * c_b + s_b[:, :H] * t_b
        h_b = s_b[:, H2:H3] * jnp.tanh(c_b)
        hs_f.append(h_f)
        hs_b.append(h_b)

    # z never leaves VMEM: one stack/concat after the loop instead of 2T masked stores.
    z = jnp.concatenate([jnp.stack(hs_f, axis=1),
                         jnp.stack(hs_b[::-1], axis=1)], axis=-1)                  # (Bt,T,2H) f32

    # ---- 3. Batched self-attention + mask + FC head (bf16 MXU, f32 accumulate).
    zb = z.astype(jnp.bfloat16)
    att = jnp.einsum('btd,bsd->bts', zb, zb, preferred_element_type=jnp.float32)
    att = att - jnp.max(att, axis=-1, keepdims=True)
    p = jnp.exp(att)
    # NOTE: approx reciprocal runs on the EUP; softmax rows sum to 1 only to ~1e-3.
    sw = p * pl.reciprocal(jnp.sum(p, axis=-1, keepdims=True), approx=True)
    sw_ref[...] = sw.astype(sw_ref.dtype)     # lane-sparse store (last dim T); tiny, done once

    if use_att:
        z_sel = jnp.einsum('bts,bsd->btd', sw.astype(jnp.bfloat16), zb,
                           preferred_element_type=jnp.float32)
    else:
        z_sel = z
    z_m = (z_sel * mask_ref[...]).astype(jnp.bfloat16)                             # (Bt,T,2H)
    # TODO(synk): nn.Dropout applied with inference semantics (identity); no RNG dropout here.
    logits = (jnp.dot(z_m.reshape(Bt * T, H2), wfc_ref[...],
                      preferred_element_type=jnp.float32) + bfc_ref[...])
    # Lane-dense (128-wide) unmasked store; real tag columns sliced out in the wrapper.
    logits_ref[...] = logits.reshape(Bt, T, logits_ref.shape[-1]).astype(logits_ref.dtype)


# -----------------------------------------------------------------------------
# Wrapper: weight repacking, padding, grid/BlockSpec planning (plain XLA, folded by jit).
# -----------------------------------------------------------------------------
def bilstm_forward(x, mask, params, use_word_self_attention=True):
    """x: (B, T, E) f32, mask: (B, T) -> (logits (B, T, num_tags), softmax_weight (B, T, T))."""
    B, T, E = x.shape
    H = params['whh_f'].shape[0]
    num_tags = params['wfc'].shape[1]

    # Fill MXU rows up to 128 per program; pad batch to a multiple of the tile.
    B_TILE = min(128, ((B + 7) // 8) * 8)
    B_pad = ((B + B_TILE - 1) // B_TILE) * B_TILE
    K_pad = ((max(num_tags, 128) + 127) // 128) * 128

    def repack(w):  # (R, 4H) gate blocks (i,f,g,o) -> (i,f,o,g)
        R = w.shape[0]
        return w.reshape(R, 4, H)[:, _GATE_PERM, :].reshape(R, 4 * H)

    wih_f = repack(params['wih_f']).astype(jnp.bfloat16)
    wih_b = repack(params['wih_b']).astype(jnp.bfloat16)
    whh_f = repack(params['whh_f'])
    whh_b = repack(params['whh_b'])
    b_f = repack(params['b_f'])
    b_b = repack(params['b_b'])

    wfc_p = jnp.zeros((2 * H, K_pad), jnp.bfloat16).at[:, :num_tags].set(
        params['wfc'].astype(jnp.bfloat16))
    bfc_p = jnp.zeros((1, K_pad), jnp.float32).at[:, :num_tags].set(params['bfc'])

    # x time-major (T, B_pad, E): per-step gate fetch in the kernel becomes a leading-axis slice.
    x_tm = jnp.zeros((T, B_pad, E), jnp.bfloat16).at[:, :B].set(
        jnp.transpose(x, (1, 0, 2)).astype(jnp.bfloat16))
    mask_p = jnp.zeros((B_pad, T, 1), jnp.float32).at[:B].set(
        mask.astype(jnp.float32)[:, :, None])

    grid = (B_pad // B_TILE,)
    w_spec = lambda shape: pl.BlockSpec(shape, lambda b: (0, 0))  # weights stay VMEM-resident

    logits, sw = pl.pallas_call(
        functools.partial(_fused_bilstm_attn_kernel, use_word_self_attention),
        out_shape=(jax.ShapeDtypeStruct((B_pad, T, K_pad), jnp.float32),
                   jax.ShapeDtypeStruct((B_pad, T, T), jnp.float32)),
        grid=grid,
        in_specs=[
            pl.BlockSpec((T, B_TILE, E), lambda b: (0, b, 0)),      # x (time-major)
            pl.BlockSpec((B_TILE, T, 1), lambda b: (b, 0, 0)),      # mask
            w_spec((E, 4 * H)), w_spec((E, 4 * H)),                 # wih_f, wih_b
            w_spec((H, 4 * H)), w_spec((H, 4 * H)),                 # whh_f, whh_b
            w_spec((1, 4 * H)), w_spec((1, 4 * H)),                 # b_f, b_b
            w_spec((2 * H, K_pad)), w_spec((1, K_pad)),             # wfc, bfc (lane-dense)
        ],
        out_specs=(
            pl.BlockSpec((B_TILE, T, K_pad), lambda b: (b, 0, 0)),
            pl.BlockSpec((B_TILE, T, T), lambda b: (b, 0, 0)),
        ),
        compiler_params=pltpu.CompilerParams(
            dimension_semantics=("parallel",),
            vmem_limit_bytes=_vmem_limit_bytes()),
    )(x_tm, mask_p, wih_f, wih_b, whh_f, whh_b, b_f, b_b, wfc_p, bfc_p)

    return logits[:B, :, :num_tags], sw[:B]


# -----------------------------------------------------------------------------
# Pure-JAX reference (correctness check only)
# -----------------------------------------------------------------------------
def reference_forward(x, mask, params, use_att=True):
    H = params['whh_f'].shape[0]

    def lstm_dir(x_tm, wih, whh, b):
        Bsz = x_tm.shape[1]

        def step(carry, x_t):
            h, c = carry
            gates = x_t @ wih + h @ whh + b
            i = jax.nn.sigmoid(gates[:, :H])
            f = jax.nn.sigmoid(gates[:, H:2 * H])
            g = jnp.tanh(gates[:, 2 * H:3 * H])
            o = jax.nn.sigmoid(gates[:, 3 * H:])
            c = f * c + i * g
            h = o * jnp.tanh(c)
            return (h, c), h

        init = (jnp.zeros((Bsz, H), jnp.float32), jnp.zeros((Bsz, H), jnp.float32))
        _, hs = lax.scan(step, init, x_tm)
        return hs

    x_tm = jnp.transpose(x, (1, 0, 2))
    hf = lstm_dir(x_tm, params['wih_f'], params['whh_f'], params['b_f'])
    hb = lstm_dir(x_tm[::-1], params['wih_b'], params['whh_b'], params['b_b'])[::-1]
    z = jnp.transpose(jnp.concatenate([hf, hb], axis=-1), (1, 0, 2))
    att = jnp.einsum('btd,bsd->bts', z, z)
    sw = jax.nn.softmax(att, axis=-1)
    z_att = jnp.einsum('bts,bsd->btd', sw, z)
    zz = z_att if use_att else z
    zz = zz * mask.astype(jnp.float32)[:, :, None]
    logits = zz @ params['wfc'] + params['bfc']
    return logits, sw


if __name__ == "__main__":
    # Small, forward-consistent shapes: batch=2, seq=8, word_emb_size=32,
    # word_lstm_units=32 (so z has 2*32=64 features), num_tags=8.
    B, T, E, H, num_tags = 2, 8, 32, 32, 8

    key = jax.random.PRNGKey(0)
    keys = jax.random.split(key, 10)
    bound = float(1.0 / jnp.sqrt(H))

    def u(kk, shape):
        return jax.random.uniform(kk, shape, jnp.float32, -bound, bound)

    params = dict(
        # PyTorch stores W_ih as (4H, E); we store the transposed (E, 4H) form; gate order i,f,g,o.
        wih_f=u(keys[0], (E, 4 * H)), whh_f=u(keys[1], (H, 4 * H)), b_f=u(keys[2], (1, 4 * H)),
        wih_b=u(keys[3], (E, 4 * H)), whh_b=u(keys[4], (H, 4 * H)), b_b=u(keys[5], (1, 4 * H)),
        # nn.Linear(2H, num_tags): weight stored transposed (2H, num_tags), bias (1, num_tags).
        wfc=u(keys[6], (2 * H, num_tags)), bfc=u(keys[7], (1, num_tags)),
    )

    x = jax.random.normal(keys[8], (B, T, E), jnp.float32)
    lens = jnp.array([T, 5])
    mask = (jnp.arange(T)[None, :] < lens[:, None]).astype(jnp.float32)

    fwd = jax.jit(lambda a, b: bilstm_forward(a, b, params, use_word_self_attention=True))
    logits, sw = fwd(x, mask)
    jax.block_until_ready((logits, sw))

    ref_logits, ref_sw = reference_forward(x, mask, params, use_att=True)
    assert logits.shape == (B, T, num_tags) and sw.shape == (B, T, T)
    # bf16 MXU matmuls + approx softmax reciprocal -> compare at mixed-precision tolerance.
    assert jnp.allclose(logits, ref_logits, atol=2e-2, rtol=2e-2), \
        float(jnp.max(jnp.abs(logits - ref_logits)))
    assert jnp.allclose(sw, ref_sw, atol=2e-2, rtol=2e-2), \
        float(jnp.max(jnp.abs(sw - ref_sw)))

    print("KERNEL_OK")
</pallas_src>

<mosaic_0001>
module attributes {stable_mosaic.version = 11 : i64} {
  func.func @_fused_bilstm_attn_kernel(%arg0: i32, %arg1: memref<8x8x32xbf16, #tpu.memory_space<vmem>>, %arg2: memref<8x8x1xf32, #tpu.memory_space<vmem>>, %arg3: memref<32x128xbf16, #tpu.memory_space<vmem>>, %arg4: memref<32x128xbf16, #tpu.memory_space<vmem>>, %arg5: memref<32x128xf32, #tpu.memory_space<vmem>>, %arg6: memref<32x128xf32, #tpu.memory_space<vmem>>, %arg7: memref<1x128xf32, #tpu.memory_space<vmem>>, %arg8: memref<1x128xf32, #tpu.memory_space<vmem>>, %arg9: memref<64x128xbf16, #tpu.memory_space<vmem>>, %arg10: memref<1x128xf32, #tpu.memory_space<vmem>>, %arg11: memref<8x8x128xf32, #tpu.memory_space<vmem>>, %arg12: memref<8x8x8xf32, #tpu.memory_space<vmem>>) attributes {dimension_semantics = [#tpu.dimension_semantics<parallel>], iteration_bounds = array<i64: 1>, scalar_prefetch = 0 : i64, scratch_operands = 0 : i64, tpu.core_type = #tpu.core_type<tc>, window_params = [{transform_indices = @transform_0, window_bounds = array<i64: 8, 8, 32>}, {transform_indices = @transform_1, window_bounds = array<i64: 8, 8, 1>}, {pipeline_mode = #tpu.pipeline_mode<synchronous>, transform_indices = @transform_2, window_bounds = array<i64: 32, 128>}, {pipeline_mode = #tpu.pipeline_mode<synchronous>, transform_indices = @transform_3, window_bounds = array<i64: 32, 128>}, {pipeline_mode = #tpu.pipeline_mode<synchronous>, transform_indices = @transform_4, window_bounds = array<i64: 32, 128>}, {pipeline_mode = #tpu.pipeline_mode<synchronous>, transform_indices = @transform_5, window_bounds = array<i64: 32, 128>}, {pipeline_mode = #tpu.pipeline_mode<synchronous>, transform_indices = @transform_6, window_bounds = array<i64: 1, 128>}, {pipeline_mode = #tpu.pipeline_mode<synchronous>, transform_indices = @transform_7, window_bounds = array<i64: 1, 128>}, {pipeline_mode = #tpu.pipeline_mode<synchronous>, transform_indices = @transform_8, window_bounds = array<i64: 64, 128>}, {pipeline_mode = #tpu.pipeline_mode<synchronous>, transform_indices = @transform_9, window_bounds = array<i64: 1, 128>}, {transform_indices = @transform_10, window_bounds = array<i64: 8, 8, 128>}, {transform_indices = @transform_11, window_bounds = array<i64: 8, 8, 8>}]} {
    %c0 = arith.constant 0 : index
    %c0_0 = arith.constant 0 : index
    %c0_1 = arith.constant 0 : index
    %0 = vector.load %arg1[%c0, %c0_0, %c0_1] : memref<8x8x32xbf16, #tpu.memory_space<vmem>>, vector<8x8x32xbf16>
    %1 = vector.shape_cast %0 : vector<8x8x32xbf16> to vector<64x32xbf16>
    %c0_2 = arith.constant 0 : index
    %c0_3 = arith.constant 0 : index
    %2 = vector.load %arg3[%c0_2, %c0_3] : memref<32x128xbf16, #tpu.memory_space<vmem>>, vector<32x128xbf16>
    %cst = arith.constant dense<0.000000e+00> : vector<64x128xf32>
    %3 = tpu.matmul %1, %2, %cst {dimension_numbers = #tpu.dot_dimension_numbers<[1], [0], [0], [1], [0, 0, 1, 1], [], []>} : vector<64x32xbf16>, vector<32x128xbf16>, vector<64x128xf32> -> vector<64x128xf32>
    %c0_4 = arith.constant 0 : index
    %c0_5 = arith.constant 0 : index
    %4 = vector.load %arg7[%c0_4, %c0_5] : memref<1x128xf32, #tpu.memory_space<vmem>>, vector<1x128xf32>
    %5 = vector.broadcast %4 : vector<1x128xf32> to vector<64x128xf32>
    %6 = arith.addf %3, %5 : vector<64x128xf32>
    %7 = vector.shape_cast %6 : vector<64x128xf32> to vector<8x8x128xf32>
    %c0_6 = arith.constant 0 : index
    %c0_7 = arith.constant 0 : index
    %8 = vector.load %arg4[%c0_6, %c0_7] : memref<32x128xbf16, #tpu.memory_space<vmem>>, vector<32x128xbf16>
    %cst_8 = arith.constant dense<0.000000e+00> : vector<64x128xf32>
    %9 = tpu.matmul %1, %8, %cst_8 {dimension_numbers = #tpu.dot_dimension_numbers<[1], [0], [0], [1], [0, 0, 1, 1], [], []>} : vector<64x32xbf16>, vector<32x128xbf16>, vector<64x128xf32> -> vector<64x128xf32>
    %c0_9 = arith.constant 0 : index
    %c0_10 = arith.constant 0 : index
    %10 = vector.load %arg8[%c0_9, %c0_10] : memref<1x128xf32, #tpu.memory_space<vmem>>, vector<1x128xf32>
    %11 = vector.broadcast %10 : vector<1x128xf32> to vector<64x128xf32>
    %12 = arith.addf %9, %11 : vector<64x128xf32>
    %13 = vector.shape_cast %12 : vector<64x128xf32> to vector<8x8x128xf32>
    %c0_11 = arith.constant 0 : index
    %c0_12 = arith.constant 0 : index
    %14 = vector.load %arg5[%c0_11, %c0_12] : memref<32x128xf32, #tpu.memory_space<vmem>>, vector<32x128xf32>
    %c0_13 = arith.constant 0 : index
    %c0_14 = arith.constant 0 : index
    %15 = vector.load %arg6[%c0_13, %c0_14] : memref<32x128xf32, #tpu.memory_space<vmem>>, vector<32x128xf32>
    %cst_15 = arith.constant 0.000000e+00 : f32
    %16 = vector.broadcast %cst_15 : f32 to vector<8x32xf32>
    %cst_16 = arith.constant 0.000000e+00 : f32
    %17 = vector.broadcast %cst_16 : f32 to vector<8x32xf32>
    %cst_17 = arith.constant 0.000000e+00 : f32
    %18 = vector.broadcast %cst_17 : f32 to vector<8x32xf32>
    %cst_18 = arith.constant 0.000000e+00 : f32
    %19 = vector.broadcast %cst_18 : f32 to vector<8x32xf32>
    %20 = vector.extract_strided_slice %7 {offsets = [0, 0, 0], sizes = [1, 8, 128], strides = [1, 1, 1]} : vector<8x8x128xf32> to vector<1x8x128xf32>
    %21 = vector.shape_cast %20 : vector<1x8x128xf32> to vector<8x128xf32>
    %cst_19 = arith.constant dense<0.000000e+00> : vector<8x128xf32>
    %22 = tpu.matmul %16, %14, %cst_19 {dimension_numbers = #tpu.dot_dimension_numbers<[1], [0], [0], [1], [0, 0, 1, 1], [], []>} : vector<8x32xf32>, vector<32x128xf32>, vector<8x128xf32> -> vector<8x128xf32>
    %23 = arith.addf %21, %22 : vector<8x128xf32>
    %24 = vector.extract_strided_slice %13 {offsets = [7, 0, 0], sizes = [1, 8, 128], strides = [1, 1, 1]} : vector<8x8x128xf32> to vector<1x8x128xf32>
    %25 = vector.shape_cast %24 : vector<1x8x128xf32> to vector<8x128xf32>
    %cst_20 = arith.constant dense<0.000000e+00> : vector<8x128xf32>
    %26 = tpu.matmul %18, %15, %cst_20 {dimension_numbers = #tpu.dot_dimension_numbers<[1], [0], [0], [1], [0, 0, 1, 1], [], []>} : vector<8x32xf32>, vector<32x128xf32>, vector<8x128xf32> -> vector<8x128xf32>
    %27 = arith.addf %25, %26 : vector<8x128xf32>
    %28 = vector.extract_strided_slice %23 {offsets = [0, 0], sizes = [8, 96], strides = [1, 1]} : vector<8x128xf32> to vector<8x96xf32>
    %29 = arith.negf %28 : vector<8x96xf32>
    %30 = math.exp %29 : vector<8x96xf32>
    %cst_21 = arith.constant 1.000000e+00 : f32
    %31 = vector.broadcast %cst_21 : f32 to vector<8x96xf32>
    %32 = arith.addf %31, %30 : vector<8x96xf32>
    %33 = arith.divf %31, %32 : vector<8x96xf32>
    %34 = vector.extract_strided_slice %23 {offsets = [0, 96], sizes = [8, 32], strides = [1, 1]} : vector<8x128xf32> to vector<8x32xf32>
    %35 = math.tanh %34 : vector<8x32xf32>
    %36 = vector.extract_strided_slice %27 {offsets = [0, 0], sizes = [8, 96], strides = [1, 1]} : vector<8x128xf32> to vector<8x96xf32>
    %37 = arith.negf %36 : vector<8x96xf32>
    %38 = math.exp %37 : vector<8x96xf32>
    %cst_22 = arith.constant 1.000000e+00 : f32
    %39 = vector.broadcast %cst_22 : f32 to vector<8x96xf32>
    %40 = arith.addf %39, %38 : vector<8x96xf32>
    %41 = arith.divf %39, %40 : vector<8x96xf32>
    %42 = vector.extract_strided_slice %27 {offsets = [0, 96], sizes = [8, 32], strides = [1, 1]} : vector<8x128xf32> to vector<8x32xf32>
    %43 = math.tanh %42 : vector<8x32xf32>
    %44 = vector.extract_strided_slice %33 {offsets = [0, 32], sizes = [8, 32], strides = [1, 1]} : vector<8x96xf32> to vector<8x32xf32>
    %45 = arith.mulf %44, %17 : vector<8x32xf32>
    %46 = vector.extract_strided_slice %33 {offsets = [0, 0], sizes = [8, 32], strides = [1, 1]} : vector<8x96xf32> to vector<8x32xf32>
    %47 = arith.mulf %46, %35 : vector<8x32xf32>
    %48 = arith.addf %45, %47 : vector<8x32xf32>
    %49 = vector.extract_strided_slice %33 {offsets = [0, 64], sizes = [8, 32], strides = [1, 1]} : vector<8x96xf32> to vector<8x32xf32>
    %50 = math.tanh %48 : vector<8x32xf32>
    %51 = arith.mulf %49, %50 : vector<8x32xf32>
    %52 = vector.extract_strided_slice %41 {offsets = [0, 32], sizes = [8, 32], strides = [1, 1]} : vector<8x96xf32> to vector<8x32xf32>
    %53 = arith.mulf %52, %19 : vector<8x32xf32>
    %54 = vector.extract_strided_slice %41 {offsets = [0, 0], sizes = [8, 32], strides = [1, 1]} : vector<8x96xf32> to vector<8x32xf32>
    %55 = arith.mulf %54, %43 : vector<8x32xf32>
    %56 = arith.addf %53, %55 : vector<8x32xf32>
    %57 = vector.extract_strided_slice %41 {offsets = [0, 64], sizes = [8, 32], strides = [1, 1]} : vector<8x96xf32> to vector<8x32xf32>
    %58 = math.tanh %56 : vector<8x32xf32>
    %59 = arith.mulf %57, %58 : vector<8x32xf32>
    %60 = vector.extract_strided_slice %7 {offsets = [1, 0, 0], sizes = [1, 8, 128], strides = [1, 1, 1]} : vector<8x8x128xf32> to vector<1x8x128xf32>
    %61 = vector.shape_cast %60 : vector<1x8x128xf32> to vector<8x128xf32>
    %cst_23 = arith.constant dense<0.000000e+00> : vector<8x128xf32>
    %62 = tpu.matmul %51, %14, %cst_23 {dimension_numbers = #tpu.dot_dimension_numbers<[1], [0], [0], [1], [0, 0, 1, 1], [], []>} : vector<8x32xf32>, vector<32x128xf32>, vector<8x128xf32> -> vector<8x128xf32>
    %63 = arith.addf %61, %62 : vector<8x128xf32>
    %64 = vector.extract_strided_slice %13 {offsets = [6, 0, 0], sizes = [1, 8, 128], strides = [1, 1, 1]} : vector<8x8x128xf32> to vector<1x8x128xf32>
    %65 = vector.shape_cast %64 : vector<1x8x128xf32> to vector<8x128xf32>
    %cst_24 = arith.constant dense<0.000000e+00> : vector<8x128xf32>
    %66 = tpu.matmul %59, %15, %cst_24 {dimension_numbers = #tpu.dot_dimension_numbers<[1], [0], [0], [1], [0, 0, 1, 1], [], []>} : vector<8x32xf32>, vector<32x128xf32>, vector<8x128xf32> -> vector<8x128xf32>
    %67 = arith.addf %65, %66 : vector<8x128xf32>
    %68 = vector.extract_strided_slice %63 {offsets = [0, 0], sizes = [8, 96], strides = [1, 1]} : vector<8x128xf32> to vector<8x96xf32>
    %69 = arith.negf %68 : vector<8x96xf32>
    %70 = math.exp %69 : vector<8x96xf32>
    %cst_25 = arith.constant 1.000000e+00 : f32
    %71 = vector.broadcast %cst_25 : f32 to vector<8x96xf32>
    %72 = arith.addf %71, %70 : vector<8x96xf32>
    %73 = arith.divf %71, %72 : vector<8x96xf32>
    %74 = vector.extract_strided_slice %63 {offsets = [0, 96], sizes = [8, 32], strides = [1, 1]} : vector<8x128xf32> to vector<8x32xf32>
    %75 = math.tanh %74 : vector<8x32xf32>
    %76 = vector.extract_strided_slice %67 {offsets = [0, 0], sizes = [8, 96], strides = [1, 1]} : vector<8x128xf32> to vector<8x96xf32>
    %77 = arith.negf %76 : vector<8x96xf32>
    %78 = math.exp %77 : vector<8x96xf32>
    %cst_26 = arith.constant 1.000000e+00 : f32
    %79 = vector.broadcast %cst_26 : f32 to vector<8x96xf32>
    %80 = arith.addf %79, %78 : vector<8x96xf32>
    %81 = arith.divf %79, %80 : vector<8x96xf32>
    %82 = vector.extract_strided_slice %67 {offsets = [0, 96], sizes = [8, 32], strides = [1, 1]} : vector<8x128xf32> to vector<8x32xf32>
    %83 = math.tanh %82 : vector<8x32xf32>
    %84 = vector.extract_strided_slice %73 {offsets = [0, 32], sizes = [8, 32], strides = [1, 1]} : vector<8x96xf32> to vector<8x32xf32>
    %85 = arith.mulf %84, %48 : vector<8x32xf32>
    %86 = vector.extract_strided_slice %73 {offsets = [0, 0], sizes = [8, 32], strides = [1, 1]} : vector<8x96xf32> to vector<8x32xf32>
    %87 = arith.mulf %86, %75 : vector<8x32xf32>
    %88 = arith.addf %85, %87 : vector<8x32xf32>
    %89 = vector.extract_strided_slice %73 {offsets = [0, 64], sizes = [8, 32], strides = [1, 1]} : vector<8x96xf32> to vector<8x32xf32>
    %90 = math.tanh %88 : vector<8x32xf32>
    %91 = arith.mulf %89, %90 : vector<8x32xf32>
    %92 = vector.extract_strided_slice %81 {offsets = [0, 32], sizes = [8, 32], strides = [1, 1]} : vector<8x96xf32> to vector<8x32xf32>
    %93 = arith.mulf %92, %56 : vector<8x32xf32>
    %94 = vector.extract_strided_slice %81 {offsets = [0, 0], sizes = [8, 32], strides = [1, 1]} : vector<8x96xf32> to vector<8x32xf32>
    %95 = arith.mulf %94, %83 : vector<8x32xf32>
    %96 = arith.addf %93, %95 : vector<8x32xf32>
    %97 = vector.extract_strided_slice %81 {offsets = [0, 64], sizes = [8, 32], strides = [1, 1]} : vector<8x96xf32> to vector<8x32xf32>
    %98 = math.tanh %96 : vector<8x32xf32>
    %99 = arith.mulf %97, %98 : vector<8x32xf32>
    %100 = vector.extract_strided_slice %7 {offsets = [2, 0, 0], sizes = [1, 8, 128], strides = [1, 1, 1]} : vector<8x8x128xf32> to vector<1x8x128xf32>
    %101 = vector.shape_cast %100 : vector<1x8x128xf32> to vector<8x128xf32>
    %cst_27 = arith.constant dense<0.000000e+00> : vector<8x128xf32>
    %102 = tpu.matmul %91, %14, %cst_27 {dimension_numbers = #tpu.dot_dimension_numbers<[1], [0], [0], [1], [0, 0, 1, 1], [], []>} : vector<8x32xf32>, vector<32x128xf32>, vector<8x128xf32> -> vector<8x128xf32>
    %103 = arith.addf %101, %102 : vector<8x128xf32>
    %104 = vector.extract_strided_slice %13 {offsets = [5, 0, 0], sizes = [1, 8, 128], strides = [1, 1, 1]} : vector<8x8x128xf32> to vector<1x8x128xf32>
    %105 = vector.shape_cast %104 : vector<1x8x128xf32> to vector<8x128xf32>
    %cst_28 = arith.constant dense<0.000000e+00> : vector<8x128xf32>
    %106 = tpu.matmul %99, %15, %cst_28 {dimension_numbers = #tpu.dot_dimension_numbers<[1], [0], [0], [1], [0, 0, 1, 1], [], []>} : vector<8x32xf32>, vector<32x128xf32>, vector<8x128xf32> -> vector<8x128xf32>
    %107 = arith.addf %105, %106 : vector<8x128xf32>
    %108 = vector.extract_strided_slice %103 {offsets = [0, 0], sizes = [8, 96], strides = [1, 1]} : vector<8x128xf32> to vector<8x96xf32>
    %109 = arith.negf %108 : vector<8x96xf32>
    %110 = math.exp %109 : vector<8x96xf32>
    %cst_29 = arith.constant 1.000000e+00 : f32
    %111 = vector.broadcast %cst_29 : f32 to vector<8x96xf32>
    %112 = arith.addf %111, %110 : vector<8x96xf32>
    %113 = arith.divf %111, %112 : vector<8x96xf32>
    %114 = vector.extract_strided_slice %103 {offsets = [0, 96], sizes = [8, 32], strides = [1, 1]} : vector<8x128xf32> to vector<8x32xf32>
    %115 = math.tanh %114 : vector<8x32xf32>
    %116 = vector.extract_strided_slice %107 {offsets = [0, 0], sizes = [8, 96], strides = [1, 1]} : vector<8x128xf32> to vector<8x96xf32>
    %117 = arith.negf %116 : vector<8x96xf32>
    %118 = math.exp %117 : vector<8x96xf32>
    %cst_30 = arith.constant 1.000000e+00 : f32
    %119 = vector.broadcast %cst_30 : f32 to vector<8x96xf32>
    %120 = arith.addf %119, %118 : vector<8x96xf32>
    %121 = arith.divf %119, %120 : vector<8x96xf32>
    %122 = vector.extract_strided_slice %107 {offsets = [0, 96], sizes = [8, 32], strides = [1, 1]} : vector<8x128xf32> to vector<8x32xf32>
    %123 = math.tanh %122 : vector<8x32xf32>
    %124 = vector.extract_strided_slice %113 {offsets = [0, 32], sizes = [8, 32], strides = [1, 1]} : vector<8x96xf32> to vector<8x32xf32>
    %125 = arith.mulf %124, %88 : vector<8x32xf32>
    %126 = vector.extract_strided_slice %113 {offsets = [0, 0], sizes = [8, 32], strides = [1, 1]} : vector<8x96xf32> to vector<8x32xf32>
    %127 = arith.mulf %126, %115 : vector<8x32xf32>
    %128 = arith.addf %125, %127 : vector<8x32xf32>
    %129 = vector.extract_strided_slice %113 {offsets = [0, 64], sizes = [8, 32], strides = [1, 1]} : vector<8x96xf32> to vector<8x32xf32>
    %130 = math.tanh %128 : vector<8x32xf32>
    %131 = arith.mulf %129, %130 : vector<8x32xf32>
    %132 = vector.extract_strided_slice %121 {offsets = [0, 32], sizes = [8, 32], strides = [1, 1]} : vector<8x96xf32> to vector<8x32xf32>
    %133 = arith.mulf %132, %96 : vector<8x32xf32>
    %134 = vector.extract_strided_slice %121 {offsets = [0, 0], sizes = [8, 32], strides = [1, 1]} : vector<8x96xf32> to vector<8x32xf32>
    %135 = arith.mulf %134, %123 : vector<8x32xf32>
    %136 = arith.addf %133, %135 : vector<8x32xf32>
    %137 = vector.extract_strided_slice %121 {offsets = [0, 64], sizes = [8, 32], strides = [1, 1]} : vector<8x96xf32> to vector<8x32xf32>
    %138 = math.tanh %136 : vector<8x32xf32>
    %139 = arith.mulf %137, %138 : vector<8x32xf32>
    %140 = vector.extract_strided_slice %7 {offsets = [3, 0, 0], sizes = [1, 8, 128], strides = [1, 1, 1]} : vector<8x8x128xf32> to vector<1x8x128xf32>
    %141 = vector.shape_cast %140 : vector<1x8x128xf32> to vector<8x128xf32>
    %cst_31 = arith.constant dense<0.000000e+00> : vector<8x128xf32>
    %142 = tpu.matmul %131, %14, %cst_31 {dimension_numbers = #tpu.dot_dimension_numbers<[1], [0], [0], [1], [0, 0, 1, 1], [], []>} : vector<8x32xf32>, vector<32x128xf32>, vector<8x128xf32> -> vector<8x128xf32>
    %143 = arith.addf %141, %142 : vector<8x128xf32>
    %144 = vector.extract_strided_slice %13 {offsets = [4, 0, 0], sizes = [1, 8, 128], strides = [1, 1, 1]} : vector<8x8x128xf32> to vector<1x8x128xf32>
    %145 = vector.shape_cast %144 : vector<1x8x128xf32> to vector<8x128xf32>
    %cst_32 = arith.constant dense<0.000000e+00> : vector<8x128xf32>
    %146 = tpu.matmul %139, %15, %cst_32 {dimension_numbers = #tpu.dot_dimension_numbers<[1], [0], [0], [1], [0, 0, 1, 1], [], []>} : vector<8x32xf32>, vector<32x128xf32>, vector<8x128xf32> -> vector<8x128xf32>
    %147 = arith.addf %145, %146 : vector<8x128xf32>
    %148 = vector.extract_strided_slice %143 {offsets = [0, 0], sizes = [8, 96], strides = [1, 1]} : vector<8x128xf32> to vector<8x96xf32>
    %149 = arith.negf %148 : vector<8x96xf32>
    %150 = math.exp %149 : vector<8x96xf32>
    %cst_33 = arith.constant 1.000000e+00 : f32
    %151 = vector.broadcast %cst_33 : f32 to vector<8x96xf32>
    %152 = arith.addf %151, %150 : vector<8x96xf32>
    %153 = arith.divf %151, %152 : vector<8x96xf32>
    %154 = vector.extract_strided_slice %143 {offsets = [0, 96], sizes = [8, 32], strides = [1, 1]} : vector<8x128xf32> to vector<8x32xf32>
    %155 = math.tanh %154 : vector<8x32xf32>
    %156 = vector.extract_strided_slice %147 {offsets = [0, 0], sizes = [8, 96], strides = [1, 1]} : vector<8x128xf32> to vector<8x96xf32>
    %157 = arith.negf %156 : vector<8x96xf32>
    %158 = math.exp %157 : vector<8x96xf32>
    %cst_34 = arith.constant 1.000000e+00 : f32
    %159 = vector.broadcast %cst_34 : f32 to vector<8x96xf32>
    %160 = arith.addf %159, %158 : vector<8x96xf32>
    %161 = arith.divf %159, %160 : vector<8x96xf32>
    %162 = vector.extract_strided_slice %147 {offsets = [0, 96], sizes = [8, 32], strides = [1, 1]} : vector<8x128xf32> to vector<8x32xf32>
    %163 = math.tanh %162 : vector<8x32xf32>
    %164 = vector.extract_strided_slice %153 {offsets = [0, 32], sizes = [8, 32], strides = [1, 1]} : vector<8x96xf32> to vector<8x32xf32>
    %165 = arith.mulf %164, %128 : vector<8x32xf32>
    %166 = vector.extract_strided_slice %153 {offsets = [0, 0], sizes = [8, 32], strides = [1, 1]} : vector<8x96xf32> to vector<8x32xf32>
    %167 = arith.mulf %166, %155 : vector<8x32xf32>
    %168 = arith.addf %165, %167 : vector<8x32xf32>
    %169 = vector.extract_strided_slice %153 {offsets = [0, 64], sizes = [8, 32], strides = [1, 1]} : vector<8x96xf32> to vector<8x32xf32>
    %170 = math.tanh %168 : vector<8x32xf32>
    %171 = arith.mulf %169, %170 : vector<8x32xf32>
    %172 = vector.extract_strided_slice %161 {offsets = [0, 32], sizes = [8, 32], strides = [1, 1]} : vector<8x96xf32> to vector<8x32xf32>
    %173 = arith.mulf %172, %136 : vector<8x32xf32>
    %174 = vector.extract_strided_slice %161 {offsets = [0, 0], sizes = [8, 32], strides = [1, 1]} : vector<8x96xf32> to vector<8x32xf32>
    %175 = arith.mulf %174, %163 : vector<8x32xf32>
    %176 = arith.addf %173, %175 : vector<8x32xf32>
    %177 = vector.extract_strided_slice %161 {offsets = [0, 64], sizes = [8, 32], strides = [1, 1]} : vector<8x96xf32> to vector<8x32xf32>
    %178 = math.tanh %176 : vector<8x32xf32>
    %179 = arith.mulf %177, %178 : vector<8x32xf32>
    %180 = vector.extract_strided_slice %7 {offsets = [4, 0, 0], sizes = [1, 8, 128], strides = [1, 1, 1]} : vector<8x8x128xf32> to vector<1x8x128xf32>
    %181 = vector.shape_cast %180 : vector<1x8x128xf32> to vector<8x128xf32>
    %cst_35 = arith.constant dense<0.000000e+00> : vector<8x128xf32>
    %182 = tpu.matmul %171, %14, %cst_35 {dimension_numbers = #tpu.dot_dimension_numbers<[1], [0], [0], [1], [0, 0, 1, 1], [], []>} : vector<8x32xf32>, vector<32x128xf32>, vector<8x128xf32> -> vector<8x128xf32>
    %183 = arith.addf %181, %182 : vector<8x128xf32>
    %184 = vector.extract_strided_slice %13 {offsets = [3, 0, 0], sizes = [1, 8, 128], strides = [1, 1, 1]} : vector<8x8x128xf32> to vector<1x8x128xf32>
    %185 = vector.shape_cast %184 : vector<1x8x128xf32> to vector<8x128xf32>
    %cst_36 = arith.constant dense<0.000000e+00> : vector<8x128xf32>
    %186 = tpu.matmul %179, %15, %cst_36 {dimension_numbers = #tpu.dot_dimension_numbers<[1], [0], [0], [1], [0, 0, 1, 1], [], []>} : vector<8x32xf32>, vector<32x128xf32>, vector<8x128xf32> -> vector<8x128xf32>
    %187 = arith.addf %185, %186 : vector<8x128xf32>
    %188 = vector.extract_strided_slice %183 {offsets = [0, 0], sizes = [8, 96], strides = [1, 1]} : vector<8x128xf32> to vector<8x96xf32>
    %189 = arith.negf %188 : vector<8x96xf32>
    %190 = math.exp %189 : vector<8x96xf32>
    %cst_37 = arith.constant 1.000000e+00 : f32
    %191 = vector.broadcast %cst_37 : f32 to vector<8x96xf32>
    %192 = arith.addf %191, %190 : vector<8x96xf32>
    %193 = arith.divf %191, %192 : vector<8x96xf32>
    %194 = vector.extract_strided_slice %183 {offsets = [0, 96], sizes = [8, 32], strides = [1, 1]} : vector<8x128xf32> to vector<8x32xf32>
    %195 = math.tanh %194 : vector<8x32xf32>
    %196 = vector.extract_strided_slice %187 {offsets = [0, 0], sizes = [8, 96], strides = [1, 1]} : vector<8x128xf32> to vector<8x96xf32>
    %197 = arith.negf %196 : vector<8x96xf32>
    %198 = math.exp %197 : vector<8x96xf32>
    %cst_38 = arith.constant 1.000000e+00 : f32
    %199 = vector.broadcast %cst_38 : f32 to vector<8x96xf32>
    %200 = arith.addf %199, %198 : vector<8x96xf32>
    %201 = arith.divf %199, %200 : vector<8x96xf32>
    %202 = vector.extract_strided_slice %187 {offsets = [0, 96], sizes = [8, 32], strides = [1, 1]} : vector<8x128xf32> to vector<8x32xf32>
    %203 = math.tanh %202 : vector<8x32xf32>
    %204 = vector.extract_strided_slice %193 {offsets = [0, 32], sizes = [8, 32], strides = [1, 1]} : vector<8x96xf32> to vector<8x32xf32>
    %205 = arith.mulf %204, %168 : vector<8x32xf32>
    %206 = vector.extract_strided_slice %193 {offsets = [0, 0], sizes = [8, 32], strides = [1, 1]} : vector<8x96xf32> to vector<8x32xf32>
    %207 = arith.mulf %206, %195 : vector<8x32xf32>
    %208 = arith.addf %205, %207 : vector<8x32xf32>
    %209 = vector.extract_strided_slice %193 {offsets = [0, 64], sizes = [8, 32], strides = [1, 1]} : vector<8x96xf32> to vector<8x32xf32>
    %210 = math.tanh %208 : vector<8x32xf32>
    %211 = arith.mulf %209, %210 : vector<8x32xf32>
    %212 = vector.extract_strided_slice %201 {offsets = [0, 32], sizes = [8, 32], strides = [1, 1]} : vector<8x96xf32> to vector<8x32xf32>
    %213 = arith.mulf %212, %176 : vector<8x32xf32>
    %214 = vector.extract_strided_slice %201 {offsets = [0, 0], sizes = [8, 32], strides = [1, 1]} : vector<8x96xf32> to vector<8x32xf32>
    %215 = arith.mulf %214, %203 : vector<8x32xf32>
    %216 = arith.addf %213, %215 : vector<8x32xf32>
    %217 = vector.extract_strided_slice %201 {offsets = [0, 64], sizes = [8, 32], strides = [1, 1]} : vector<8x96xf32> to vector<8x32xf32>
    %218 = math.tanh %216 : vector<8x32xf32>
    %219 = arith.mulf %217, %218 : vector<8x32xf32>
    %220 = vector.extract_strided_slice %7 {offsets = [5, 0, 0], sizes = [1, 8, 128], strides = [1, 1, 1]} : vector<8x8x128xf32> to vector<1x8x128xf32>
    %221 = vector.shape_cast %220 : vector<1x8x128xf32> to vector<8x128xf32>
    %cst_39 = arith.constant dense<0.000000e+00> : vector<8x128xf32>
    %222 = tpu.matmul %211, %14, %cst_39 {dimension_numbers = #tpu.dot_dimension_numbers<[1], [0], [0], [1], [0, 0, 1, 1], [], []>} : vector<8x32xf32>, vector<32x128xf32>, vector<8x128xf32> -> vector<8x128xf32>
    %223 = arith.addf %221, %222 : vector<8x128xf32>
    %224 = vector.extract_strided_slice %13 {offsets = [2, 0, 0], sizes = [1, 8, 128], strides = [1, 1, 1]} : vector<8x8x128xf32> to vector<1x8x128xf32>
    %225 = vector.shape_cast %224 : vector<1x8x128xf32> to vector<8x128xf32>
    %cst_40 = arith.constant dense<0.000000e+00> : vector<8x128xf32>
    %226 = tpu.matmul %219, %15, %cst_40 {dimension_numbers = #tpu.dot_dimension_numbers<[1], [0], [0], [1], [0, 0, 1, 1], [], []>} : vector<8x32xf32>, vector<32x128xf32>, vector<8x128xf32> -> vector<8x128xf32>
    %227 = arith.addf %225, %226 : vector<8x128xf32>
    %228 = vector.extract_strided_slice %223 {offsets = [0, 0], sizes = [8, 96], strides = [1, 1]} : vector<8x128xf32> to vector<8x96xf32>
    %229 = arith.negf %228 : vector<8x96xf32>
    %230 = math.exp %229 : vector<8x96xf32>
    %cst_41 = arith.constant 1.000000e+00 : f32
    %231 = vector.broadcast %cst_41 : f32 to vector<8x96xf32>
    %232 = arith.addf %231, %230 : vector<8x96xf32>
    %233 = arith.divf %231, %232 : vector<8x96xf32>
    %234 = vector.extract_strided_slice %223 {offsets = [0, 96], sizes = [8, 32], strides = [1, 1]} : vector<8x128xf32> to vector<8x32xf32>
    %235 = math.tanh %234 : vector<8x32xf32>
    %236 = vector.extract_strided_slice %227 {offsets = [0, 0], sizes = [8, 96], strides = [1, 1]} : vector<8x128xf32> to vector<8x96xf32>
    %237 = arith.negf %236 : vector<8x96xf32>
    %238 = math.exp %237 : vector<8x96xf32>
    %cst_42 = arith.constant 1.000000e+00 : f32
    %239 = vector.broadcast %cst_42 : f32 to vector<8x96xf32>
    %240 = arith.addf %239, %238 : vector<8x96xf32>
    %241 = arith.divf %239, %240 : vector<8x96xf32>
    %242 = vector.extract_strided_slice %227 {offsets = [0, 96], sizes = [8, 32], strides = [1, 1]} : vector<8x128xf32> to vector<8x32xf32>
    %243 = math.tanh %242 : vector<8x32xf32>
    %244 = vector.extract_strided_slice %233 {offsets = [0, 32], sizes = [8, 32], strides = [1, 1]} : vector<8x96xf32> to vector<8x32xf32>
    %245 = arith.mulf %244, %208 : vector<8x32xf32>
    %246 = vector.extract_strided_slice %233 {offsets = [0, 0], sizes = [8, 32], strides = [1, 1]} : vector<8x96xf32> to vector<8x32xf32>
    %247 = arith.mulf %246, %235 : vector<8x32xf32>
    %248 = arith.addf %245, %247 : vector<8x32xf32>
    %249 = vector.extract_strided_slice %233 {offsets = [0, 64], sizes = [8, 32], strides = [1, 1]} : vector<8x96xf32> to vector<8x32xf32>
    %250 = math.tanh %248 : vector<8x32xf32>
    %251 = arith.mulf %249, %250 : vector<8x32xf32>
    %252 = vector.extract_strided_slice %241 {offsets = [0, 32], sizes = [8, 32], strides = [1, 1]} : vector<8x96xf32> to vector<8x32xf32>
    %253 = arith.mulf %252, %216 : vector<8x32xf32>
    %254 = vector.extract_strided_slice %241 {offsets = [0, 0], sizes = [8, 32], strides = [1, 1]} : vector<8x96xf32> to vector<8x32xf32>
    %255 = arith.mulf %254, %243 : vector<8x32xf32>
    %256 = arith.addf %253, %255 : vector<8x32xf32>
    %257 = vector.extract_strided_slice %241 {offsets = [0, 64], sizes = [8, 32], strides = [1, 1]} : vector<8x96xf32> to vector<8x32xf32>
    %258 = math.tanh %256 : vector<8x32xf32>
    %259 = arith.mulf %257, %258 : vector<8x32xf32>
    %260 = vector.extract_strided_slice %7 {offsets = [6, 0, 0], sizes = [1, 8, 128], strides = [1, 1, 1]} : vector<8x8x128xf32> to vector<1x8x128xf32>
    %261 = vector.shape_cast %260 : vector<1x8x128xf32> to vector<8x128xf32>
    %cst_43 = arith.constant dense<0.000000e+00> : vector<8x128xf32>
    %262 = tpu.matmul %251, %14, %cst_43 {dimension_numbers = #tpu.dot_dimension_numbers<[1], [0], [0], [1], [0, 0, 1, 1], [], []>} : vector<8x32xf32>, vector<32x128xf32>, vector<8x128xf32> -> vector<8x128xf32>
    %263 = arith.addf %261, %262 : vector<8x128xf32>
    %264 = vector.extract_strided_slice %13 {offsets = [1, 0, 0], sizes = [1, 8, 128], strides = [1, 1, 1]} : vector<8x8x128xf32> to vector<1x8x128xf32>
    %265 = vector.shape_cast %264 : vector<1x8x128xf32> to vector<8x128xf32>
    %cst_44 = arith.constant dense<0.000000e+00> : vector<8x128xf32>
    %266 = tpu.matmul %259, %15, %cst_44 {dimension_numbers = #tpu.dot_dimension_numbers<[1], [0], [0], [1], [0, 0, 1, 1], [], []>} : vector<8x32xf32>, vector<32x128xf32>, vector<8x128xf32> -> vector<8x128xf32>
    %267 = arith.addf %265, %266 : vector<8x128xf32>
    %268 = vector.extract_strided_slice %263 {offsets = [0, 0], sizes = [8, 96], strides = [1, 1]} : vector<8x128xf32> to vector<8x96xf32>
    %269 = arith.negf %268 : vector<8x96xf32>
    %270 = math.exp %269 : vector<8x96xf32>
    %cst_45 = arith.constant 1.000000e+00 : f32
    %271 = vector.broadcast %cst_45 : f32 to vector<8x96xf32>
    %272 = arith.addf %271, %270 : vector<8x96xf32>
    %273 = arith.divf %271, %272 : vector<8x96xf32>
    %274 = vector.extract_strided_slice %263 {offsets = [0, 96], sizes = [8, 32], strides = [1, 1]} : vector<8x128xf32> to vector<8x32xf32>
    %275 = math.tanh %274 : vector<8x32xf32>
    %276 = vector.extract_strided_slice %267 {offsets = [0, 0], sizes = [8, 96], strides = [1, 1]} : vector<8x128xf32> to vector<8x96xf32>
    %277 = arith.negf %276 : vector<8x96xf32>
    %278 = math.exp %277 : vector<8x96xf32>
    %cst_46 = arith.constant 1.000000e+00 : f32
    %279 = vector.broadcast %cst_46 : f32 to vector<8x96xf32>
    %280 = arith.addf %279, %278 : vector<8x96xf32>
    %281 = arith.divf %279, %280 : vector<8x96xf32>
    %282 = vector.extract_strided_slice %267 {offsets = [0, 96], sizes = [8, 32], strides = [1, 1]} : vector<8x128xf32> to vector<8x32xf32>
    %283 = math.tanh %282 : vector<8x32xf32>
    %284 = vector.extract_strided_slice %273 {offsets = [0, 32], sizes = [8, 32], strides = [1, 1]} : vector<8x96xf32> to vector<8x32xf32>
    %285 = arith.mulf %284, %248 : vector<8x32xf32>
    %286 = vector.extract_strided_slice %273 {offsets = [0, 0], sizes = [8, 32], strides = [1, 1]} : vector<8x96xf32> to vector<8x32xf32>
    %287 = arith.mulf %286, %275 : vector<8x32xf32>
    %288 = arith.addf %285, %287 : vector<8x32xf32>
    %289 = vector.extract_strided_slice %273 {offsets = [0, 64], sizes = [8, 32], strides = [1, 1]} : vector<8x96xf32> to vector<8x32xf32>
    %290 = math.tanh %288 : vector<8x32xf32>
    %291 = arith.mulf %289, %290 : vector<8x32xf32>
    %292 = vector.extract_strided_slice %281 {offsets = [0, 32], sizes = [8, 32], strides = [1, 1]} : vector<8x96xf32> to vector<8x32xf32>
    %293 = arith.mulf %292, %256 : vector<8x32xf32>
    %294 = vector.extract_strided_slice %281 {offsets = [0, 0], sizes = [8, 32], strides = [1, 1]} : vector<8x96xf32> to vector<8x32xf32>
    %295 = arith.mulf %294, %283 : vector<8x32xf32>
    %296 = arith.addf %293, %295 : vector<8x32xf32>
    %297 = vector.extract_strided_slice %281 {offsets = [0, 64], sizes = [8, 32], strides = [1, 1]} : vector<8x96xf32> to vector<8x32xf32>
    %298 = math.tanh %296 : vector<8x32xf32>
    %299 = arith.mulf %297, %298 : vector<8x32xf32>
    %300 = vector.extract_strided_slice %7 {offsets = [7, 0, 0], sizes = [1, 8, 128], strides = [1, 1, 1]} : vector<8x8x128xf32> to vector<1x8x128xf32>
    %301 = vector.shape_cast %300 : vector<1x8x128xf32> to vector<8x128xf32>
    %cst_47 = arith.constant dense<0.000000e+00> : vector<8x128xf32>
    %302 = tpu.matmul %291, %14, %cst_47 {dimension_numbers = #tpu.dot_dimension_numbers<[1], [0], [0], [1], [0, 0, 1, 1], [], []>} : vector<8x32xf32>, vector<32x128xf32>, vector<8x128xf32> -> vector<8x128xf32>
    %303 = arith.addf %301, %302 : vector<8x128xf32>
    %304 = vector.extract_strided_slice %13 {offsets = [0, 0, 0], sizes = [1, 8, 128], strides = [1, 1, 1]} : vector<8x8x128xf32> to vector<1x8x128xf32>
    %305 = vector.shape_cast %304 : vector<1x8x128xf32> to vector<8x128xf32>
    %cst_48 = arith.constant dense<0.000000e+00> : vector<8x128xf32>
    %306 = tpu.matmul %299, %15, %cst_48 {dimension_numbers = #tpu.dot_dimension_numbers<[1], [0], [0], [1], [0, 0, 1, 1], [], []>} : vector<8x32xf32>, vector<32x128xf32>, vector<8x128xf32> -> vector<8x128xf32>
    %307 = arith.addf %305, %306 : vector<8x128xf32>
    %308 = vector.extract_strided_slice %303 {offsets = [0, 0], sizes = [8, 96], strides = [1, 1]} : vector<8x128xf32> to vector<8x96xf32>
    %309 = arith.negf %308 : vector<8x96xf32>
    %310 = math.exp %309 : vector<8x96xf32>
    %cst_49 = arith.constant 1.000000e+00 : f32
    %311 = vector.broadcast %cst_49 : f32 to vector<8x96xf32>
    %312 = arith.addf %311, %310 : vector<8x96xf32>
    %313 = arith.divf %311, %312 : vector<8x96xf32>
    %314 = vector.extract_strided_slice %303 {offsets = [0, 96], sizes = [8, 32], strides = [1, 1]} : vector<8x128xf32> to vector<8x32xf32>
    %315 = math.tanh %314 : vector<8x32xf32>
    %316 = vector.extract_strided_slice %307 {offsets = [0, 0], sizes = [8, 96], strides = [1, 1]} : vector<8x128xf32> to vector<8x96xf32>
    %317 = arith.negf %316 : vector<8x96xf32>
    %318 = math.exp %317 : vector<8x96xf32>
    %cst_50 = arith.constant 1.000000e+00 : f32
    %319 = vector.broadcast %cst_50 : f32 to vector<8x96xf32>
    %320 = arith.addf %319, %318 : vector<8x96xf32>
    %321 = arith.divf %319, %320 : vector<8x96xf32>
    %322 = vector.extract_strided_slice %307 {offsets = [0, 96], sizes = [8, 32], strides = [1, 1]} : vector<8x128xf32> to vector<8x32xf32>
    %323 = math.tanh %322 : vector<8x32xf32>
    %324 = vector.extract_strided_slice %313 {offsets = [0, 32], sizes = [8, 32], strides = [1, 1]} : vector<8x96xf32> to vector<8x32xf32>
    %325 = arith.mulf %324, %288 : vector<8x32xf32>
    %326 = vector.extract_strided_slice %313 {offsets = [0, 0], sizes = [8, 32], strides = [1, 1]} : vector<8x96xf32> to vector<8x32xf32>
    %327 = arith.mulf %326, %315 : vector<8x32xf32>
    %328 = arith.addf %325, %327 : vector<8x32xf32>
    %329 = vector.extract_strided_slice %313 {offsets = [0, 64], sizes = [8, 32], strides = [1, 1]} : vector<8x96xf32> to vector<8x32xf32>
    %330 = math.tanh %328 : vector<8x32xf32>
    %331 = arith.mulf %329, %330 : vector<8x32xf32>
    %332 = vector.extract_strided_slice %321 {offsets = [0, 32], sizes = [8, 32], strides = [1, 1]} : vector<8x96xf32> to vector<8x32xf32>
    %333 = arith.mulf %332, %296 : vector<8x32xf32>
    %334 = vector.extract_strided_slice %321 {offsets = [0, 0], sizes = [8, 32], strides = [1, 1]} : vector<8x96xf32> to vector<8x32xf32>
    %335 = arith.mulf %334, %323 : vector<8x32xf32>
    %336 = arith.addf %333, %335 : vector<8x32xf32>
    %337 = vector.extract_strided_slice %321 {offsets = [0, 64], sizes = [8, 32], strides = [1, 1]} : vector<8x96xf32> to vector<8x32xf32>
    %338 = math.tanh %336 : vector<8x32xf32>
    %339 = arith.mulf %337, %338 : vector<8x32xf32>
    %340 = vector.shape_cast %51 : vector<8x32xf32> to vector<8x1x32xf32>
    %341 = vector.shape_cast %91 : vector<8x32xf32> to vector<8x1x32xf32>
    %342 = vector.shape_cast %131 : vector<8x32xf32> to vector<8x1x32xf32>
    %343 = vector.shape_cast %171 : vector<8x32xf32> to vector<8x1x32xf32>
    %344 = vector.shape_cast %211 : vector<8x32xf32> to vector<8x1x32xf32>
    %345 = vector.shape_cast %251 : vector<8x32xf32> to vector<8x1x32xf32>
    %346 = vector.shape_cast %291 : vector<8x32xf32> to vector<8x1x32xf32>
    %347 = vector.shape_cast %331 : vector<8x32xf32> to vector<8x1x32xf32>
    %348 = tpu.concatenate %340, %341, %342, %343, %344, %345, %346, %347 in 1 : vector<8x1x32xf32>, vector<8x1x32xf32>, vector<8x1x32xf32>, vector<8x1x32xf32>, vector<8x1x32xf32>, vector<8x1x32xf32>, vector<8x1x32xf32>, vector<8x1x32xf32> -> vector<8x8x32xf32>
    %349 = vector.shape_cast %339 : vector<8x32xf32> to vector<8x1x32xf32>
    %350 = vector.shape_cast %299 : vector<8x32xf32> to vector<8x1x32xf32>
    %351 = vector.shape_cast %259 : vector<8x32xf32> to vector<8x1x32xf32>
    %352 = vector.shape_cast %219 : vector<8x32xf32> to vector<8x1x32xf32>
    %353 = vector.shape_cast %179 : vector<8x32xf32> to vector<8x1x32xf32>
    %354 = vector.shape_cast %139 : vector<8x32xf32> to vector<8x1x32xf32>
    %355 = vector.shape_cast %99 : vector<8x32xf32> to vector<8x1x32xf32>
    %356 = vector.shape_cast %59 : vector<8x32xf32> to vector<8x1x32xf32>
    %357 = tpu.concatenate %349, %350, %351, %352, %353, %354, %355, %356 in 1 : vector<8x1x32xf32>, vector<8x1x32xf32>, vector<8x1x32xf32>, vector<8x1x32xf32>, vector<8x1x32xf32>, vector<8x1x32xf32>, vector<8x1x32xf32>, vector<8x1x32xf32> -> vector<8x8x32xf32>
    %358 = tpu.concatenate %348, %357 in 2 : vector<8x8x32xf32>, vector<8x8x32xf32> -> vector<8x8x64xf32>
    %359 = arith.truncf %358 : vector<8x8x64xf32> to vector<8x8x64xbf16>
    "tpu.trace_start"() <{level = 10 : i32, message = "btd,bsd->bts"}> : () -> ()
    %cst_51 = arith.constant dense<0.000000e+00> : vector<8x8x8xf32>
    %360 = tpu.matmul %359, %359, %cst_51 {dimension_numbers = #tpu.dot_dimension_numbers<[2], [2], [1], [1], [0, 0, 0, 1, 1, 1], [0], [0]>} : vector<8x8x64xbf16>, vector<8x8x64xbf16>, vector<8x8x8xf32> -> vector<8x8x8xf32>
    "tpu.trace_stop"() : () -> ()
    %cst_52 = arith.constant dense<0xFF800000> : vector<8x8xf32>
    %361 = vector.multi_reduction <maximumf>, %360, %cst_52 [2] : vector<8x8x8xf32> to vector<8x8xf32>
    %362 = vector.shape_cast %361 : vector<8x8xf32> to vector<8x8x1xf32>
    %363 = vector.broadcast %362 : vector<8x8x1xf32> to vector<8x8x8xf32>
    %364 = arith.subf %360, %363 : vector<8x8x8xf32>
    %365 = math.exp %364 : vector<8x8x8xf32>
    %cst_53 = arith.constant dense<0.000000e+00> : vector<8x8xf32>
    %366 = vector.multi_reduction <add>, %365, %cst_53 [2] : vector<8x8x8xf32> to vector<8x8xf32>
    %367 = vector.shape_cast %366 : vector<8x8xf32> to vector<8x8x1xf32>
    %368 = tpu.reciprocal %367 {approx = true} : vector<8x8x1xf32> -> vector<8x8x1xf32>
    %369 = vector.broadcast %368 : vector<8x8x1xf32> to vector<8x8x8xf32>
    %370 = arith.mulf %365, %369 : vector<8x8x8xf32>
    %c0_54 = arith.constant 0 : index
    %c0_55 = arith.constant 0 : index
    %c0_56 = arith.constant 0 : index
    %371 = vector.load %arg12[%c0_54, %c0_55, %c0_56] : memref<8x8x8xf32, #tpu.memory_space<vmem>>, vector<8x8x8xf32>
    tpu.vector_store %arg12[%c0_54, %c0_55, %c0_56], %370 {strides = array<i32>} : memref<8x8x8xf32, #tpu.memory_space<vmem>>, vector<8x8x8xf32>,
    %372 = arith.truncf %370 : vector<8x8x8xf32> to vector<8x8x8xbf16>
    "tpu.trace_start"() <{level = 10 : i32, message = "bts,bsd->btd"}> : () -> ()
    %cst_57 = arith.constant dense<0.000000e+00> : vector<8x8x64xf32>
    %373 = tpu.matmul %372, %359, %cst_57 {dimension_numbers = #tpu.dot_dimension_numbers<[2], [1], [1], [2], [0, 0, 0, 1, 1, 2], [0], [0]>} : vector<8x8x8xbf16>, vector<8x8x64xbf16>, vector<8x8x64xf32> -> vector<8x8x64xf32>
    "tpu.trace_stop"() : () -> ()
    %c0_58 = arith.constant 0 : index
    %c0_59 = arith.constant 0 : index
    %c0_60 = arith.constant 0 : index
    %374 = vector.load %arg2[%c0_58, %c0_59, %c0_60] : memref<8x8x1xf32, #tpu.memory_space<vmem>>, vector<8x8x1xf32>
    %375 = vector.broadcast %374 : vector<8x8x1xf32> to vector<8x8x64xf32>
    %376 = arith.mulf %373, %375 : vector<8x8x64xf32>
    %377 = arith.truncf %376 : vector<8x8x64xf32> to vector<8x8x64xbf16>
    %378 = vector.shape_cast %377 : vector<8x8x64xbf16> to vector<64x64xbf16>
    %c0_61 = arith.constant 0 : index
    %c0_62 = arith.constant 0 : index
    %379 = vector.load %arg9[%c0_61, %c0_62] : memref<64x128xbf16, #tpu.memory_space<vmem>>, vector<64x128xbf16>
    %cst_63 = arith.constant dense<0.000000e+00> : vector<64x128xf32>
    %380 = tpu.matmul %378, %379, %cst_63 {dimension_numbers = #tpu.dot_dimension_numbers<[1], [0], [0], [1], [0, 0, 1, 1], [], []>} : vector<64x64xbf16>, vector<64x128xbf16>, vector<64x128xf32> -> vector<64x128xf32>
    %c0_64 = arith.constant 0 : index
    %c0_65 = arith.constant 0 : index
    %381 = vector.load %arg10[%c0_64, %c0_65] : memref<1x128xf32, #tpu.memory_space<vmem>>, vector<1x128xf32>
    %382 = vector.broadcast %381 : vector<1x128xf32> to vector<64x128xf32>
    %383 = arith.addf %380, %382 : vector<64x128xf32>
    %384 = vector.shape_cast %383 : vector<64x128xf32> to vector<8x8x128xf32>
    %c0_66 = arith.constant 0 : index
    %c0_67 = arith.constant 0 : index
    %c0_68 = arith.constant 0 : index
    %385 = vector.load %arg11[%c0_66, %c0_67, %c0_68] : memref<8x8x128xf32, #tpu.memory_space<vmem>>, vector<8x8x128xf32>
    tpu.vector_store %arg11[%c0_66, %c0_67, %c0_68], %384 {strides = array<i32>} : memref<8x8x128xf32, #tpu.memory_space<vmem>>, vector<8x8x128xf32>,
    return
  }
  func.func @transform_0(%arg0: i32) -> (i32, i32, i32) {
    %c0_i32 = arith.constant 0 : i32
    %c0_i32_0 = arith.constant 0 : i32
    %c0_i32_1 = arith.constant 0 : i32
    return %c0_i32, %arg0, %c0_i32_0 : i32, i32, i32
  }
  func.func @transform_1(%arg0: i32) -> (i32, i32, i32) {
    %c0_i32 = arith.constant 0 : i32
    %c0_i32_0 = arith.constant 0 : i32
    %c0_i32_1 = arith.constant 0 : i32
    return %arg0, %c0_i32, %c0_i32_0 : i32, i32, i32
  }
  func.func @transform_2(%arg0: i32) -> (i32, i32) {
    %c0_i32 = arith.constant 0 : i32
    %c0_i32_0 = arith.constant 0 : i32
    %c0_i32_1 = arith.constant 0 : i32
    return %c0_i32, %c0_i32_0 : i32, i32
  }
  func.func @transform_3(%arg0: i32) -> (i32, i32) {
    %c0_i32 = arith.constant 0 : i32
    %c0_i32_0 = arith.constant 0 : i32
    %c0_i32_1 = arith.constant 0 : i32
    return %c0_i32, %c0_i32_0 : i32, i32
  }
  func.func @transform_4(%arg0: i32) -> (i32, i32) {
    %c0_i32 = arith.constant 0 : i32
    %c0_i32_0 = arith.constant 0 : i32
    %c0_i32_1 = arith.constant 0 : i32
    return %c0_i32, %c0_i32_0 : i32, i32
  }
  func.func @transform_5(%arg0: i32) -> (i32, i32) {
    %c0_i32 = arith.constant 0 : i32
    %c0_i32_0 = arith.constant 0 : i32
    %c0_i32_1 = arith.constant 0 : i32
    return %c0_i32, %c0_i32_0 : i32, i32
  }
  func.func @transform_6(%arg0: i32) -> (i32, i32) {
    %c0_i32 = arith.constant 0 : i32
    %c0_i32_0 = arith.constant 0 : i32
    %c0_i32_1 = arith.constant 0 : i32
    return %c0_i32, %c0_i32_0 : i32, i32
  }
  func.func @transform_7(%arg0: i32) -> (i32, i32) {
    %c0_i32 = arith.constant 0 : i32
    %c0_i32_0 = arith.constant 0 : i32
    %c0_i32_1 = arith.constant 0 : i32
    return %c0_i32, %c0_i32_0 : i32, i32
  }
  func.func @transform_8(%arg0: i32) -> (i32, i32) {
    %c0_i32 = arith.constant 0 : i32
    %c0_i32_0 = arith.constant 0 : i32
    %c0_i32_1 = arith.constant 0 : i32
    return %c0_i32, %c0_i32_0 : i32, i32
  }
  func.func @transform_9(%arg0: i32) -> (i32, i32) {
    %c0_i32 = arith.constant 0 : i32
    %c0_i32_0 = arith.constant 0 : i32
    %c0_i32_1 = arith.constant 0 : i32
    return %c0_i32, %c0_i32_0 : i32, i32
  }
  func.func @transform_10(%arg0: i32) -> (i32, i32, i32) {
    %c0_i32 = arith.constant 0 : i32
    %c0_i32_0 = arith.constant 0 : i32
    %c0_i32_1 = arith.constant 0 : i32
    return %arg0, %c0_i32, %c0_i32_0 : i32, i32, i32
  }
  func.func @transform_11(%arg0: i32) -> (i32, i32, i32) {
    %c0_i32 = arith.constant 0 : i32
    %c0_i32_0 = arith.constant 0 : i32
    %c0_i32_1 = arith.constant 0 : i32
    return %arg0, %c0_i32, %c0_i32_0 : i32, i32, i32
  }
}

</mosaic_0001>

<bundles_post_ra>
// kernel: _lambda_.1
= control target key start
LH: loop header
LB: loop body
LE: loop exit
PB: predicated region body
PF: predicated region fallthrough
CT: control target
= control target key end

     0   :  { %v5286_v1 = vmov 0.0|0.0   ;;  %vm5287_vm0 = vmmov 0   ;;  %v6760_v2 = vmov 0.0   ;;  %vm89_vm1 = vcmask 261120   ;;  %s5292_s28 = smov 96   ;;  %s6748_s2 = inlined_call_operand.vmem [shape: bf16[32,128], index: 2, kind: input, shape index: {}]   ;;  %s6749_s4 = inlined_call_operand.vmem [shape: f32[32,128], index: 4, kind: input, shape index: {}]   ;;  %s6750_s0 = inlined_call_operand.vmem [shape: bf16[8,8,32], index: 0, kind: input, shape index: {}]   ;;  %s6751_s3 = inlined_call_operand.vmem [shape: bf16[32,128], index: 3, kind: input, shape index: {}]   ;;  %s6752_s5 = inlined_call_operand.vmem [shape: f32[32,128], index: 5, kind: input, shape index: {}]   ;;  %s6753_s6 = inlined_call_operand.vmem [shape: f32[1,128], index: 6, kind: input, shape index: {}]   ;;  %s6754_s7 = inlined_call_operand.vmem [shape: f32[1,128], index: 7, kind: input, shape index: {}]   ;;  %s6755_s1 = inlined_call_operand.vmem [shape: f32[8,8,1], index: 1, kind: input, shape index: {}]   ;;  %s6756_s11 = inlined_call_operand.vmem [shape: f32[8,8,8], index: 11, kind: output, shape index: {1}]   ;;  %s6757_s8 = inlined_call_operand.vmem [shape: bf16[64,128], index: 8, kind: input, shape index: {}]   ;;  %s6758_s9 = inlined_call_operand.vmem [shape: f32[1,128], index: 9, kind: input, shape index: {}]   ;;  %s6759_s10 = inlined_call_operand.vmem [shape: f32[8,8,128], index: 10, kind: output, shape index: {0}]  }
   0x1   :  { %v5114_v0 = vld [vmem:[%s6748_s2] sm:$0xff]   ;;  %4968 = vmatprep.subr.bf16.mxu0 %v5286_v1  ;;  %4688 = vmatprep.mubr.msk.f32.mxu0 %vm5287_vm0, %v6760_v2  ;;  %v5115_v3 = vld [vmem:[%s6748_s2 + $0x8] sm:$0xff]   ;;  %v257_v10 = vld [vmem:[%s6749_s4 + $0x10] sm:$0xff]  ;;  %s5290_s2 = smov 64   ;;  %vm2537_vm2 = vcmask 1040384   ;;  %vm2546_vm3 = vcmask 1041408  }
   0x2   :  { %4656 = vmatprep.subr.bf16.mxu1 %v5114_v0  ;;  %v255_v4 = vld [vmem:[%s6749_s4] sm:$0xff]  ;;  %v256_v5 = vld [vmem:[%s6749_s4 + $0x8] sm:$0xff]  ;;  %v258_v11 = vld [vmem:[%s6749_s4 + $0x18] sm:$0xff]  ;;  %vm2555_vm4 = vcmask 1042432   ;;  %vm2564_vm5 = vcmask 1043456   ;;  %vm2573_vm6 = vcmask 1044480  }
   0x3   :  { %4657 = vmatpush3.bf16.msra.mxu1 %v5114_v0  ;;  %v5369_v6 = vpack.c.bf16 %v256_v5, %v255_v4  ;;  %v5116_v7 = vld [vmem:[%s6750_s0] sm:$0xff]   ;;  %v5117_v8 = vld [vmem:[%s6750_s0 + $0x8] sm:$0xff]   ;;  %v5389_v12 = vpack.c.bf16 %v258_v11, %v257_v10  ;;  %v5119_v13 = vld [vmem:[%s6750_s0 + $0x10] sm:$0xff]   ;;  %vm2582_vm7 = vcmask 1045504   ;;  %vm2591_vm8 = vcmask 1046528  }
   0x4   :  { %4658 = vmatprep.subr.bf16.mxu1 %v5115_v3  ;;  %4660 = vmatprep.mubr.msk.bf16.mxu1 %vm89_vm1, %v5116_v7  ;;  %v5118_v9 = vld [vmem:[%s6751_s3] sm:$0xff]   ;;  %v5121_v14 = vld [vmem:[%s6751_s3 + $0x8] sm:$0xff]   ;;  %v5120_v15 = vld [vmem:[%s6750_s0 + $0x18] sm:$0xff]   ;;  %vm3417_vm9 = vcmask 523264   ;;  %vm3762_vm10 = vcmask 64512  }
   0x5   :  { %4970 = vmatpush3.bf16.msra.mxu0 %v5369_v6  ;;  %v259_v16 = vld [vmem:[%s6752_s5] sm:$0xff]  ;;  %v260_v17 = vld [vmem:[%s6752_s5 + $0x8] sm:$0xff]  ;;  %v261_v19 = vld [vmem:[%s6752_s5 + $0x10] sm:$0xff] }
   0x6   :  { %4971 = vmatprep.subr.bf16.mxu0 %v5286_v1  ;;  %v5420_v18 = vpack.c.bf16 %v260_v17, %v259_v16  ;;  %v262_v20 = vld [vmem:[%s6752_s5 + $0x18] sm:$0xff]  ;;  %v4443_v22 = vld [vmem:[%s6753_s6] ss:$0 sm:$0xff] }
   0x7   :  { %4659 = vmatpush3.bf16.msra.mxu1 %v5115_v3  ;;  %v5431_v21 = vpack.c.bf16 %v262_v20, %v261_v19  ;;  %v4454_v42 = vld [vmem:[%s6754_s7] ss:$0 sm:$0xff]  ;;  %s5289_s7 = smov 32  }
   0x8   :  { %4668 = vmatprep.subr.bf16.mxu1 %v5118_v9 }
   0x9   :  { %4973 = vmatpush3.bf16.msra.mxu0 %v5389_v12 }
   0xa   :  { %4661 = vmatmul.mubr.msk.bf16.vlgmr.msra.gmra.mrb[0].mxu1 %vm89_vm1, %v5117_v8  ;;  %4980 = vmatprep.subr.bf16.mxu0 %v5286_v1 }
   0xb   :  { %4669 = vmatpush3.bf16.msra.mxu1 %v5118_v9  ;;  %4664 = vmatprep.mubr.msk.bf16.mxu1 %vm89_vm1, %v5119_v13 }
   0xc   :  { %4689 = vmatmul.mubr.f32.vlgmr.msra.gmra.mrb[0].mxu0 %v6760_v2  ;;  %4670 = vmatprep.subr.bf16.mxu1 %v5121_v14 }
   0xd   :  { %4982 = vmatpush3.bf16.msra.mxu0 %v5369_v6  ;;  %4710 = vmatprep.mubr.msk.f32.mxu0 %vm5287_vm0, %v6760_v2 }
   0xe   :  { %4983 = vmatprep.subr.bf16.mxu0 %v5286_v1 }
   0xf   :  { %4671 = vmatpush3.bf16.msra.mxu1 %v5121_v14 }
  0x10   :  { %4974 = vmatprep.subr.bf16.mxu1 %v5286_v1 }
  0x11   :  { %4985 = vmatpush3.bf16.msra.mxu0 %v5389_v12 }
  0x12   :  { %4665 = vmatmul.mubr.msk.bf16.gmra.mrb[4].mxu1 %vm89_vm1, %v5120_v15  ;;  %4992 = vmatprep.subr.bf16.mxu0 %v5286_v1 }
  0x13   :  { %4672 = vmatprep.mubr.msk.bf16.mxu1 %vm89_vm1, %v5116_v7 }
  0x1a   :  { %4673 = vmatmul.mubr.msk.bf16.vlgmr.msra.gmra.mrb[8].mxu1 %vm89_vm1, %v5117_v8 }
  0x1b   :  { %4976 = vmatpush3.bf16.msra.mxu1 %v5420_v18  ;;  %4676 = vmatprep.mubr.msk.bf16.mxu1 %vm89_vm1, %v5119_v13 }
  0x1c   :  { %4977 = vmatprep.subr.bf16.mxu1 %v5286_v1 }
  0x1f   :  { %4979 = vmatpush3.bf16.msra.mxu1 %v5431_v21 }
  0x20   :  { %4986 = vmatprep.subr.bf16.mxu1 %v5286_v1 }
  0x22   :  { %4677 = vmatmul.mubr.msk.bf16.gmra.mrb[12].mxu1 %vm89_vm1, %v5120_v15 }
  0x23   :  { %4699 = vmatprep.mubr.msk.f32.mxu1 %vm5287_vm0, %v6760_v2 }
  0x2a   :  { %4700 = vmatmul.mubr.f32.vlgmr.msra.gmra.mrb[16].mxu1 %v6760_v2 }
  0x2b   :  { %4988 = vmatpush3.bf16.msra.mxu1 %v5420_v18  ;;  %4721 = vmatprep.mubr.msk.f32.mxu1 %vm5287_vm0, %v6760_v2 }
  0x2c   :  { %4989 = vmatprep.subr.bf16.mxu1 %v5286_v1 }
  0x2f   :  { %4991 = vmatpush3.bf16.msra.mxu1 %v5431_v21 }
  0x30   :  { %4998 = vmatprep.subr.bf16.mxu1 %v5286_v1 }
  0xdd   :  { %v4662_v23 = vpop.f32.mrb[0].mxu1 }
  0xde   :  { %v5449_v24 = vadd.f32 %v4662_v23, %v4443_v22  ;;  %v136_v25 = vpop.f32.mrb[1].mxu1 }
  0xdf   :  { %v137_v26 = vadd.f32 %v4443_v22, %v136_v25  ;;  %v4663_v27 = vpop.f32.mrb[2].mxu1  ;;  %v332_v28 = vpop.f32.mrb[0].mxu0 }
  0xe0   :  { %v5451_v29 = vadd.f32 %v4663_v27, %v4443_v22  ;;  %v139_v30 = vpop.f32.mrb[3].mxu1  ;;  %v4690_v31 = vpop.f32.mrb[1].mxu0 }
  0xe1   :  { %v5453_v32 = vadd.f32 %v4443_v22, %v139_v30  ;;  %v336_v33 = vadd.f32 %v332_v28, %v137_v26 }
  0xe3   :  { %v4461_v3 = vmul.f32 -1.442695, %v336_v33 }
  0xe5   :  { %v4666_v34 = vpop.f32.mrb[4].mxu1 }
  0xe6   :  { %v5455_v35 = vadd.f32 %v4666_v34, %v4443_v22  ;;  %v152_v36 = vpop.f32.mrb[5].mxu1 }
  0xe7   :  { %v5457_v37 = vadd.f32 %v4443_v22, %v152_v36  ;;  %v4667_v38 = vpop.f32.mrb[6].mxu1 }
  0xe8   :  { %v5459_v39 = vadd.f32 %v4667_v38, %v4443_v22  ;;  %v155_v40 = vpop.f32.mrb[7].mxu1 }
  0xe9   :  { %v5461_v41 = vadd.f32 %v4443_v22, %v155_v40 }
  0xed   :  { %v4674_v43 = vpop.f32.mrb[8].mxu1 }
  0xee   :  { %v5466_v44 = vadd.f32 %v4674_v43, %v4454_v42  ;;  %v224_v45 = vpop.f32.mrb[9].mxu1 }
  0xef   :  { %v5468_v46 = vadd.f32 %v4454_v42, %v224_v45  ;;  %v4675_v47 = vpop.f32.mrb[10].mxu1 }
  0xf0   :  { %v5470_v48 = vadd.f32 %v4675_v47, %v4454_v42  ;;  %v227_v49 = vpop.f32.mrb[11].mxu1 }
  0xf1   :  { %v5472_v50 = vadd.f32 %v4454_v42, %v227_v49 }
  0xf5   :  { %v4678_v51 = vpop.f32.mrb[12].mxu1 }
  0xf6   :  { %v5474_v52 = vadd.f32 %v4678_v51, %v4454_v42  ;;  %v240_v53 = vpop.f32.mrb[13].mxu1 }
  0xf7   :  { %v5476_v54 = vadd.f32 %v4454_v42, %v240_v53  ;;  %v4679_v55 = vpop.f32.mrb[14].mxu1 }
  0xf8   :  { %v243_v56 = vpop.f32.mrb[15].mxu1  ;;  %v252_v58 = vadd.f32 %v4679_v55, %v4454_v42 }
  0xf9   :  { %v5478_v57 = vadd.f32 %v4454_v42, %v243_v56 }
  0xfd   :  { %v403_v59 = vpop.f32.mrb[16].mxu1 }
  0xfe   :  { %v407_v60 = vadd.f32 %v403_v59, %v252_v58  ;;  %v4701_v61 = vpop.f32.mrb[17].mxu1 }
 0x100   :  { %5126 = vtanh.f32 %v407_v60  ;;  %v4462_v0 = vmul.f32 -1.442695, %v407_v60 }
 0x101   :  { %5128 = vtanh.f32 %v336_v33 }
 0x102   :  { %5130 = vpow2.f32 %v4462_v0 }
 0x103   :  { %5132 = vpow2.f32 %v4461_v3 }
 0x10a   :  { %v5127_v62 = vpop.eup %5126 }
 0x10b   :  { %441 = vrot.lane.b32.xlu0 %v5127_v62, %s5289_s7  ;;  %v5129_v63 = vpop.eup %5128 }
 0x10c   :  { %v5131_v4 = vpop.eup %5130 }
 0x10d   :  { %v418_v5 = vadd.f32 1.0, %v5131_v4  ;;  %v5133_v7 = vpop.eup %5132 }
 0x10e   :  { %v411_v8 = vadd.f32 1.0, %v5133_v7 }
 0x10f   :  { %424 = vrot.lane.b32.xlu0 %v5129_v63, %s5289_s7  ;;  %5134 = vrcp.f32 %v418_v5 }
 0x110   :  { %5136 = vrcp.f32 %v411_v8 }
 0x119   :  { %v5135_v9 = vpop.eup %5134 }
 0x11a   :  { %v5137_v13 = vpop.eup %5136  ;;  %v439_v16 = vmul.f32 0.0, %v5135_v9 }
 0x11b   :  { %v422_v20 = vmul.f32 0.0, %v5137_v13 }
 0x17d   :  { %v442_v10 = vpop.permute.xlu0 %441 }
 0x17e   :  { %v444_v11 = vmul.f32 %v5135_v9, %v442_v10 }
 0x180   :  { %446 = vrot.lane.b32.xlu1 %v444_v11, %s5289_s7  ;;  %v5291_v11 = vmov 1966171168  }
 0x181   :  { %v425_v14 = vpop.permute.xlu0 %424 }
 0x182   :  { %v427_v15 = vmul.f32 %v5137_v13, %v425_v14  ;;  %v1860_v14 = vlaneseq }
 0x184   :  { %429 = vrot.lane.b32.xlu1 %v427_v15, %s5289_s7 }
 0x1f2   :  { %v447_v17 = vpop.permute.xlu1 %446 }
 0x1f3   :  { %v449_v19 = vadd.f32 %v447_v17, %v439_v16  ;;  %v1861_v16 = vshrl.u32 %v1860_v14, 7 }
 0x1f5   :  { %5138 = vtanh.f32 %v449_v19 }
 0x1f6   :  { %v430_v22 = vpop.permute.xlu1 %429 }
 0x1f7   :  { %v432_v23 = vadd.f32 %v430_v22, %v422_v20 }
 0x1f9   :  { %5140 = vtanh.f32 %v432_v23 }
 0x1ff   :  { %v5139_v25 = vpop.eup %5138 }
 0x200   :  { %452 = vrot.lane.b32.xlu0 %v5139_v25, %s5289_s7 }
 0x203   :  { %v5141_v26 = vpop.eup %5140 }
 0x204   :  { %435 = vrot.lane.b32.xlu1 %v5141_v26, %s5289_s7 }
 0x272   :  { %v453_v27 = vpop.permute.xlu0 %452 }
 0x273   :  { %v5486_v28 = vmul.f32 %v5135_v9, %v453_v27 }
 0x275   :  { %533 = vrot.lane.b32.xlu0 %v5486_v28, %s5290_s2 }
 0x276   :  { %v436_v30 = vpop.permute.xlu1 %435 }
 0x277   :  { %v5490_v31 = vmul.f32 %v5137_v13, %v436_v30  ;;  %v1858_v13 = vunpack.c.l.s4 %v5291_v11 }
 0x279   :  { %457 = vrot.lane.b32.xlu1 %v5490_v31, %s5290_s2  ;;  %v1859_v15 = vunpack.c.0.s8 %v1858_v13  ;;  %v1856_v20 = vcombine.high %v5490_v31, %v5490_v31 }
 0x2e7   :  { %v534_v33 = vpop.permute.xlu0 %533 }
 0x2e8   :  { %4722 = vmatmul.mubr.msk.f32.vlgmr.msra.gmra.mrb[18].mxu1 %vm89_vm1, %v534_v33 }
 0x2e9   :  { %5000 = vmatpush3.bf16.msra.mxu1 %v5420_v18  ;;  %4743 = vmatprep.mubr.msk.f32.mxu1 %vm5287_vm0, %v6760_v2 }
 0x2ea   :  { %5001 = vmatprep.subr.bf16.mxu1 %v5286_v1 }
 0x2eb   :  { %v458_v34 = vpop.permute.xlu1 %457 }
 0x2ec   :  { %4711 = vmatmul.mubr.msk.f32.vlgmr.msra.gmra.mrb[2].mxu0 %vm89_vm1, %v458_v34 }
 0x2ed   :  { %4994 = vmatpush3.bf16.msra.mxu0 %v5369_v6  ;;  %5003 = vmatpush3.bf16.msra.mxu1 %v5431_v21 }
 0x2ee   :  { %4995 = vmatprep.subr.bf16.mxu0 %v5286_v1  ;;  %4732 = vmatprep.mubr.msk.f32.mxu0 %vm5287_vm0, %v6760_v2 }
 0x2ef   :  { %5010 = vmatprep.subr.bf16.mxu1 %v5286_v1 }
 0x2f1   :  { %4997 = vmatpush3.bf16.msra.mxu0 %v5389_v12 }
 0x2f2   :  { %5004 = vmatprep.subr.bf16.mxu0 %v5286_v1 }
 0x3bb   :  { %v603_v36 = vpop.f32.mrb[18].mxu1 }
 0x3bc   :  { %v607_v38 = vadd.f32 %v603_v36, %v5474_v52  ;;  %v4723_v40 = vpop.f32.mrb[19].mxu1 }
 0x3be   :  { %5142 = vtanh.f32 %v607_v38  ;;  %v4466_v51 = vmul.f32 -1.442695, %v607_v38 }
 0x3bf   :  { %v527_v42 = vpop.f32.mrb[2].mxu0 }
 0x3c0   :  { %v531_v43 = vadd.f32 %v527_v42, %v5453_v32  ;;  %v4712_v45 = vpop.f32.mrb[3].mxu0 }
 0x3c2   :  { %5144 = vtanh.f32 %v531_v43  ;;  %v4465_v53 = vmul.f32 -1.442695, %v531_v43  ;;  %v5538_v43 = vsub.s32 0, %v1861_v16 }
 0x3c3   :  { %5146 = vpow2.f32 %v4466_v51 }
 0x3c4   :  { %5148 = vpow2.f32 %v4465_v53 }
 0x3c8   :  { %v5143_v47 = vpop.eup %5142 }
 0x3c9   :  { %641 = vrot.lane.b32.xlu0 %v5143_v47, %s5289_s7 }
 0x3cc   :  { %v5145_v49 = vpop.eup %5144 }
 0x3cd   :  { %624 = vrot.lane.b32.xlu1 %v5145_v49, %s5289_s7  ;;  %v5147_v55 = vpop.eup %5146 }
 0x3ce   :  { %v618_v56 = vadd.f32 1.0, %v5147_v55  ;;  %v5149_v52 = vpop.eup %5148 }
 0x3cf   :  { %v611_v58 = vadd.f32 1.0, %v5149_v52 }
 0x3d0   :  { %5150 = vrcp.f32 %v618_v56 }
 0x3d1   :  { %5152 = vrcp.f32 %v611_v58 }
 0x3da   :  { %v5151_v59 = vpop.eup %5150 }
 0x3db   :  { %v5153_v61 = vpop.eup %5152  ;;  %v639_v0 = vmul.f32 %v5151_v59, %v449_v19  ;;  %v5522_v19 = vsub.s32 %v1859_v15, %v1861_v16 }
 0x3dc   :  { %v622_v5 = vmul.f32 %v5153_v61, %v432_v23 }
 0x3dd   :  { %v1863_v23 = vrot.slane %v5490_v31, %v5522_v19  ;;  %v1870_v26 = vrot.slane %v1856_v20, %v5522_v19 }
 0x3df   :  { %v1871_v30 = vcombine.high %v1863_v23, %v1863_v23  ;;  %v1879_v33 = vrot.slane %v1863_v23, %v5522_v19  ;;  %v1872_v38 = vcombine.high %v1870_v26, %v1870_v26  ;;  %v1886_v40 = vrot.slane %v1870_v26, %v5522_v19 }
 0x3e1   :  { %v1893_v45 = vrot.slane %v1871_v30, %v5522_v19  ;;  %v1901_v47 = vcombine.high %v1879_v33, %v1879_v33  ;;  %v1900_v56 = vrot.slane %v1872_v38, %v5522_v19  ;;  %v1902_v52 = vcombine.high %v1886_v40, %v1886_v40 }
 0x3e3   :  { %v1904_v13 = vcombine.high %v1900_v56, %v1900_v56 }
 0x43b   :  { %v642_v32 = vpop.permute.xlu0 %641 }
 0x43c   :  { %v644_v60 = vmul.f32 %v5151_v59, %v642_v32 }
 0x43e   :  { %646 = vrot.lane.b32.xlu0 %v644_v60, %s5289_s7 }
 0x43f   :  { %v625_v62 = vpop.permute.xlu1 %624 }
 0x440   :  { %v627_v63 = vmul.f32 %v5153_v61, %v625_v62 }
 0x442   :  { %629 = vrot.lane.b32.xlu1 %v627_v63, %s5289_s7  ;;  %v1903_v63 = vcombine.high %v1893_v45, %v1893_v45 }
 0x4b0   :  { %v647_v3 = vpop.permute.xlu0 %646 }
 0x4b1   :  { %v5514_v4 = vadd.f32 %v647_v3, %v639_v0 }
 0x4b3   :  { %5154 = vtanh.f32 %v5514_v4 }
 0x4b4   :  { %v630_v7 = vpop.permute.xlu1 %629 }
 0x4b5   :  { %v5517_v8 = vadd.f32 %v630_v7, %v622_v5 }
 0x4b7   :  { %5156 = vtanh.f32 %v5517_v8 }
 0x4bd   :  { %v5155_v9 = vpop.eup %5154 }
 0x4be   :  { %652 = vrot.lane.b32.xlu0 %v5155_v9, %s5289_s7 }
 0x4c1   :  { %v5157_v10 = vpop.eup %5156 }
 0x4c2   :  { %635 = vrot.lane.b32.xlu1 %v5157_v10, %s5289_s7 }
 0x530   :  { %v653_v17 = vpop.permute.xlu0 %652 }
 0x531   :  { %v5526_v22 = vmul.f32 %v5151_v59, %v653_v17 }
 0x533   :  { %733 = vrot.lane.b32.xlu0 %v5526_v22, %s5290_s2 }
 0x534   :  { %v636_v25 = vpop.permute.xlu1 %635 }
 0x535   :  { %v638_v27 = vmul.f32 %v5153_v61, %v636_v25 }
 0x537   :  { %657 = vrot.lane.b32.xlu1 %v638_v27, %s5290_s2  ;;  %v1913_v34 = vcombine.high %v638_v27, %v638_v27  ;;  %v1920_v36 = vrot.slane %v638_v27, %v5522_v19 }
 0x539   :  { %v1927_v31 = vrot.slane %v1913_v34, %v5522_v19  ;;  %v1928_v42 = vcombine.high %v1920_v36, %v1920_v36  ;;  %v1936_v49 = vrot.slane %v1920_v36, %v5522_v19 }
 0x53b   :  { %v1929_v51 = vcombine.high %v1927_v31, %v1927_v31  ;;  %v1943_v53 = vrot.slane %v1927_v31, %v5522_v19  ;;  %v1950_v55 = vrot.slane %v1928_v42, %v5522_v19  ;;  %v1958_v58 = vcombine.high %v1936_v49, %v1936_v49 }
 0x53c   :  { %v2260_v59 = vrot.slane %v1936_v49, %v5538_v43 }
 0x53d   :  { %v1957_v32 = vrot.slane %v1929_v51, %v5522_v19  ;;  %v1959_v60 = vcombine.high %v1943_v53, %v1943_v53  ;;  %v1960_v61 = vcombine.high %v1950_v55, %v1950_v55  ;;  %v2264_v62 = vrot.slane %v1950_v55, %v5538_v43 }
 0x53e   :  { %v2268_v0 = vrot.slane %v1958_v58, %v5538_v43  ;;  %v2276_v3 = vrot.slane %v1943_v53, %v5538_v43  ;;  %v5551_v5 = vsel %vm2537_vm2, %v1879_v33, %v2260_v59 }
 0x53f   :  { %v1961_v7 = vcombine.high %v1957_v32, %v1957_v32  ;;  %v2272_v9 = vrot.slane %v1960_v61, %v5538_v43  ;;  %v2280_v10 = vrot.slane %v1957_v32, %v5538_v43  ;;  %v2284_v11 = vrot.slane %v1959_v60, %v5538_v43 }
 0x540   :  { %v5557_v14 = vsel %vm2537_vm2, %v1893_v45, %v2264_v62  ;;  %v5560_v15 = vsel %vm2537_vm2, %v1901_v47, %v2268_v0  ;;  %v5563_v16 = vsel %vm2537_vm2, %v1886_v40, %v2276_v3 }
 0x541   :  { %v2288_v17 = vrot.slane %v1961_v7, %v5538_v43  ;;  %v5567_v20 = vsel %vm2537_vm2, %v1903_v63, %v2272_v9  ;;  %v5570_v23 = vsel %vm2537_vm2, %v1900_v56, %v2280_v10  ;;  %v5573_v25 = vsel %vm2537_vm2, %v1902_v52, %v2284_v11 }
 0x543   :  { %v5576_v26 = vsel %vm2537_vm2, %v1904_v13, %v2288_v17 }
 0x5a5   :  { %v734_v27 = vpop.permute.xlu0 %733 }
 0x5a6   :  { %4744 = vmatmul.mubr.msk.f32.vlgmr.msra.gmra.mrb[20].mxu1 %vm89_vm1, %v734_v27 }
 0x5a7   :  { %5012 = vmatpush3.bf16.msra.mxu1 %v5420_v18  ;;  %4765 = vmatprep.mubr.msk.f32.mxu1 %vm5287_vm0, %v6760_v2 }
 0x5a8   :  { %5013 = vmatprep.subr.bf16.mxu1 %v5286_v1 }
 0x5a9   :  { %v658_v30 = vpop.permute.xlu1 %657 }
 0x5aa   :  { %4733 = vmatmul.mubr.msk.f32.vlgmr.msra.gmra.mrb[4].mxu0 %vm89_vm1, %v658_v30 }
 0x5ab   :  { %5006 = vmatpush3.bf16.msra.mxu0 %v5369_v6  ;;  %5015 = vmatpush3.bf16.msra.mxu1 %v5431_v21 }
 0x5ac   :  { %5007 = vmatprep.subr.bf16.mxu0 %v5286_v1  ;;  %4754 = vmatprep.mubr.msk.f32.mxu0 %vm5287_vm0, %v6760_v2 }
 0x5ad   :  { %5022 = vmatprep.subr.bf16.mxu1 %v5286_v1 }
 0x5af   :  { %5009 = vmatpush3.bf16.msra.mxu0 %v5389_v12 }
 0x5b0   :  { %5016 = vmatprep.subr.bf16.mxu0 %v5286_v1 }
 0x679   :  { %v803_v33 = vpop.f32.mrb[20].mxu1 }
 0x67a   :  { %v807_v34 = vadd.f32 %v803_v33, %v5478_v57  ;;  %v4745_v36 = vpop.f32.mrb[21].mxu1 }
 0x67c   :  { %5158 = vtanh.f32 %v807_v34  ;;  %v4470_v47 = vmul.f32 -1.442695, %v807_v34 }
 0x67d   :  { %v727_v38 = vpop.f32.mrb[4].mxu0 }
 0x67e   :  { %v731_v40 = vadd.f32 %v727_v38, %v5449_v24  ;;  %v4734_v31 = vpop.f32.mrb[5].mxu0 }
 0x680   :  { %5160 = vtanh.f32 %v731_v40  ;;  %v4469_v49 = vmul.f32 -1.442695, %v731_v40 }
 0x681   :  { %5162 = vpow2.f32 %v4470_v47 }
 0x682   :  { %5164 = vpow2.f32 %v4469_v49 }
 0x686   :  { %v5159_v42 = vpop.eup %5158 }
 0x687   :  { %841 = vrot.lane.b32.xlu0 %v5159_v42, %s5289_s7 }
 0x68a   :  { %v5161_v45 = vpop.eup %5160 }
 0x68b   :  { %824 = vrot.lane.b32.xlu1 %v5161_v45, %s5289_s7  ;;  %v5163_v51 = vpop.eup %5162 }
 0x68c   :  { %v818_v53 = vadd.f32 1.0, %v5163_v51  ;;  %v5165_v57 = vpop.eup %5164 }
 0x68d   :  { %v811_v55 = vadd.f32 1.0, %v5165_v57 }
 0x68e   :  { %5166 = vrcp.f32 %v818_v53 }
 0x68f   :  { %5168 = vrcp.f32 %v811_v55 }
 0x698   :  { %v5167_v56 = vpop.eup %5166 }
 0x699   :  { %v5169_v58 = vpop.eup %5168  ;;  %v839_v60 = vmul.f32 %v5167_v56, %v5514_v4 }
 0x69a   :  { %v822_v63 = vmul.f32 %v5169_v58, %v5517_v8 }
 0x6f9   :  { %v842_v24 = vpop.permute.xlu0 %841 }
 0x6fa   :  { %v844_v52 = vmul.f32 %v5167_v56, %v842_v24 }
 0x6fc   :  { %846 = vrot.lane.b32.xlu0 %v844_v52, %s5289_s7 }
 0x6fd   :  { %v825_v59 = vpop.permute.xlu1 %824 }
 0x6fe   :  { %v827_v32 = vmul.f32 %v5169_v58, %v825_v59 }
 0x700   :  { %829 = vrot.lane.b32.xlu1 %v827_v32, %s5289_s7 }
 0x76e   :  { %v847_v61 = vpop.permute.xlu0 %846 }
 0x76f   :  { %v5599_v62 = vadd.f32 %v847_v61, %v839_v60 }
 0x771   :  { %5170 = vtanh.f32 %v5599_v62 }
 0x772   :  { %v830_v0 = vpop.permute.xlu1 %829 }
 0x773   :  { %v5603_v3 = vadd.f32 %v830_v0, %v822_v63 }
 0x775   :  { %5172 = vtanh.f32 %v5603_v3 }
 0x77b   :  { %v5171_v7 = vpop.eup %5170 }
 0x77c   :  { %852 = vrot.lane.b32.xlu0 %v5171_v7, %s5289_s7 }
 0x77f   :  { %v5173_v9 = vpop.eup %5172 }
 0x780   :  { %835 = vrot.lane.b32.xlu1 %v5173_v9, %s5289_s7 }
 0x7ee   :  { %v853_v10 = vpop.permute.xlu0 %852 }
 0x7ef   :  { %v5608_v4 = vmul.f32 %v5167_v56, %v853_v10 }
 0x7f1   :  { %933 = vrot.lane.b32.xlu0 %v5608_v4, %s5290_s2 }
 0x7f2   :  { %v836_v11 = vpop.permute.xlu1 %835 }
 0x7f3   :  { %v838_v13 = vmul.f32 %v5169_v58, %v836_v11 }
 0x7f5   :  { %857 = vrot.lane.b32.xlu1 %v838_v13, %s5290_s2  ;;  %v1962_v8 = vcombine.high %v838_v13, %v838_v13  ;;  %v1969_v17 = vrot.slane %v838_v13, %v5522_v19 }
 0x7f7   :  { %v1976_v27 = vrot.slane %v1962_v8, %v5522_v19  ;;  %v1977_v30 = vcombine.high %v1969_v17, %v1969_v17  ;;  %v1985_v34 = vrot.slane %v1969_v17, %v5522_v19 }
 0x7f9   :  { %v1978_v33 = vcombine.high %v1976_v27, %v1976_v27  ;;  %v1992_v36 = vrot.slane %v1976_v27, %v5522_v19  ;;  %v1999_v38 = vrot.slane %v1977_v30, %v5522_v19  ;;  %v2007_v31 = vcombine.high %v1985_v34, %v1985_v34 }
 0x7fa   :  { %v2300_v47 = vrot.slane %v1985_v34, %v5538_v43 }
 0x7fb   :  { %v2006_v40 = vrot.slane %v1978_v33, %v5522_v19  ;;  %v2008_v42 = vcombine.high %v1992_v36, %v1992_v36  ;;  %v2009_v45 = vcombine.high %v1999_v38, %v1999_v38  ;;  %v2304_v49 = vrot.slane %v1999_v38, %v5538_v43 }
 0x7fc   :  { %v2316_v51 = vrot.slane %v1992_v36, %v5538_v43  ;;  %v2308_v57 = vrot.slane %v2007_v31, %v5538_v43  ;;  %v5628_v52 = vsel %vm2546_vm3, %v5551_v5, %v2300_v47 }
 0x7fd   :  { %v2010_v53 = vcombine.high %v2006_v40, %v2006_v40  ;;  %v2312_v55 = vrot.slane %v2009_v45, %v5538_v43  ;;  %v2320_v56 = vrot.slane %v2006_v40, %v5538_v43  ;;  %v2324_v24 = vrot.slane %v2008_v42, %v5538_v43 }
 0x7fe   :  { %v5632_v58 = vsel %vm2546_vm3, %v5557_v14, %v2304_v49  ;;  %v5636_v59 = vsel %vm2546_vm3, %v5563_v16, %v2316_v51  ;;  %v5641_v60 = vsel %vm2546_vm3, %v5560_v15, %v2308_v57 }
 0x7ff   :  { %v2328_v32 = vrot.slane %v2010_v53, %v5538_v43  ;;  %v5645_v61 = vsel %vm2546_vm3, %v5567_v20, %v2312_v55  ;;  %v5649_v5 = vsel %vm2546_vm3, %v5570_v23, %v2320_v56  ;;  %v5653_v14 = vsel %vm2546_vm3, %v5573_v25, %v2324_v24 }
 0x801   :  { %v5657_v16 = vsel %vm2546_vm3, %v5576_v26, %v2328_v32 }
 0x863   :  { %v934_v63 = vpop.permute.xlu0 %933 }
 0x864   :  { %4766 = vmatmul.mubr.msk.f32.vlgmr.msra.gmra.mrb[22].mxu1 %vm89_vm1, %v934_v63 }
 0x865   :  { %5024 = vmatpush3.bf16.msra.mxu1 %v5420_v18  ;;  %4787 = vmatprep.mubr.msk.f32.mxu1 %vm5287_vm0, %v6760_v2 }
 0x866   :  { %5025 = vmatprep.subr.bf16.mxu1 %v5286_v1 }
 0x867   :  { %v858_v15 = vpop.permute.xlu1 %857 }
 0x868   :  { %4755 = vmatmul.mubr.msk.f32.vlgmr.msra.gmra.mrb[6].mxu0 %vm89_vm1, %v858_v15 }
 0x869   :  { %5018 = vmatpush3.bf16.msra.mxu0 %v5369_v6  ;;  %5027 = vmatpush3.bf16.msra.mxu1 %v5431_v21 }
 0x86a   :  { %5019 = vmatprep.subr.bf16.mxu0 %v5286_v1  ;;  %4776 = vmatprep.mubr.msk.f32.mxu0 %vm5287_vm0, %v6760_v2 }
 0x86b   :  { %5034 = vmatprep.subr.bf16.mxu1 %v5286_v1 }
 0x86d   :  { %5021 = vmatpush3.bf16.msra.mxu0 %v5389_v12 }
 0x86e   :  { %5028 = vmatprep.subr.bf16.mxu0 %v5286_v1 }
 0x937   :  { %v1003_v20 = vpop.f32.mrb[22].mxu1 }
 0x938   :  { %v1007_v23 = vadd.f32 %v1003_v20, %v5476_v54  ;;  %v4767_v25 = vpop.f32.mrb[23].mxu1 }
 0x93a   :  { %5174 = vtanh.f32 %v1007_v23  ;;  %v4474_v11 = vmul.f32 -1.442695, %v1007_v23 }
 0x93b   :  { %v927_v26 = vpop.f32.mrb[6].mxu0 }
 0x93c   :  { %v931_v0 = vadd.f32 %v927_v26, %v5451_v29  ;;  %v4756_v7 = vpop.f32.mrb[7].mxu0 }
 0x93e   :  { %5176 = vtanh.f32 %v931_v0  ;;  %v4473_v13 = vmul.f32 -1.442695, %v931_v0 }
 0x93f   :  { %5178 = vpow2.f32 %v4474_v11 }
 0x940   :  { %5180 = vpow2.f32 %v4473_v13 }
 0x944   :  { %v5175_v9 = vpop.eup %5174 }
 0x945   :  { %1041 = vrot.lane.b32.xlu0 %v5175_v9, %s5289_s7 }
 0x948   :  { %v5177_v10 = vpop.eup %5176 }
 0x949   :  { %1024 = vrot.lane.b32.xlu1 %v5177_v10, %s5289_s7  ;;  %v5179_v8 = vpop.eup %5178 }
 0x94a   :  { %v1018_v17 = vadd.f32 1.0, %v5179_v8  ;;  %v5181_v54 = vpop.eup %5180 }
 0x94b   :  { %v1011_v27 = vadd.f32 1.0, %v5181_v54 }
 0x94c   :  { %5182 = vrcp.f32 %v1018_v17 }
 0x94d   :  { %5184 = vrcp.f32 %v1011_v27 }
 0x956   :  { %v5183_v30 = vpop.eup %5182 }
 0x957   :  { %v5185_v34 = vpop.eup %5184  ;;  %v1039_v40 = vmul.f32 %v5183_v30, %v5599_v62 }
 0x958   :  { %v1022_v45 = vmul.f32 %v5185_v34, %v5603_v3 }
 0x9b7   :  { %v1042_v29 = vpop.permute.xlu0 %1041 }
 0x9b8   :  { %v1044_v33 = vmul.f32 %v5183_v30, %v1042_v29 }
 0x9ba   :  { %1046 = vrot.lane.b32.xlu0 %v1044_v33, %s5289_s7 }
 0x9bb   :  { %v1025_v36 = vpop.permute.xlu1 %1024 }
 0x9bc   :  { %v1027_v38 = vmul.f32 %v5185_v34, %v1025_v36 }
 0x9be   :  { %1029 = vrot.lane.b32.xlu1 %v1027_v38, %s5289_s7 }
 0xa2c   :  { %v1047_v31 = vpop.permute.xlu0 %1046 }
 0xa2d   :  { %v5680_v42 = vadd.f32 %v1047_v31, %v1039_v40 }
 0xa2f   :  { %5186 = vtanh.f32 %v5680_v42 }
 0xa30   :  { %v1030_v47 = vpop.permute.xlu1 %1029 }
 0xa31   :  { %v5684_v49 = vadd.f32 %v1030_v47, %v1022_v45 }
 0xa33   :  { %5188 = vtanh.f32 %v5684_v49 }
 0xa39   :  { %v5187_v51 = vpop.eup %5186 }
 0xa3a   :  { %1052 = vrot.lane.b32.xlu0 %v5187_v51, %s5289_s7 }
 0xa3d   :  { %v5189_v53 = vpop.eup %5188 }
 0xa3e   :  { %1035 = vrot.lane.b32.xlu1 %v5189_v53, %s5289_s7 }
 0xaac   :  { %v1053_v57 = vpop.permute.xlu0 %1052 }
 0xaad   :  { %v5689_v62 = vmul.f32 %v5183_v30, %v1053_v57 }
 0xaaf   :  { %1133 = vrot.lane.b32.xlu0 %v5689_v62, %s5290_s2 }
 0xab0   :  { %v1036_v55 = vpop.permute.xlu1 %1035 }
 0xab1   :  { %v1038_v56 = vmul.f32 %v5185_v34, %v1036_v55 }
 0xab3   :  { %1057 = vrot.lane.b32.xlu1 %v1038_v56, %s5290_s2  ;;  %v2011_v3 = vcombine.high %v1038_v56, %v1038_v56  ;;  %v2018_v24 = vrot.slane %v1038_v56, %v5522_v19 }
 0xab5   :  { %v2025_v32 = vrot.slane %v2011_v3, %v5522_v19  ;;  %v2026_v63 = vcombine.high %v2018_v24, %v2018_v24  ;;  %v2034_v20 = vrot.slane %v2018_v24, %v5522_v19 }
 0xab7   :  { %v2027_v15 = vcombine.high %v2025_v32, %v2025_v32  ;;  %v2041_v23 = vrot.slane %v2025_v32, %v5522_v19  ;;  %v2048_v25 = vrot.slane %v2026_v63, %v5522_v19  ;;  %v2056_v0 = vcombine.high %v2034_v20, %v2034_v20 }
 0xab8   :  { %v2340_v10 = vrot.slane %v2034_v20, %v5538_v43 }
 0xab9   :  { %v2055_v26 = vrot.slane %v2027_v15, %v5522_v19  ;;  %v2057_v7 = vcombine.high %v2041_v23, %v2041_v23  ;;  %v2058_v9 = vcombine.high %v2048_v25, %v2048_v25  ;;  %v2344_v11 = vrot.slane %v2048_v25, %v5538_v43 }
 0xaba   :  { %v2356_v13 = vrot.slane %v2041_v23, %v5538_v43  ;;  %v2348_v17 = vrot.slane %v2056_v0, %v5538_v43  ;;  %v5709_v29 = vsel %vm2555_vm4, %v5628_v52, %v2340_v10 }
 0xabb   :  { %v2059_v8 = vcombine.high %v2055_v26, %v2055_v26  ;;  %v2352_v54 = vrot.slane %v2058_v9, %v5538_v43  ;;  %v2360_v27 = vrot.slane %v2055_v26, %v5538_v43  ;;  %v2364_v30 = vrot.slane %v2057_v7, %v5538_v43 }
 0xabc   :  { %v5713_v33 = vsel %vm2555_vm4, %v5632_v58, %v2344_v11  ;;  %v5717_v34 = vsel %vm2555_vm4, %v5636_v59, %v2356_v13  ;;  %v5722_v38 = vsel %vm2555_vm4, %v5641_v60, %v2348_v17 }
 0xabd   :  { %v2368_v36 = vrot.slane %v2059_v8, %v5538_v43  ;;  %v5726_v40 = vsel %vm2555_vm4, %v5645_v61, %v2352_v54  ;;  %v5730_v52 = vsel %vm2555_vm4, %v5649_v5, %v2360_v27  ;;  %v5734_v58 = vsel %vm2555_vm4, %v5653_v14, %v2364_v30 }
 0xabf   :  { %v5738_v59 = vsel %vm2555_vm4, %v5657_v16, %v2368_v36 }
 0xb21   :  { %v1134_v31 = vpop.permute.xlu0 %1133 }
 0xb22   :  { %4788 = vmatmul.mubr.msk.f32.vlgmr.msra.gmra.mrb[24].mxu1 %vm89_vm1, %v1134_v31 }
 0xb23   :  { %5036 = vmatpush3.bf16.msra.mxu1 %v5420_v18  ;;  %4809 = vmatprep.mubr.msk.f32.mxu1 %vm5287_vm0, %v6760_v2 }
 0xb24   :  { %5037 = vmatprep.subr.bf16.mxu1 %v5286_v1 }
 0xb25   :  { %v1058_v60 = vpop.permute.xlu1 %1057 }
 0xb26   :  { %4777 = vmatmul.mubr.msk.f32.vlgmr.msra.gmra.mrb[8].mxu0 %vm89_vm1, %v1058_v60 }
 0xb27   :  { %5030 = vmatpush3.bf16.msra.mxu0 %v5369_v6  ;;  %5039 = vmatpush3.bf16.msra.mxu1 %v5431_v21 }
 0xb28   :  { %5031 = vmatprep.subr.bf16.mxu0 %v5286_v1  ;;  %4798 = vmatprep.mubr.msk.f32.mxu0 %vm5287_vm0, %v6760_v2 }
 0xb29   :  { %5046 = vmatprep.subr.bf16.mxu1 %v5286_v1 }
 0xb2b   :  { %5033 = vmatpush3.bf16.msra.mxu0 %v5389_v12 }
 0xb2c   :  { %5040 = vmatprep.subr.bf16.mxu0 %v5286_v1 }
 0xbf5   :  { %v1203_v61 = vpop.f32.mrb[24].mxu1 }
 0xbf6   :  { %v1207_v5 = vadd.f32 %v1203_v61, %v5470_v48  ;;  %v4789_v14 = vpop.f32.mrb[25].mxu1 }
 0xbf8   :  { %5190 = vtanh.f32 %v1207_v5  ;;  %v4478_v57 = vmul.f32 -1.442695, %v1207_v5 }
 0xbf9   :  { %v1127_v16 = vpop.f32.mrb[8].mxu0 }
 0xbfa   :  { %v1131_v45 = vadd.f32 %v1127_v16, %v5457_v37  ;;  %v4778_v47 = vpop.f32.mrb[9].mxu0 }
 0xbfc   :  { %5192 = vtanh.f32 %v1131_v45  ;;  %v4477_v55 = vmul.f32 -1.442695, %v1131_v45 }
 0xbfd   :  { %5194 = vpow2.f32 %v4478_v57 }
 0xbfe   :  { %5196 = vpow2.f32 %v4477_v55 }
 0xc02   :  { %v5191_v51 = vpop.eup %5190 }
 0xc03   :  { %1241 = vrot.lane.b32.xlu0 %v5191_v51, %s5289_s7 }
 0xc06   :  { %v5193_v53 = vpop.eup %5192 }
 0xc07   :  { %1224 = vrot.lane.b32.xlu1 %v5193_v53, %s5289_s7  ;;  %v5195_v56 = vpop.eup %5194 }
 0xc08   :  { %v1218_v3 = vadd.f32 1.0, %v5195_v56  ;;  %v5197_v48 = vpop.eup %5196 }
 0xc09   :  { %v1211_v24 = vadd.f32 1.0, %v5197_v48 }
 0xc0a   :  { %5198 = vrcp.f32 %v1218_v3 }
 0xc0b   :  { %5200 = vrcp.f32 %v1211_v24 }
 0xc14   :  { %v5199_v32 = vpop.eup %5198 }
 0xc15   :  { %v5201_v15 = vpop.eup %5200  ;;  %v1239_v25 = vmul.f32 %v5199_v32, %v5680_v42 }
 0xc16   :  { %v1222_v7 = vmul.f32 %v5201_v15, %v5684_v49 }
 0xc75   :  { %v1242_v37 = vpop.permute.xlu0 %1241 }
 0xc76   :  { %v1244_v63 = vmul.f32 %v5199_v32, %v1242_v37 }
 0xc78   :  { %1246 = vrot.lane.b32.xlu0 %v1244_v63, %s5289_s7 }
 0xc79   :  { %v1225_v20 = vpop.permute.xlu1 %1224 }
 0xc7a   :  { %v1227_v23 = vmul.f32 %v5201_v15, %v1225_v20 }
 0xc7c   :  { %1229 = vrot.lane.b32.xlu1 %v1227_v23, %s5289_s7 }
 0xcea   :  { %v1247_v26 = vpop.permute.xlu0 %1246 }
 0xceb   :  { %v5761_v0 = vadd.f32 %v1247_v26, %v1239_v25 }
 0xced   :  { %5202 = vtanh.f32 %v5761_v0 }
 0xcee   :  { %v1230_v9 = vpop.permute.xlu1 %1229 }
 0xcef   :  { %v5765_v10 = vadd.f32 %v1230_v9, %v1222_v7 }
 0xcf1   :  { %5204 = vtanh.f32 %v5765_v10 }
 0xcf7   :  { %v5203_v11 = vpop.eup %5202 }
 0xcf8   :  { %1252 = vrot.lane.b32.xlu0 %v5203_v11, %s5289_s7 }
 0xcfb   :  { %v5205_v13 = vpop.eup %5204 }
 0xcfc   :  { %1235 = vrot.lane.b32.xlu1 %v5205_v13, %s5289_s7 }
 0xd6a   :  { %v1253_v8 = vpop.permute.xlu0 %1252 }
 0xd6b   :  { %v5770_v42 = vmul.f32 %v5199_v32, %v1253_v8 }
 0xd6d   :  { %1333 = vrot.lane.b32.xlu0 %v5770_v42, %s5290_s2 }
 0xd6e   :  { %v1236_v17 = vpop.permute.xlu1 %1235 }
 0xd6f   :  { %v1238_v54 = vmul.f32 %v5201_v15, %v1236_v17 }
 0xd71   :  { %1257 = vrot.lane.b32.xlu1 %v1238_v54, %s5290_s2  ;;  %v2060_v49 = vcombine.high %v1238_v54, %v1238_v54  ;;  %v2067_v27 = vrot.slane %v1238_v54, %v5522_v19 }
 0xd73   :  { %v2074_v30 = vrot.slane %v2060_v49, %v5522_v19  ;;  %v2075_v36 = vcombine.high %v2067_v27, %v2067_v27  ;;  %v2083_v60 = vrot.slane %v2067_v27, %v5522_v19 }
 0xd75   :  { %v2076_v31 = vcombine.high %v2074_v30, %v2074_v30  ;;  %v2090_v61 = vrot.slane %v2074_v30, %v5522_v19  ;;  %v2097_v5 = vrot.slane %v2075_v36, %v5522_v19  ;;  %v2105_v16 = vcombine.high %v2083_v60, %v2083_v60 }
 0xd76   :  { %v2380_v51 = vrot.slane %v2083_v60, %v5538_v43 }
 0xd77   :  { %v2104_v14 = vrot.slane %v2076_v31, %v5522_v19  ;;  %v2106_v45 = vcombine.high %v2090_v61, %v2090_v61  ;;  %v2107_v47 = vcombine.high %v2097_v5, %v2097_v5  ;;  %v2384_v53 = vrot.slane %v2097_v5, %v5538_v43 }
 0xd78   :  { %v2396_v57 = vrot.slane %v2090_v61, %v5538_v43  ;;  %v2388_v56 = vrot.slane %v2105_v16, %v5538_v43  ;;  %v5790_v32 = vsel %vm2564_vm5, %v5709_v29, %v2380_v51 }
 0xd79   :  { %v2108_v55 = vcombine.high %v2104_v14, %v2104_v14  ;;  %v2392_v3 = vrot.slane %v2107_v47, %v5538_v43  ;;  %v2400_v48 = vrot.slane %v2104_v14, %v5538_v43  ;;  %v2404_v24 = vrot.slane %v2106_v45, %v5538_v43 }
 0xd7a   :  { %v5794_v37 = vsel %vm2564_vm5, %v5713_v33, %v2384_v53  ;;  %v5798_v63 = vsel %vm2564_vm5, %v5717_v34, %v2396_v57  ;;  %v5803_v20 = vsel %vm2564_vm5, %v5722_v38, %v2388_v56 }
 0xd7b   :  { %v2408_v15 = vrot.slane %v2108_v55, %v5538_v43  ;;  %v5807_v23 = vsel %vm2564_vm5, %v5726_v40, %v2392_v3  ;;  %v5811_v29 = vsel %vm2564_vm5, %v5730_v52, %v2400_v48  ;;  %v5815_v33 = vsel %vm2564_vm5, %v5734_v58, %v2404_v24 }
 0xd7d   :  { %v5819_v34 = vsel %vm2564_vm5, %v5738_v59, %v2408_v15 }
 0xddf   :  { %v1334_v25 = vpop.permute.xlu0 %1333 }
 0xde0   :  { %4810 = vmatmul.mubr.msk.f32.vlgmr.msra.gmra.mrb[26].mxu1 %vm89_vm1, %v1334_v25 }
 0xde1   :  { %5048 = vmatpush3.bf16.msra.mxu1 %v5420_v18  ;;  %4831 = vmatprep.mubr.msk.f32.mxu1 %vm5287_vm0, %v6760_v2 }
 0xde2   :  { %5049 = vmatprep.subr.bf16.mxu1 %v5286_v1 }
 0xde3   :  { %v1258_v38 = vpop.permute.xlu1 %1257 }
 0xde4   :  { %4799 = vmatmul.mubr.msk.f32.vlgmr.msra.gmra.mrb[10].mxu0 %vm89_vm1, %v1258_v38 }
 0xde5   :  { %5042 = vmatpush3.bf16.msra.mxu0 %v5369_v6  ;;  %5051 = vmatpush3.bf16.msra.mxu1 %v5431_v21 }
 0xde6   :  { %5043 = vmatprep.subr.bf16.mxu0 %v5286_v1  ;;  %4820 = vmatprep.mubr.msk.f32.mxu0 %vm5287_vm0, %v6760_v2 }
 0xde7   :  { %5058 = vmatprep.subr.bf16.mxu1 %v5286_v1 }
 0xde9   :  { %5045 = vmatpush3.bf16.msra.mxu0 %v5389_v12 }
 0xdea   :  { %5052 = vmatprep.subr.bf16.mxu0 %v5286_v1 }
 0xeb3   :  { %v1403_v40 = vpop.f32.mrb[26].mxu1 }
 0xeb4   :  { %v1407_v52 = vadd.f32 %v1403_v40, %v5466_v44  ;;  %v4811_v58 = vpop.f32.mrb[27].mxu1 }
 0xeb6   :  { %5206 = vtanh.f32 %v1407_v52  ;;  %v4482_v13 = vmul.f32 -1.442695, %v1407_v52 }
 0xeb7   :  { %v1327_v59 = vpop.f32.mrb[10].mxu0 }
 0xeb8   :  { %v1331_v26 = vadd.f32 %v1327_v59, %v5461_v41  ;;  %v4800_v7 = vpop.f32.mrb[11].mxu0 }
 0xeba   :  { %5208 = vtanh.f32 %v1331_v26  ;;  %v4481_v8 = vmul.f32 -1.442695, %v1331_v26 }
 0xebb   :  { %5210 = vpow2.f32 %v4482_v13 }
 0xebc   :  { %5212 = vpow2.f32 %v4481_v8 }
 0xec0   :  { %v5207_v9 = vpop.eup %5206 }
 0xec1   :  { %1441 = vrot.lane.b32.xlu0 %v5207_v9, %s5289_s7 }
 0xec4   :  { %v5209_v11 = vpop.eup %5208 }
 0xec5   :  { %1424 = vrot.lane.b32.xlu1 %v5209_v11, %s5289_s7  ;;  %v5211_v17 = vpop.eup %5210 }
 0xec6   :  { %v1418_v54 = vadd.f32 1.0, %v5211_v17  ;;  %v5213_v44 = vpop.eup %5212 }
 0xec7   :  { %v1411_v49 = vadd.f32 1.0, %v5213_v44 }
 0xec8   :  { %5214 = vrcp.f32 %v1418_v54 }
 0xec9   :  { %5216 = vrcp.f32 %v1411_v49 }
 0xed2   :  { %v5215_v27 = vpop.eup %5214 }
 0xed3   :  { %v5217_v36 = vpop.eup %5216  ;;  %v1439_v61 = vmul.f32 %v5215_v27, %v5761_v0 }
 0xed4   :  { %v1422_v16 = vmul.f32 %v5217_v36, %v5765_v10 }
 0xf33   :  { %v1442_v41 = vpop.permute.xlu0 %1441 }
 0xf34   :  { %v1444_v30 = vmul.f32 %v5215_v27, %v1442_v41 }
 0xf36   :  { %1446 = vrot.lane.b32.xlu0 %v1444_v30, %s5289_s7 }
 0xf37   :  { %v1425_v31 = vpop.permute.xlu1 %1424 }
 0xf38   :  { %v1427_v60 = vmul.f32 %v5217_v36, %v1425_v31 }
 0xf3a   :  { %1429 = vrot.lane.b32.xlu1 %v1427_v60, %s5289_s7 }
 0xfa8   :  { %v1447_v5 = vpop.permute.xlu0 %1446 }
 0xfa9   :  { %v5842_v14 = vadd.f32 %v1447_v5, %v1439_v61 }
 0xfab   :  { %5218 = vtanh.f32 %v5842_v14 }
 0xfac   :  { %v1430_v45 = vpop.permute.xlu1 %1429 }
 0xfad   :  { %v5846_v47 = vadd.f32 %v1430_v45, %v1422_v16 }
 0xfaf   :  { %5220 = vtanh.f32 %v5846_v47 }
 0xfb5   :  { %v5219_v51 = vpop.eup %5218 }
 0xfb6   :  { %1452 = vrot.lane.b32.xlu0 %v5219_v51, %s5289_s7 }
 0xfb9   :  { %v5221_v53 = vpop.eup %5220 }
 0xfba   :  { %1435 = vrot.lane.b32.xlu1 %v5221_v53, %s5289_s7 }
0x1028   :  { %v1453_v57 = vpop.permute.xlu0 %1452 }
0x1029   :  { %v5851_v0 = vmul.f32 %v5215_v27, %v1453_v57 }
0x102b   :  { %1533 = vrot.lane.b32.xlu0 %v5851_v0, %s5290_s2 }
0x102c   :  { %v1436_v55 = vpop.permute.xlu1 %1435 }
0x102d   :  { %v1438_v56 = vmul.f32 %v5217_v36, %v1436_v55 }
0x102f   :  { %1457 = vrot.lane.b32.xlu1 %v1438_v56, %s5290_s2  ;;  %v2109_v10 = vcombine.high %v1438_v56, %v1438_v56  ;;  %v2116_v3 = vrot.slane %v1438_v56, %v5522_v19 }
0x1031   :  { %v2123_v48 = vrot.slane %v2109_v10, %v5522_v19  ;;  %v2124_v24 = vcombine.high %v2116_v3, %v2116_v3  ;;  %v2132_v25 = vrot.slane %v2116_v3, %v5522_v19 }
0x1033   :  { %v2125_v15 = vcombine.high %v2123_v48, %v2123_v48  ;;  %v2139_v38 = vrot.slane %v2123_v48, %v5522_v19  ;;  %v2146_v40 = vrot.slane %v2124_v24, %v5522_v19  ;;  %v2154_v58 = vcombine.high %v2132_v25, %v2132_v25 }
0x1034   :  { %v2420_v7 = vrot.slane %v2132_v25, %v5538_v43 }
0x1035   :  { %v2153_v52 = vrot.slane %v2125_v15, %v5522_v19  ;;  %v2155_v59 = vcombine.high %v2139_v38, %v2139_v38  ;;  %v2156_v26 = vcombine.high %v2146_v40, %v2146_v40  ;;  %v2424_v9 = vrot.slane %v2146_v40, %v5538_v43 }
0x1036   :  { %v2436_v11 = vrot.slane %v2139_v38, %v5538_v43  ;;  %v2428_v8 = vrot.slane %v2154_v58, %v5538_v43  ;;  %v5871_v49 = vsel %vm2573_vm6, %v5790_v32, %v2420_v7 }
0x1037   :  { %v2157_v13 = vcombine.high %v2153_v52, %v2153_v52  ;;  %v2432_v17 = vrot.slane %v2156_v26, %v5538_v43  ;;  %v2440_v54 = vrot.slane %v2153_v52, %v5538_v43  ;;  %v2444_v44 = vrot.slane %v2155_v59, %v5538_v43 }
0x1038   :  { %v5875_v27 = vsel %vm2573_vm6, %v5794_v37, %v2424_v9  ;;  %v5879_v41 = vsel %vm2573_vm6, %v5798_v63, %v2436_v11  ;;  %v5883_v30 = vsel %vm2573_vm6, %v5803_v20, %v2428_v8 }
0x1039   :  { %v5887_v36 = vsel %vm2573_vm6, %v5807_v23, %v2432_v17  ;;  %v5891_v32 = vsel %vm2573_vm6, %v5811_v29, %v2440_v54  ;;  %v2448_v31 = vrot.slane %v2157_v13, %v5538_v43  ;;  %v5896_v37 = vsel %vm2573_vm6, %v5815_v33, %v2444_v44 }
0x103b   :  { %v5900_v63 = vsel %vm2573_vm6, %v5819_v34, %v2448_v31 }
0x109d   :  { %v1534_v20 = vpop.permute.xlu0 %1533 }
0x109e   :  { %4832 = vmatmul.mubr.msk.f32.vlgmr.msra.gmra.mrb[28].mxu1 %vm89_vm1, %v1534_v20 }
0x109f   :  { %5060 = vmatpush3.bf16.msra.mxu1 %v5420_v18  ;;  %4853 = vmatprep.mubr.msk.f32.mxu1 %vm5287_vm0, %v6760_v2 }
0x10a0   :  { %5061 = vmatprep.subr.bf16.mxu1 %v5286_v1 }
0x10a1   :  { %v1458_v23 = vpop.permute.xlu1 %1457 }
0x10a2   :  { %4821 = vmatmul.mubr.msk.f32.vlgmr.msra.gmra.mrb[12].mxu0 %vm89_vm1, %v1458_v23 }
0x10a3   :  { %5054 = vmatpush3.bf16.msra.mxu0 %v5369_v6  ;;  %5063 = vmatpush3.bf16.msra.mxu1 %v5431_v21 }
0x10a4   :  { %5055 = vmatprep.subr.bf16.mxu0 %v5286_v1  ;;  %4842 = vmatprep.mubr.msk.f32.mxu0 %vm5287_vm0, %v6760_v2 }
0x10a5   :  { %4862 = vmatprep.subr.bf16.mxu1 %v6760_v2 }
0x10a7   :  { %5057 = vmatpush3.bf16.msra.mxu0 %v5389_v12 }
0x10a8   :  { %4856 = vmatprep.subr.bf16.mxu0 %v6760_v2 }
0x1171   :  { %v1603_v18 = vpop.f32.mrb[28].mxu1 }
0x1172   :  { %v1607_v29 = vadd.f32 %v1603_v18, %v5472_v50  ;;  %v4833_v33 = vpop.f32.mrb[29].mxu1 }
0x1174   :  { %5222 = vtanh.f32 %v1607_v29  ;;  %v4486_v61 = vmul.f32 -1.442695, %v1607_v29 }
0x1175   :  { %v1527_v34 = vpop.f32.mrb[12].mxu0 }
0x1176   :  { %v1531_v6 = vadd.f32 %v1527_v34, %v5455_v35  ;;  %v4822_v21 = vpop.f32.mrb[13].mxu0 }
0x1178   :  { %5224 = vtanh.f32 %v1531_v6  ;;  %v4485_v12 = vmul.f32 -1.442695, %v1531_v6 }
0x1179   :  { %5226 = vpow2.f32 %v4486_v61 }
0x117a   :  { %5228 = vpow2.f32 %v4485_v12 }
0x117e   :  { %v5223_v1 = vpop.eup %5222 }
0x117f   :  { %1641 = vrot.lane.b32.xlu0 %v5223_v1, %s5289_s7 }
0x1182   :  { %v5225_v60 = vpop.eup %5224 }
0x1183   :  { %1624 = vrot.lane.b32.xlu1 %v5225_v60, %s5289_s7  ;;  %v5227_v5 = vpop.eup %5226 }
0x1184   :  { %v1618_v16 = vadd.f32 1.0, %v5227_v5  ;;  %v5229_v50 = vpop.eup %5228 }
0x1185   :  { %v1611_v45 = vadd.f32 1.0, %v5229_v50 }
0x1186   :  { %5230 = vrcp.f32 %v1618_v16 }
0x1187   :  { %5232 = vrcp.f32 %v1611_v45 }
0x1190   :  { %v5231_v51 = vpop.eup %5230 }
0x1191   :  { %v5233_v57 = vpop.eup %5232  ;;  %v1639_v10 = vmul.f32 %v5231_v51, %v5842_v14 }
0x1192   :  { %v1622_v24 = vmul.f32 %v5233_v57, %v5846_v47 }
0x11f1   :  { %v1642_v35 = vpop.permute.xlu0 %1641 }
0x11f2   :  { %v1644_v53 = vmul.f32 %v5231_v51, %v1642_v35 }
0x11f4   :  { %1646 = vrot.lane.b32.xlu0 %v1644_v53, %s5289_s7 }
0x11f5   :  { %v1625_v55 = vpop.permute.xlu1 %1624 }
0x11f6   :  { %v1627_v56 = vmul.f32 %v5233_v57, %v1625_v55 }
0x11f8   :  { %1629 = vrot.lane.b32.xlu1 %v1627_v56, %s5289_s7 }
0x1266   :  { %v1647_v3 = vpop.permute.xlu0 %1646 }
0x1267   :  { %v5923_v48 = vadd.f32 %v1647_v3, %v1639_v10 }
0x1269   :  { %5234 = vtanh.f32 %v5923_v48 }
0x126a   :  { %v1630_v15 = vpop.permute.xlu1 %1629 }
0x126b   :  { %v5927_v25 = vadd.f32 %v1630_v15, %v1622_v24 }
0x126d   :  { %5236 = vtanh.f32 %v5927_v25 }
0x1273   :  { %v5235_v38 = vpop.eup %5234 }
0x1274   :  { %1652 = vrot.lane.b32.xlu0 %v5235_v38, %s5289_s7 }
0x1277   :  { %v5237_v40 = vpop.eup %5236 }
0x1278   :  { %1635 = vrot.lane.b32.xlu1 %v5237_v40, %s5289_s7 }
0x12e6   :  { %v1653_v52 = vpop.permute.xlu0 %1652 }
0x12e7   :  { %v5932_v14 = vmul.f32 %v5231_v51, %v1653_v52 }
0x12e9   :  { %1733 = vrot.lane.b32.xlu0 %v5932_v14, %s5290_s2 }
0x12ea   :  { %v1636_v58 = vpop.permute.xlu1 %1635 }
0x12eb   :  { %v1638_v59 = vmul.f32 %v5233_v57, %v1636_v58 }
0x12ed   :  { %1657 = vrot.lane.b32.xlu1 %v1638_v59, %s5290_s2  ;;  %v2158_v47 = vcombine.high %v1638_v59, %v1638_v59  ;;  %v2165_v26 = vrot.slane %v1638_v59, %v5522_v19 }
0x12ef   :  { %v2172_v7 = vrot.slane %v2158_v47, %v5522_v19  ;;  %v2173_v9 = vcombine.high %v2165_v26, %v2165_v26  ;;  %v2181_v13 = vrot.slane %v2165_v26, %v5522_v19 }
0x12f1   :  { %v2174_v11 = vcombine.high %v2172_v7, %v2172_v7  ;;  %v2188_v8 = vrot.slane %v2172_v7, %v5522_v19  ;;  %v2195_v17 = vrot.slane %v2173_v9, %v5522_v19  ;;  %v2203_v44 = vcombine.high %v2181_v13, %v2181_v13 }
0x12f2   :  { %v2460_v23 = vrot.slane %v2181_v13, %v5538_v43 }
0x12f3   :  { %v2202_v54 = vrot.slane %v2174_v11, %v5522_v19  ;;  %v2204_v31 = vcombine.high %v2188_v8, %v2188_v8  ;;  %v2205_v20 = vcombine.high %v2195_v17, %v2195_v17  ;;  %v2464_v18 = vrot.slane %v2195_v17, %v5538_v43 }
0x12f4   :  { %v2476_v29 = vrot.slane %v2188_v8, %v5538_v43  ;;  %v2468_v34 = vrot.slane %v2203_v44, %v5538_v43  ;;  %v5951_v1 = vsel %vm2582_vm7, %v5871_v49, %v2460_v23  ;;  %v2959_v17 = vrot.slane %v5486_v28, %v5522_v19 }
0x12f5   :  { %v2206_v33 = vcombine.high %v2202_v54, %v2202_v54  ;;  %v2472_v6 = vrot.slane %v2205_v20, %v5538_v43  ;;  %v2480_v21 = vrot.slane %v2202_v54, %v5538_v43  ;;  %v5955_v60 = vsel %vm2582_vm7, %v5875_v27, %v2464_v18 }
0x12f6   :  { %v5959_v61 = vsel %vm2582_vm7, %v5879_v41, %v2476_v29  ;;  %v2484_v12 = vrot.slane %v2204_v31, %v5538_v43  ;;  %v5964_v5 = vsel %vm2582_vm7, %v5883_v30, %v2468_v34  ;;  %v2903_v54 = vcombine.high %v5526_v22, %v5526_v22 }
0x12f7   :  { %6769 = vst [vmem:[#allocation2_spill] sm:$0xff] %v5959_v61  ;;  %v5968_v16 = vsel %vm2582_vm7, %v5887_v36, %v2472_v6  ;;  %v5972_v49 = vsel %vm2582_vm7, %v5891_v32, %v2480_v21  ;;  %v2488_v27 = vrot.slane %v2206_v33, %v5538_v43  ;;  %v2967_v44 = vcombine.high %v2959_v17, %v2959_v17 }
0x12f8   :  { %6770 = vst [vmem:[#allocation3_spill] sm:$0xff] %v5972_v49  ;;  %v5977_v41 = vsel %vm2582_vm7, %v5896_v37, %v2484_v12  ;;  %v2910_v31 = vrot.slane %v5526_v22, %v5522_v19  ;;  %v2917_v20 = vrot.slane %v2903_v54, %v5522_v19  ;;  %v6018_v23 = vrot.slane %v2959_v17, %v5522_v19 }
0x12f9   :  { %6771 = vst [vmem:[#allocation4_spill] sm:$0xff] %v5977_v41  ;;  %v5981_v50 = vsel %vm2582_vm7, %v5900_v63, %v2488_v27  ;;  %v6021_v18 = vrot.slane %v2967_v44, %v5522_v19  ;;  %v2861_v21 = vrot.slane %v5608_v4, %v5522_v19  ;;  %v2756_v17 = vcombine.high %v5770_v42, %v5770_v42 }
0x12fa   :  { %6772 = vst [vmem:[#allocation5_spill] sm:$0xff] %v5981_v50  ;;  %v2918_v33 = vcombine.high %v2910_v31, %v2910_v31  ;;  %v2919_v6 = vcombine.high %v2917_v20, %v2917_v20  ;;  %v2997_v22 = vcombine.high %v6018_v23, %v6018_v23  ;;  %v6035_v27 = vrot.slane %v2910_v31, %v5522_v19 }
0x12fb   :  { %v2999_v12 = vcombine.high %v6021_v18, %v6021_v18  ;;  %v2763_v31 = vrot.slane %v5770_v42, %v5522_v19 }
0x135b   :  { %v1734_v30 = vpop.permute.xlu0 %1733 }
0x135c   :  { %4854 = vmatmul.mubr.msk.f32.vlgmr.msra.gmra.mrb[30].mxu1 %vm89_vm1, %v1734_v30 }
0x135d   :  { %4864 = vmatprep.mubr.msk.bf16.mxu1 %vm5287_vm0, %v6760_v2 }
0x135f   :  { %v1658_v36 = vpop.permute.xlu1 %1657 }
0x1360   :  { %4843 = vmatmul.mubr.msk.f32.vlgmr.msra.gmra.mrb[14].mxu0 %vm89_vm1, %v1658_v36  ;;  %v6041_v36 = vrot.slane %v2918_v33, %v5522_v19 }
0x1361   :  { %4858 = vmatprep.mubr.msk.bf16.mxu0 %vm5287_vm0, %v6760_v2 }
0x142f   :  { %v1803_v32 = vpop.f32.mrb[30].mxu1 }
0x1430   :  { %v1807_v37 = vadd.f32 %v1803_v32, %v5468_v46  ;;  %v4855_v45 = vpop.f32.mrb[31].mxu1 }
0x1431   :  { %v6049_v45 = vrot.slane %v2917_v20, %v5522_v19 }
0x1432   :  { %5238 = vtanh.f32 %v1807_v37  ;;  %v4490_v55 = vmul.f32 -1.442695, %v1807_v37 }
0x1433   :  { %v1727_v51 = vpop.f32.mrb[14].mxu0  ;;  %6775 = vst [vmem:[#allocation8_spill] sm:$0xff] %v6049_v45 }
0x1434   :  { %v1731_v63 = vadd.f32 %v1727_v51, %v5459_v39  ;;  %v4844_v35 = vpop.f32.mrb[15].mxu0  ;;  %v6052_v51 = vrot.slane %v2919_v6, %v5522_v19 }
0x1435   :  { %v2805_v35 = vcombine.high %v5689_v62, %v5689_v62 }
0x1436   :  { %5240 = vtanh.f32 %v1731_v63  ;;  %v4489_v56 = vmul.f32 -1.442695, %v1731_v63  ;;  %6776 = vst [vmem:[#allocation9_spill] sm:$0xff] %v6052_v51  ;;  %v2869_v63 = vcombine.high %v2861_v21, %v2861_v21 }
0x1437   :  { %5242 = vpow2.f32 %v4490_v55  ;;  %v2948_v55 = vcombine.high %v6035_v27, %v6035_v27 }
0x1438   :  { %5244 = vpow2.f32 %v4489_v56  ;;  %v2812_v56 = vrot.slane %v5689_v62, %v5522_v19  ;;  %v2951_v62 = vcombine.high %v6052_v51, %v6052_v51 }
0x143a   :  { %v6120_v33 = vrot.slane %v2951_v62, %v5538_v43  ;;  %v2658_v62 = vcombine.high %v5932_v14, %v5932_v14 }
0x143c   :  { %v5239_v53 = vpop.eup %5238  ;;  %6781 = vst [vmem:[#allocation14_spill] sm:$0xff] %v6120_v33 }
0x143d   :  { %1841 = vrot.lane.b32.xlu0 %v5239_v53, %s5289_s7 }
0x1440   :  { %v5241_v57 = vpop.eup %5240 }
0x1441   :  { %1824 = vrot.lane.b32.xlu1 %v5241_v57, %s5289_s7  ;;  %v5243_v10 = vpop.eup %5242  ;;  %v6059_v57 = vrot.slane %v2997_v22, %v5538_v43 }
0x1442   :  { %v1818_v3 = vadd.f32 1.0, %v5243_v10  ;;  %v5245_v46 = vpop.eup %5244  ;;  %v6066_v10 = vrot.slane %v2999_v12, %v5538_v43  ;;  %v6131_v12 = vrot.slane %v2812_v56, %v5522_v19 }
0x1443   :  { %v1811_v24 = vadd.f32 1.0, %v5245_v46  ;;  %v2950_v46 = vcombine.high %v6041_v36, %v6041_v36 }
0x1444   :  { %5246 = vrcp.f32 %v1818_v3  ;;  %v6172_v3 = vrot.slane %v2763_v31, %v5522_v19 }
0x1445   :  { %5248 = vrcp.f32 %v1811_v24 }
0x144e   :  { %v5993_v15 = vpop.eup %5246 }
0x144f   :  { %v5997_v40 = vpop.eup %5248  ;;  %v1839_v59 = vmul.f32 %v5993_v15, %v5923_v48  ;;  %v2952_v48 = vcombine.high %v5486_v28, %v5486_v28  ;;  %v2854_v28 = vcombine.high %v5608_v4, %v5608_v4 }
0x1450   :  { %v1822_v7 = vmul.f32 %v5997_v40, %v5927_v25 }
0x1451   :  { %v2966_v25 = vrot.slane %v2952_v48, %v5522_v19  ;;  %v2868_v32 = vrot.slane %v2854_v28, %v5522_v19  ;;  %v2665_v48 = vrot.slane %v5932_v14, %v5522_v19 }
0x1453   :  { %v2968_v29 = vcombine.high %v2966_v25, %v2966_v25  ;;  %v6026_v34 = vrot.slane %v2966_v25, %v5522_v19  ;;  %v2870_v24 = vcombine.high %v2868_v32, %v2868_v32  ;;  %v6110_v25 = vrot.slane %v2950_v46, %v5538_v43 }
0x1454   :  { %v2714_v46 = vrot.slane %v5851_v0, %v5522_v19 }
0x1455   :  { %6773 = vst [vmem:[#allocation6_spill] sm:$0xff] %v6026_v34  ;;  %v6038_v30 = vrot.slane %v2968_v29, %v5522_v19  ;;  %v2998_v37 = vcombine.high %v6026_v34, %v6026_v34  ;;  %v6105_v54 = vrot.slane %v2870_v24, %v5522_v19 }
0x1457   :  { %6774 = vst [vmem:[#allocation7_spill] sm:$0xff] %v6038_v30  ;;  %6779 = vst [vmem:[#allocation12_spill] sm:$0xff] %v6105_v54 }
0x14af   :  { %v1842_v39 = vpop.permute.xlu0 %1841 }
0x14b0   :  { %v1844_v38 = vmul.f32 %v5993_v15, %v1842_v39  ;;  %v6073_v39 = vrot.slane %v2861_v21, %v5522_v19  ;;  %v2707_v21 = vcombine.high %v5851_v0, %v5851_v0 }
0x14b2   :  { %1846 = vrot.lane.b32.xlu0 %v1844_v38, %s5289_s7  ;;  %v2899_v44 = vcombine.high %v6073_v39, %v6073_v39  ;;  %v2721_v0 = vrot.slane %v2707_v21, %v5522_v19 }
0x14b3   :  { %v1825_v52 = vpop.permute.xlu1 %1824 }
0x14b4   :  { %v1827_v58 = vmul.f32 %v5997_v40, %v1825_v52  ;;  %v2949_v52 = vcombine.high %v6049_v45, %v6049_v45  ;;  %v2723_v53 = vcombine.high %v2721_v0, %v2721_v0 }
0x14b6   :  { %1829 = vrot.lane.b32.xlu1 %v1827_v58, %s5289_s7  ;;  %v6117_v29 = vrot.slane %v2949_v52, %v5538_v43  ;;  %v2771_v52 = vcombine.high %v2763_v31, %v2763_v31 }
0x14b8   :  { %6780 = vst [vmem:[#allocation13_spill] sm:$0xff] %v6117_v29 }
0x1524   :  { %v1847_v47 = vpop.permute.xlu0 %1846 }
0x1525   :  { %v1849_v26 = vadd.f32 %v1847_v47, %v1839_v59  ;;  %v6084_v59 = vrot.slane %v2998_v37, %v5538_v43  ;;  %v2770_v37 = vrot.slane %v2756_v17, %v5522_v19  ;;  %v2672_v17 = vrot.slane %v2658_v62, %v5522_v19 }
0x1526   :  { %v6208_v47 = vrot.slane %v2714_v46, %v5522_v19 }
0x1527   :  { %5250 = vtanh.f32 %v1849_v26  ;;  %6777 = vst [vmem:[#allocation10_spill] sm:$0xff] %v6084_v59  ;;  %v2772_v38 = vcombine.high %v2770_v37, %v2770_v37  ;;  %v2688_v31 = vrot.slane %v2672_v17, %v5522_v19 }
0x1528   :  { %v1830_v9 = vpop.permute.xlu1 %1829 }
0x1529   :  { %v1832_v11 = vadd.f32 %v1830_v9, %v1822_v7  ;;  %v6091_v7 = vrot.slane %v2869_v63, %v5522_v19  ;;  %v2819_v9 = vrot.slane %v2805_v35, %v5522_v19  ;;  %v2902_v63 = vcombine.high %v6105_v54, %v6105_v54 }
0x152a   :  { %v6201_v62 = vrot.slane %v2772_v38, %v5522_v19  ;;  %v2673_v38 = vcombine.high %v2665_v48, %v2665_v48  ;;  %v2674_v35 = vcombine.high %v2672_v17, %v2672_v17  ;;  %v3044_v17 = vrot.slane %v6208_v47, %v5538_v43 }
0x152b   :  { %5252 = vtanh.f32 %v1832_v11  ;;  %v6095_v11 = vrot.slane %v2948_v55, %v5538_v43  ;;  %v2901_v28 = vcombine.high %v6091_v7, %v6091_v7  ;;  %v2821_v22 = vcombine.high %v2819_v9, %v2819_v9 }
0x152c   :  { %v6142_v55 = vrot.slane %v2899_v44, %v5538_v43  ;;  %v6149_v24 = vrot.slane %v2819_v9, %v5522_v19  ;;  %v2850_v9 = vcombine.high %v6131_v12, %v6131_v12  ;;  %v6175_v20 = vrot.slane %v2902_v63, %v5538_v43 }
0x152d   :  { %v6159_v44 = vrot.slane %v2821_v22, %v5522_v19  ;;  %v2722_v22 = vcombine.high %v2714_v46, %v2714_v46  ;;  %v6190_v63 = vrot.slane %v2770_v37, %v5522_v19  ;;  %v2801_v37 = vcombine.high %v6172_v3, %v6172_v3 }
0x152e   :  { %6783 = vst [vmem:[#allocation16_spill] sm:$0xff] %v6175_v20  ;;  %v2851_v21 = vcombine.high %v6149_v24, %v6149_v24  ;;  %v6193_v4 = vrot.slane %v2850_v9, %v5538_v43  ;;  %v6224_v46 = vrot.slane %v2721_v0, %v5522_v19 }
0x152f   :  { %v6211_v9 = vrot.slane %v2722_v22, %v5522_v19  ;;  %v2802_v26 = vcombine.high %v6190_v63, %v6190_v63  ;;  %v6227_v22 = vrot.slane %v2723_v53, %v5522_v19  ;;  %v6237_v50 = vrot.slane %v2801_v37, %v5538_v43 }
0x1530   :  { %v2752_v53 = vcombine.high %v6208_v47, %v6208_v47  ;;  %v2753_v33 = vcombine.high %v6224_v46, %v6224_v46 }
0x1531   :  { %v5251_v13 = vpop.eup %5250  ;;  %v2754_v41 = vcombine.high %v6211_v9, %v6211_v9  ;;  %v6254_v0 = vrot.slane %v2802_v26, %v5538_v43  ;;  %v2755_v29 = vcombine.high %v6227_v22, %v6227_v22 }
0x1532   :  { %1852 = vrot.lane.b32.xlu0 %v5251_v13, %s5289_s7  ;;  %v6098_v13 = vrot.slane %v2868_v32, %v5522_v19  ;;  %v3052_v26 = vrot.slane %v2752_v53, %v5538_v43 }
0x1533   :  { %6786 = vst [vmem:[#allocation19_spill] sm:$0xff] %v6254_v0  ;;  %v3056_v20 = vrot.slane %v2754_v41, %v5538_v43  ;;  %v3068_v0 = vrot.slane %v2753_v33, %v5538_v43 }
0x1534   :  { %6778 = vst [vmem:[#allocation11_spill] sm:$0xff] %v6098_v13  ;;  %v2900_v42 = vcombine.high %v6098_v13, %v6098_v13 }
0x1535   :  { %v5253_v8 = vpop.eup %5252 }
0x1536   :  { %1835 = vrot.lane.b32.xlu1 %v5253_v8, %s5289_s7  ;;  %v2820_v8 = vcombine.high %v2812_v56, %v2812_v56  ;;  %v6163_v2 = vrot.slane %v2900_v42, %v5538_v43  ;;  %v6180_v42 = vrot.slane %v2771_v52, %v5522_v19  ;;  %v2853_v56 = vcombine.high %v6159_v44, %v6159_v44 }
0x1538   :  { %v6134_v32 = vrot.slane %v2820_v8, %v5522_v19  ;;  %v6154_v8 = vrot.slane %v2901_v28, %v5538_v43  ;;  %6782 = vst [vmem:[#allocation15_spill] sm:$0xff] %v6163_v2  ;;  %v2803_v14 = vcombine.high %v6180_v42, %v6180_v42  ;;  %v6219_v6 = vrot.slane %v2853_v56, %v5538_v43 }
0x1539   :  { %v2681_v56 = vrot.slane %v2665_v48, %v5522_v19  ;;  %v2695_v28 = vrot.slane %v2673_v38, %v5522_v19  ;;  %v2702_v48 = vrot.slane %v2674_v35, %v5522_v19  ;;  %v3048_v35 = vrot.slane %v6211_v9, %v5538_v43 }
0x153a   :  { %v2852_v58 = vcombine.high %v6134_v32, %v6134_v32  ;;  %6785 = vst [vmem:[#allocation18_spill] sm:$0xff] %v6219_v6  ;;  %v6246_v59 = vrot.slane %v2803_v14, %v5538_v43  ;;  %v3060_v2 = vrot.slane %v6224_v46, %v5538_v43  ;;  %v6276_v9 = vrot.slane %v2755_v29, %v5538_v43 }
0x153b   :  { %v2703_v38 = vcombine.high %v2681_v56, %v2681_v56  ;;  %v2706_v47 = vcombine.high %v2702_v48, %v2702_v48  ;;  %v3004_v41 = vrot.slane %v2681_v56, %v5538_v43  ;;  %v3008_v46 = vrot.slane %v2695_v28, %v5538_v43 }
0x153c   :  { %v6196_v52 = vrot.slane %v2852_v58, %v5538_v43  ;;  %v6214_v58 = vrot.slane %v2851_v21, %v5538_v43  ;;  %v2804_v21 = vcombine.high %v6201_v62, %v6201_v62  ;;  %6788 = vst [vmem:[#allocation21_spill] sm:$0xff] %v6276_v9 }
0x153e   :  { %6784 = vst [vmem:[#allocation17_spill] sm:$0xff] %v6214_v58  ;;  %v6261_v14 = vrot.slane %v2804_v21, %v5538_v43  ;;  %v3064_v21 = vrot.slane %v6227_v22, %v5538_v43  ;;  %v2704_v58 = vcombine.high %v2688_v31, %v2688_v31 }
0x1540   :  { %6787 = vst [vmem:[#allocation20_spill] sm:$0xff] %v6261_v14  ;;  %v2705_v14 = vcombine.high %v2695_v28, %v2695_v28  ;;  %v3028_v56 = vrot.slane %v2704_v58, %v5538_v43  ;;  %v3032_v28 = vrot.slane %v2706_v47, %v5538_v43 }
0x1542   :  { %v3016_v51 = vrot.slane %v2705_v14, %v5538_v43 }
0x15a4   :  { %v1853_v37 = vpop.permute.xlu0 %1852 }
0x15a5   :  { %v1855_v6 = vmul.f32 %v5993_v15, %v1853_v37  ;;  %v3012_v15 = vrot.slane %v2703_v38, %v5538_v43  ;;  %v3020_v37 = vrot.slane %v2688_v31, %v5538_v43 }
0x15a7   :  { %v2601_v30 = vcombine.high %v1855_v6, %v1855_v6  ;;  %v2608_v53 = vrot.slane %v1855_v6, %v5522_v19  ;;  %v3024_v6 = vrot.slane %v2702_v48, %v5538_v43 }
0x15a8   :  { %v1836_v22 = vpop.permute.xlu1 %1835 }
0x15a9   :  { %v2615_v49 = vrot.slane %v2601_v30, %v5522_v19  ;;  %v2616_v34 = vcombine.high %v2608_v53, %v2608_v53  ;;  %v2624_v33 = vrot.slane %v2608_v53, %v5522_v19  ;;  %v1838_v29 = vmul.f32 %v5997_v40, %v1836_v22 }
0x15ab   :  { %v2617_v9 = vcombine.high %v2615_v49, %v2615_v49  ;;  %v2631_v38 = vrot.slane %v2615_v49, %v5522_v19  ;;  %v2638_v31 = vrot.slane %v2616_v34, %v5522_v19  ;;  %v2646_v61 = vcombine.high %v2624_v33, %v2624_v33 }
0x15ac   :  { %v3281_v30 = vsel %vm2537_vm2, %v2624_v33, %v3004_v41  ;;  %v2208_v45 = vcombine.high %v1838_v29, %v1838_v29  ;;  %v2215_v53 = vrot.slane %v1838_v29, %v5522_v19 }
0x15ad   :  { %v2645_v40 = vrot.slane %v2617_v9, %v5522_v19  ;;  %v2647_v14 = vcombine.high %v2631_v38, %v2631_v38  ;;  %v2648_v48 = vcombine.high %v2638_v31, %v2638_v31  ;;  %v3282_v58 = vsel %vm2537_vm2, %v2638_v31, %v3008_v46 }
0x15ae   :  { %v3283_v47 = vsel %vm2537_vm2, %v2646_v61, %v3012_v15  ;;  %v3285_v22 = vsel %vm2537_vm2, %v2631_v38, %v3020_v37  ;;  %v3289_v49 = vsel %vm2546_vm3, %v3281_v30, %v3044_v17  ;;  %v3290_v34 = vsel %vm2546_vm3, %v3282_v58, %v3048_v35 }
0x15af   :  { %v2649_v54 = vcombine.high %v2645_v40, %v2645_v40  ;;  %v3284_v41 = vsel %vm2537_vm2, %v2648_v48, %v3016_v51  ;;  %v3286_v33 = vsel %vm2537_vm2, %v2645_v40, %v3024_v6  ;;  %v3287_v29 = vsel %vm2537_vm2, %v2647_v14, %v3028_v56 }
0x15b0   :  { %v3291_v9 = vsel %vm2546_vm3, %v3283_v47, %v3052_v26  ;;  %v3292_v13 = vsel %vm2546_vm3, %v3284_v41, %v3056_v20  ;;  %v3293_v46 = vsel %vm2546_vm3, %v3285_v22, %v3060_v2  ;;  %v3294_v61 = vsel %vm2546_vm3, %v3286_v33, %v3064_v21 }
0x15b1   :  { %v3288_v15 = vsel %vm2537_vm2, %v2649_v54, %v3032_v28  ;;  %v6309_v17 = vsel %vm2546_vm3, %v3287_v29, %v3068_v0  ;;  %v6789_v51 = vrot.slane %v6172_v3, %v5538_v43  ;;  %v2222_v37 = vrot.slane %v2208_v45, %v5522_v19 }
0x15b2   :  { %v2223_v6 = vcombine.high %v2215_v53, %v2215_v53  ;;  %v2231_v26 = vrot.slane %v2215_v53, %v5522_v19  ;;  %v6790_v2 = vrot.slane %v6180_v42, %v5538_v43  ;;  %v6791_v54 = vrot.slane %v6131_v12, %v5538_v43 }
0x15b3   :  { %v3297_v35 = vsel %vm2555_vm4, %v3289_v49, %v6789_v51  ;;  %v2224_v21 = vcombine.high %v2222_v37, %v2222_v37  ;;  %v6326_v3 = vrot.slane %v2222_v37, %v5522_v19  ;;  %v6792_v45 = vrot.slane %v6134_v32, %v5538_v43 }
0x15b4   :  { %v3298_v20 = vsel %vm2555_vm4, %v3290_v34, %v6790_v2  ;;  %v3305_v0 = vsel %vm2564_vm5, %v3297_v35, %v6791_v54  ;;  %v6793_v28 = vrot.slane %v6073_v39, %v5538_v43  ;;  %v2245_v38 = vrot.slane %v2223_v6, %v5522_v19 }
0x15b5   :  { %v3306_v56 = vsel %vm2564_vm5, %v3298_v20, %v6792_v45  ;;  %v2253_v31 = vcombine.high %v2231_v26, %v2231_v26  ;;  %v2500_v12 = vrot.slane %v2231_v26, %v5538_v43  ;;  %v6794_v30 = vrot.slane %v6091_v7, %v5538_v43  ;;  %v6803_v20 = vld [vmem:[#allocation11_spill] sm:$0xff] }
0x15b6   :  { %v3313_v42 = vsel %vm2573_vm6, %v3305_v0, %v6793_v28  ;;  %v2252_v40 = vrot.slane %v2224_v21, %v5522_v19  ;;  %v2254_v32 = vcombine.high %v6326_v3, %v6326_v3  ;;  %v2516_v39 = vrot.slane %v6326_v3, %v5538_v43  ;;  %v6807_v21 = vld [vmem:[#allocation8_spill] sm:$0xff]  ;;  %v6810_v28 = vld [vmem:[#allocation21_spill] sm:$0xff] }
0x15b7   :  { %v3314_v53 = vsel %vm2573_vm6, %v3306_v56, %v6794_v30  ;;  %v6795_v14 = vrot.slane %v6035_v27, %v5538_v43  ;;  %v2255_v58 = vcombine.high %v2245_v38, %v2245_v38  ;;  %v2504_v47 = vrot.slane %v2245_v38, %v5538_v43  ;;  %v6811_v38 = vld [vmem:[#allocation9_spill] sm:$0xff]  ;;  %v6813_v30 = vld [vmem:[#allocation6_spill] sm:$0xff] }
0x15b8   :  { %v2508_v7 = vrot.slane %v2253_v31, %v5538_v43  ;;  %v6796_v22 = vrot.slane %v6041_v36, %v5538_v43  ;;  %v2256_v49 = vcombine.high %v2252_v40, %v2252_v40  ;;  %v6797_v34 = vrot.slane %v6018_v23, %v5538_v43 }
0x15b9   :  { %v3321_v48 = vsel %vm2582_vm7, %v3313_v42, %v6795_v14  ;;  %v6798_v27 = vrot.slane %v6021_v18, %v5538_v43  ;;  %v2592_v29 = vsel %vm2591_vm8, %v5951_v1, %v2500_v12  ;;  %v2593_v36 = vsel %vm2591_vm8, %v5955_v60, %v2504_v47  ;;  %v6815_v14 = vld [vmem:[#allocation3_spill] sm:$0xff] }
0x15ba   :  { %v3322_v19 = vsel %vm2582_vm7, %v3314_v53, %v6796_v22  ;;  %v3329_v41 = vsel %vm2591_vm8, %v3321_v48, %v6797_v34  ;;  %v3299_v35 = vsel %vm2555_vm4, %v3291_v9, %v6237_v50  ;;  %v3300_v23 = vsel %vm2555_vm4, %v3292_v13, %v6246_v59  ;;  %v6816_v48 = vld [vmem:[#allocation7_spill] sm:$0xff] }
0x15bb   :  { %v3330_v33 = vsel %vm2591_vm8, %v3322_v19, %v6798_v27  ;;  %v5072_v37 = vpack.i.bf16 %v2593_v36, %v2592_v29  ;;  %v3307_v6 = vsel %vm2564_vm5, %v3299_v35, %v6193_v4  ;;  %v3308_v18 = vsel %vm2564_vm5, %v3300_v23, %v6196_v52  ;;  %v6819_v19 = vld [vmem:[#allocation20_spill] sm:$0xff]  ;;  %v6820_v27 = vld [vmem:[#allocation17_spill] sm:$0xff]  ;;  %v6821_v29 = vld [vmem:[#allocation18_spill] sm:$0xff] }
0x15bc   :  { %v5077_v51 = vpack.i.bf16 %v3330_v33, %v3329_v41  ;;  %v2512_v26 = vrot.slane %v2255_v58, %v5538_v43  ;;  %v3315_v1 = vsel %vm2573_vm6, %v3307_v6, %v6142_v55  ;;  %v3316_v60 = vsel %vm2573_vm6, %v3308_v18, %v6154_v8  ;;  %v6824_v6 = vld [vmem:[#allocation16_spill] sm:$0xff] }
0x15bd   :  { %v2594_v50 = vsel %vm2591_vm8, %v5964_v5, %v2508_v7  ;;  %v6799_v4 = vrot.slane %v6190_v63, %v5538_v43  ;;  %5073 = vrot.lane.b32.xlu0 %v5072_v37, %s5290_s2  ;;  %v3323_v13 = vsel %vm2582_vm7, %v3315_v1, %v6095_v11  ;;  %v3324_v52 = vsel %vm2582_vm7, %v3316_v60, %v6110_v25  ;;  %v6818_v7 = vld [vmem:[#allocation19_spill] sm:$0xff]  ;;  %v6825_v1 = vld [vmem:[#allocation13_spill] sm:$0xff]  ;;  %v6826_v60 = vld [vmem:[#allocation14_spill] sm:$0xff] }
0x15be   :  { %5078 = vrot.lane.b32.xlu1 %v5077_v51, %s5292_s28  ;;  %v2595_v55 = vsel %vm2591_vm8, %v5968_v16, %v2512_v26  ;;  %v6800_v8 = vrot.slane %v6201_v62, %v5538_v43  ;;  %v3331_v63 = vsel %vm2591_vm8, %v3323_v13, %v6059_v57  ;;  %v3332_v9 = vsel %vm2591_vm8, %v3324_v52, %v6066_v10  ;;  %v6805_v10 = vld [vmem:[#allocation12_spill] sm:$0xff]  ;;  %v6823_v37 = vld [vmem:[#allocation15_spill] sm:$0xff] }
0x15bf   :  { %v3301_v59 = vsel %vm2555_vm4, %v3293_v46, %v6799_v4  ;;  %v5082_v46 = vpack.i.bf16 %v2595_v55, %v2594_v50  ;;  %v6801_v11 = vrot.slane %v6149_v24, %v5538_v43  ;;  %v5087_v2 = vpack.i.bf16 %v3332_v9, %v3331_v63  ;;  %v6827_v4 = vld [vmem:[#allocation10_spill] sm:$0xff]  ;;  %v6828_v52 = vld [vmem:[#allocation4_spill] sm:$0xff] }
0x15c0   :  { %v3302_v5 = vsel %vm2555_vm4, %v3294_v61, %v6800_v8  ;;  %v6802_v16 = vrot.slane %v6159_v44, %v5538_v43  ;;  %v6804_v61 = vrot.slane %v6803_v20, %v5538_v43  ;;  %v2520_v54 = vrot.slane %v2252_v40, %v5538_v43  ;;  %v6809_v44 = vld [vmem:[#allocation2_spill] sm:$0xff]  ;;  %v6829_v8 = vld [vmem:[#allocation5_spill] sm:$0xff] }
0x15c1   :  { %v3309_v25 = vsel %vm2564_vm5, %v3301_v59, %v6801_v11  ;;  %v6806_v0 = vrot.slane %v6805_v10, %v5538_v43  ;;  %v6808_v3 = vrot.slane %v6807_v21, %v5538_v43  ;;  %v2596_v56 = vsel %vm2591_vm8, %v6809_v44, %v2516_v39  ;;  %5083 = vrot.lane.b32.xlu0 %v5082_v46, %s5290_s2 }
0x15c2   :  { %v3310_v62 = vsel %vm2564_vm5, %v3302_v5, %v6802_v16  ;;  %v3317_v57 = vsel %vm2573_vm6, %v3309_v25, %v6804_v61  ;;  %v3296_v42 = vsel %vm2546_vm3, %v3288_v15, %v6810_v28  ;;  %5088 = vrot.lane.b32.xlu1 %v5087_v2, %s5292_s28  ;;  %v6812_v31 = vrot.slane %v6811_v38, %v5538_v43 }
0x15c3   :  { %v3318_v24 = vsel %vm2573_vm6, %v3310_v62, %v6806_v0  ;;  %v3325_v45 = vsel %vm2582_vm7, %v3317_v57, %v6808_v3  ;;  %v6814_v53 = vrot.slane %v6813_v30, %v5538_v43  ;;  %v2597_v39 = vsel %vm2591_vm8, %v6815_v14, %v2520_v54 }
0x15c4   :  { %v3326_v12 = vsel %vm2582_vm7, %v3318_v24, %v6812_v31  ;;  %v6817_v15 = vrot.slane %v6816_v48, %v5538_v43  ;;  %v5092_v47 = vpack.i.bf16 %v2597_v39, %v2596_v56  ;;  %v3303_v22 = vsel %vm2555_vm4, %v6309_v17, %v6818_v7 }
0x15c5   :  { %v3333_v40 = vsel %vm2591_vm8, %v3325_v45, %v6814_v53  ;;  %v3304_v34 = vsel %vm2555_vm4, %v3296_v42, %v6819_v19  ;;  %v3311_v33 = vsel %vm2564_vm5, %v3303_v22, %v6820_v27  ;;  %v2524_v36 = vrot.slane %v2254_v32, %v5538_v43 }
0x15c6   :  { %v3334_v58 = vsel %vm2591_vm8, %v3326_v12, %v6817_v15  ;;  %v3312_v51 = vsel %vm2564_vm5, %v3304_v34, %v6821_v29  ;;  %v6822_v35 = vcombine.high %v6816_v48, %v6816_v48  ;;  %v3319_v17 = vsel %vm2573_vm6, %v3311_v33, %v6823_v37  ;;  %5093 = vrot.lane.b32.xlu0 %v5092_v47, %s5290_s2 }
0x15c7   :  { %v5097_v41 = vpack.i.bf16 %v3334_v58, %v3333_v40  ;;  %v3320_v18 = vsel %vm2573_vm6, %v3312_v51, %v6824_v6  ;;  %v2528_v26 = vrot.slane %v2256_v49, %v5538_v43  ;;  %v3327_v32 = vsel %vm2582_vm7, %v3319_v17, %v6825_v1 }
0x15c8   :  { %v3272_v23 = vrot.slane %v6822_v35, %v5538_v43  ;;  %v3328_v50 = vsel %vm2582_vm7, %v3320_v18, %v6826_v60  ;;  %v3335_v59 = vsel %vm2591_vm8, %v3327_v32, %v6827_v4  ;;  %v2598_v55 = vsel %vm2591_vm8, %v6828_v52, %v2524_v36 }
0x15c9   :  { %5098 = vrot.lane.b32.xlu1 %v5097_v41, %s5292_s28  ;;  %v2599_v43 = vsel %vm2591_vm8, %v6829_v8, %v2528_v26  ;;  %v6830_v38 = vmov 0.0  }
0x15ca   :  { %v3336_v13 = vsel %vm2591_vm8, %v3328_v50, %v3272_v23  ;;  %v5102_v5 = vpack.i.bf16 %v2599_v43, %v2598_v55 }
0x15cb   :  { %v5107_v49 = vpack.i.bf16 %v3336_v13, %v3335_v59 }
0x15cc   :  { %5103 = vrot.lane.b32.xlu0 %v5102_v5, %s5290_s2 }
0x15cd   :  { %5108 = vrot.lane.b32.xlu1 %v5107_v49, %s5292_s28 }
0x162f   :  { %v5074_v11 = vpop.permute.xlu0 %5073 }
0x1630   :  { %v5079_v63 = vpop.permute.xlu1 %5078  ;;  %v5076_v25 = vunpack.i.h.bf16 %v5074_v11  ;;  %v5075_v2 = vunpack.i.l.bf16 %v5074_v11 }
0x1631   :  { %v5081_v9 = vunpack.i.h.bf16 %v5079_v63  ;;  %v5080_v46 = vunpack.i.l.bf16 %v5079_v63 }
0x1633   :  { %v3402_v16 = vsel %vm89_vm1, %v5076_v25, %v5081_v9  ;;  %v3401_v62 = vsel %vm89_vm1, %v5075_v2, %v5080_v46  ;;  %v5084_v54 = vpop.permute.xlu0 %5083 }
0x1634   :  { %v6481_v20 = vpack.c.bf16 %v3402_v16, %v3402_v16  ;;  %v6483_v61 = vpack.c.bf16 %v3401_v62, %v3401_v62  ;;  %v5089_v57 = vpop.permute.xlu1 %5088  ;;  %v5086_v24 = vunpack.i.h.bf16 %v5084_v54  ;;  %v5085_v21 = vunpack.i.l.bf16 %v5084_v54 }
0x1635   :  { %v5091_v10 = vunpack.i.h.bf16 %v5089_v57  ;;  %v5090_v0 = vunpack.i.l.bf16 %v5089_v57 }
0x1636   :  { %v3419_v3 = vsel %vm3417_vm9, %v6483_v61, 0  ;;  %v3462_v45 = vsel %vm3417_vm9, %v6481_v20, 0  ;;  %v3870_v18 = vsel %vm2564_vm5, %v6483_v61, 0  ;;  %v3915_v26 = vsel %vm2564_vm5, %v6481_v20, 0 }
0x1637   :  { %v3404_v44 = vsel %vm89_vm1, %v5086_v24, %v5091_v10  ;;  %v3403_v56 = vsel %vm89_vm1, %v5085_v21, %v5090_v0  ;;  %4857 = vmatpush3.bf16.xpose.msra.mxu0 %v3419_v3  ;;  %4863 = vmatpush3.bf16.xpose.msra.mxu1 %v3462_v45 }
0x1638   :  { %v5094_v42 = vpop.permute.xlu0 %5093  ;;  %4868 = vmatprep.subr.bf16.mxu0 %v6830_v38  ;;  %4874 = vmatprep.subr.bf16.mxu1 %v6830_v38  ;;  %v6493_v31 = vpack.c.bf16 %v3404_v44, %v3404_v44  ;;  %v6495_v12 = vpack.c.bf16 %v3403_v56, %v3403_v56 }
0x1639   :  { %v5096_v40 = vunpack.i.h.bf16 %v5094_v42  ;;  %v5095_v14 = vunpack.i.l.bf16 %v5094_v42 }
0x163a   :  { %v3505_v39 = vsel %vm3417_vm9, %v6495_v12, 0  ;;  %v3548_v48 = vsel %vm3417_vm9, %v6493_v31, 0 }
0x163b   :  { %v5099_v28 = vpop.permute.xlu1 %5098 }
0x163c   :  { %v5101_v30 = vunpack.i.h.bf16 %v5099_v28  ;;  %v5100_v53 = vunpack.i.l.bf16 %v5099_v28 }
0x163e   :  { %4859 = vmatmul.mubr.msk.bf16.vlgmr.msra.gmra.mrb[16].mxu0 %vm3417_vm9, %v6483_v61  ;;  %4865 = vmatmul.mubr.msk.bf16.vlgmr.msra.gmra.mrb[32].mxu1 %vm3417_vm9, %v6481_v20  ;;  %v3406_v15 = vsel %vm89_vm1, %v5096_v40, %v5101_v30  ;;  %v3405_v58 = vsel %vm89_vm1, %v5095_v14, %v5100_v53  ;;  %v5104_v7 = vpop.permute.xlu0 %5103 }
0x163f   :  { %4869 = vmatpush3.bf16.xpose.msra.mxu0 %v3505_v39  ;;  %4875 = vmatpush3.bf16.xpose.msra.mxu1 %v3548_v48  ;;  %v5109_v47 = vpop.permute.xlu1 %5108  ;;  %v6513_v22 = vpack.c.bf16 %v3406_v15, %v3406_v15  ;;  %v6515_v19 = vpack.c.bf16 %v3405_v58, %v3405_v58  ;;  %v5106_v27 = vunpack.i.h.bf16 %v5104_v7  ;;  %v5105_v33 = vunpack.i.l.bf16 %v5104_v7 }
0x1640   :  { %4870 = vmatprep.mubr.msk.bf16.mxu0 %vm5287_vm0, %v6830_v38  ;;  %4876 = vmatprep.mubr.msk.bf16.mxu1 %vm5287_vm0, %v6830_v38  ;;  %v5111_v34 = vunpack.i.h.bf16 %v5109_v47  ;;  %v5110_v41 = vunpack.i.l.bf16 %v5109_v47 }
0x1641   :  { %4880 = vmatprep.subr.bf16.mxu0 %v6830_v38  ;;  %4886 = vmatprep.subr.bf16.mxu1 %v6830_v38  ;;  %v3591_v29 = vsel %vm3417_vm9, %v6515_v19, 0  ;;  %v3634_v51 = vsel %vm3417_vm9, %v6513_v22, 0 }
0x1642   :  { %v3408_v36 = vsel %vm89_vm1, %v5106_v27, %v5111_v34  ;;  %v3407_v35 = vsel %vm89_vm1, %v5105_v33, %v5110_v41 }
0x1643   :  { %v6533_v23 = vpack.c.bf16 %v3408_v36, %v3408_v36  ;;  %v6535_v37 = vpack.c.bf16 %v3407_v35, %v3407_v35 }
0x1645   :  { %v3677_v17 = vsel %vm3417_vm9, %v6535_v37, 0  ;;  %v3720_v6 = vsel %vm3417_vm9, %v6533_v23, 0 }
0x1646   :  { %4871 = vmatmul.mubr.msk.bf16.vlgmr.msra.gmra.mrb[20].mxu0 %vm3417_vm9, %v6495_v12  ;;  %4877 = vmatmul.mubr.msk.bf16.vlgmr.msra.gmra.mrb[36].mxu1 %vm3417_vm9, %v6493_v31 }
0x1647   :  { %4881 = vmatpush3.bf16.xpose.msra.mxu0 %v3591_v29  ;;  %4887 = vmatpush3.bf16.xpose.msra.mxu1 %v3634_v51 }
0x1648   :  { %4882 = vmatprep.mubr.msk.bf16.mxu0 %vm5287_vm0, %v6830_v38  ;;  %4888 = vmatprep.mubr.msk.bf16.mxu1 %vm5287_vm0, %v6830_v38 }
0x1649   :  { %4892 = vmatprep.subr.bf16.mxu0 %v6830_v38  ;;  %4898 = vmatprep.subr.bf16.mxu1 %v6830_v38 }
0x164e   :  { %4883 = vmatmul.mubr.msk.bf16.vlgmr.msra.gmra.mrb[24].mxu0 %vm3417_vm9, %v6515_v19  ;;  %4889 = vmatmul.mubr.msk.bf16.vlgmr.msra.gmra.mrb[40].mxu1 %vm3417_vm9, %v6513_v22 }
0x164f   :  { %4893 = vmatpush3.bf16.xpose.msra.mxu0 %v3677_v17  ;;  %4899 = vmatpush3.bf16.xpose.msra.mxu1 %v3720_v6 }
0x1650   :  { %4894 = vmatprep.mubr.msk.bf16.mxu0 %vm5287_vm0, %v6830_v38  ;;  %4900 = vmatprep.mubr.msk.bf16.mxu1 %vm5287_vm0, %v6830_v38 }
0x1651   :  { %4904 = vmatprep.subr.bf16.mxu0 %v6830_v38  ;;  %4910 = vmatprep.subr.bf16.mxu1 %v6830_v38 }
0x1656   :  { %4895 = vmatmul.mubr.msk.bf16.vlgmr.msra.gmra.mrb[28].mxu0 %vm3417_vm9, %v6535_v37  ;;  %4901 = vmatmul.mubr.msk.bf16.vlgmr.msra.gmra.mrb[44].mxu1 %vm3417_vm9, %v6533_v23 }
0x1657   :  { %4905 = vmatpush3.bf16.msra.mxu0 %v3870_v18  ;;  %4911 = vmatpush3.bf16.msra.mxu1 %v3915_v26 }
0x1658   :  { %4906 = vmatprep.mubr.msk.bf16.mxu0 %vm5287_vm0, %v6830_v38  ;;  %4912 = vmatprep.mubr.msk.bf16.mxu1 %vm5287_vm0, %v6830_v38 }
0x1659   :  { %4916 = vmatprep.subr.bf16.mxu0 %v6830_v38  ;;  %4922 = vmatprep.subr.bf16.mxu1 %v6830_v38 }
0x1711   :  { %v3455_v1 = vpop.f32.mrb[16].mxu0  ;;  %v3498_v32 = vpop.f32.mrb[32].mxu1 }
0x1712   :  { %v4860_v60 = vpop.f32.mrb[17].mxu0  ;;  %v4866_v50 = vpop.f32.mrb[33].mxu1  ;;  %v3766_v4 = vsel %vm3762_vm10, %v3498_v32, -inf  ;;  %v3763_v59 = vsel %vm3762_vm10, %v3455_v1, -inf }
0x1713   :  { %3767 = vmax.xlane.f32.xlu1 %v3766_v4  ;;  %v3458_v13 = vpop.f32.mrb[18].mxu0  ;;  %v3501_v52 = vpop.f32.mrb[34].mxu1  ;;  %3764 = vmax.xlane.f32.xlu0 %v3763_v59 }
0x1714   :  { %v4861_v55 = vpop.f32.mrb[19].mxu0  ;;  %v4867_v8 = vpop.f32.mrb[35].mxu1 }
0x1719   :  { %v3541_v43 = vpop.f32.mrb[20].mxu0  ;;  %v3584_v49 = vpop.f32.mrb[36].mxu1 }
0x171a   :  { %v4872_v5 = vpop.f32.mrb[21].mxu0  ;;  %v4878_v63 = vpop.f32.mrb[37].mxu1  ;;  %v3769_v9 = vsel %vm3762_vm10, %v3541_v43, -inf  ;;  %v3772_v16 = vsel %vm3762_vm10, %v3584_v49, -inf }
0x171b   :  { %v3544_v46 = vpop.f32.mrb[22].mxu0  ;;  %v3587_v11 = vpop.f32.mrb[38].mxu1  ;;  %3770 = vmax.xlane.f32.xlu0 %v3769_v9 }
0x171c   :  { %v4873_v25 = vpop.f32.mrb[23].mxu0  ;;  %v4879_v2 = vpop.f32.mrb[39].mxu1 }
0x171f   :  { %3773 = vmax.xlane.f32.xlu0 %v3772_v16 }
0x1721   :  { %v3627_v62 = vpop.f32.mrb[24].mxu0  ;;  %v3670_v20 = vpop.f32.mrb[40].mxu1 }
0x1722   :  { %v4884_v61 = vpop.f32.mrb[25].mxu0  ;;  %v4890_v57 = vpop.f32.mrb[41].mxu1  ;;  %v3775_v54 = vsel %vm3762_vm10, %v3627_v62, -inf  ;;  %v3778_v10 = vsel %vm3762_vm10, %v3670_v20, -inf }
0x1723   :  { %v3673_v0 = vpop.f32.mrb[42].mxu1  ;;  %3776 = vmax.xlane.f32.xlu1 %v3775_v54  ;;  %v3630_v24 = vpop.f32.mrb[26].mxu0  ;;  %3779 = vmax.xlane.f32.xlu0 %v3778_v10  ;;  %v5293_v57 = vmov 0   ;;  %v4227_v54 = vld [vmem:[%s6755_s1] sm:$0xff]  ;;  %v4228_v10 = vld [vmem:[%s6755_s1 + $0x8] sm:$0xff] }
0x1724   :  { %v4885_v21 = vpop.f32.mrb[27].mxu0  ;;  %v4891_v3 = vpop.f32.mrb[43].mxu1  ;;  %5112 = vset.pattern.permute.xlu1 %v5293_v57  ;;  %5113 = vset.pattern.permute.xlu0 %v5293_v57  ;;  %v4229_v0 = vld [vmem:[%s6755_s1 + $0x10] sm:$0xff]  ;;  %v4230_v24 = vld [vmem:[%s6755_s1 + $0x18] sm:$0xff] }
0x1725   :  { %v4231_v21 = vld [vmem:[%s6755_s1 + $0x20] sm:$0xff]  ;;  %v4232_v3 = vld [vmem:[%s6755_s1 + $0x28] sm:$0xff] }
0x1729   :  { %v3713_v45 = vpop.f32.mrb[28].mxu0  ;;  %v3756_v44 = vpop.f32.mrb[44].mxu1 }
0x172a   :  { %v4896_v56 = vpop.f32.mrb[29].mxu0  ;;  %v4902_v28 = vpop.f32.mrb[45].mxu1  ;;  %v3784_v42 = vsel %vm3762_vm10, %v3756_v44, -inf  ;;  %v3781_v30 = vsel %vm3762_vm10, %v3713_v45, -inf }
0x172b   :  { %3785 = vmax.xlane.f32.xlu0 %v3784_v42  ;;  %v3759_v53 = vpop.f32.mrb[46].mxu1  ;;  %3782 = vmax.xlane.f32.xlu1 %v3781_v30  ;;  %v3716_v40 = vpop.f32.mrb[30].mxu0 }
0x172c   :  { %v4897_v14 = vpop.f32.mrb[31].mxu0  ;;  %v4903_v39 = vpop.f32.mrb[47].mxu1 }
0x17a0   :  { %v3768_v48 = vpop.xlane.xlu1 %3767  ;;  %v3765_v15 = vpop.xlane.xlu0 %3764 }
0x17a1   :  { %v3788_v58 = vsub.f32 %v3498_v32, %v3768_v48  ;;  %v3787_v47 = vsub.f32 %v3455_v1, %v3765_v15 }
0x17a3   :  { %v3797_v7 = vmul.f32 1.442695, %v3788_v58  ;;  %v3795_v34 = vmul.f32 1.442695, %v3787_v47  ;;  %v4005_v58 = vsel %vm2564_vm5, %v6493_v31, 0 }
0x17a5   :  { %5254 = vpow2.f32 %v3797_v7 }
0x17a6   :  { %5256 = vpow2.f32 %v3795_v34  ;;  %v3960_v34 = vsel %vm2564_vm5, %v6495_v12, 0 }
0x17a8   :  { %v3771_v41 = vpop.xlane.xlu0 %3770 }
0x17a9   :  { %v3789_v27 = vsub.f32 %v3541_v43, %v3771_v41 }
0x17ab   :  { %v3799_v33 = vmul.f32 1.442695, %v3789_v27 }
0x17ac   :  { %v3774_v29 = vpop.xlane.xlu0 %3773 }
0x17ad   :  { %5258 = vpow2.f32 %v3799_v33  ;;  %v3790_v51 = vsub.f32 %v3584_v49, %v3774_v29 }
0x17af   :  { %v6573_v36 = vpop.eup %5254  ;;  %v3801_v35 = vmul.f32 1.442695, %v3790_v51  ;;  %v4050_v51 = vsel %vm2564_vm5, %v6515_v19, 0  ;;  %v4095_v19 = vsel %vm2564_vm5, %v6513_v22, 0  ;;  %v4140_v22 = vsel %vm2564_vm5, %v6535_v37, 0 }
0x17b0   :  { %v6575_v17 = vpop.eup %5256  ;;  %v3777_v6 = vpop.xlane.xlu1 %3776  ;;  %v3814_v26 = vsel %vm3762_vm10, %v6573_v36, 0.0 }
0x17b1   :  { %v3780_v18 = vpop.xlane.xlu0 %3779  ;;  %5260 = vpow2.f32 %v3801_v35  ;;  %v3791_v1 = vsub.f32 %v3627_v62, %v3777_v6  ;;  %3815 = vadd.xlane.f32.xlu0 %v3814_v26  ;;  %v3811_v60 = vsel %vm3762_vm10, %v6575_v17, 0.0 }
0x17b2   :  { %v3792_v32 = vsub.f32 %v3670_v20, %v3780_v18  ;;  %3812 = vadd.xlane.f32.xlu1 %v3811_v60 }
0x17b3   :  { %v3803_v50 = vmul.f32 1.442695, %v3791_v1 }
0x17b4   :  { %v3805_v4 = vmul.f32 1.442695, %v3792_v32 }
0x17b5   :  { %5262 = vpow2.f32 %v3803_v50 }
0x17b6   :  { %5264 = vpow2.f32 %v3805_v4 }
0x17b7   :  { %v6581_v59 = vpop.eup %5258 }
0x17b8   :  { %v3786_v13 = vpop.xlane.xlu0 %3785  ;;  %v3783_v52 = vpop.xlane.xlu1 %3782  ;;  %v3817_v55 = vsel %vm3762_vm10, %v6581_v59, 0.0 }
0x17b9   :  { %v3794_v8 = vsub.f32 %v3756_v44, %v3786_v13  ;;  %v3793_v43 = vsub.f32 %v3713_v45, %v3783_v52  ;;  %3818 = vadd.xlane.f32.xlu1 %v3817_v55  ;;  %v4233_v45 = vld [vmem:[%s6755_s1 + $0x30] sm:$0xff]  ;;  %v4234_v44 = vld [vmem:[%s6755_s1 + $0x38] sm:$0xff]  ;;  %v5123_v52 = vld [vmem:[%s6757_s8 + $0x8] sm:$0xff]  }
0x17ba   :  { %v5124_v55 = vld [vmem:[%s6757_s8 + $0x10] sm:$0xff]  }
0x17bb   :  { %v6585_v49 = vpop.eup %5260  ;;  %v3809_v5 = vmul.f32 1.442695, %v3794_v8  ;;  %v3807_v63 = vmul.f32 1.442695, %v3793_v43  ;;  %v5125_v8 = vld [vmem:[%s6757_s8 + $0x18] sm:$0xff]  }
0x17bc   :  { %v3820_v9 = vsel %vm3762_vm10, %v6585_v49, 0.0 }
0x17bd   :  { %5266 = vpow2.f32 %v3809_v5  ;;  %3821 = vadd.xlane.f32.xlu0 %v3820_v9 }
0x17be   :  { %5268 = vpow2.f32 %v3807_v63 }
0x17bf   :  { %v6589_v46 = vpop.eup %5262 }
0x17c0   :  { %v6591_v11 = vpop.eup %5264  ;;  %v3823_v25 = vsel %vm3762_vm10, %v6589_v46, 0.0 }
0x17c1   :  { %v3826_v2 = vsel %vm3762_vm10, %v6591_v11, 0.0  ;;  %3824 = vadd.xlane.f32.xlu1 %v3823_v25 }
0x17c2   :  { %3827 = vadd.xlane.f32.xlu0 %v3826_v2 }
0x17c7   :  { %v6597_v16 = vpop.eup %5266 }
0x17c8   :  { %v6599_v62 = vpop.eup %5268  ;;  %v3832_v20 = vsel %vm3762_vm10, %v6597_v16, 0.0 }
0x17c9   :  { %3833 = vadd.xlane.f32.xlu0 %v3832_v20  ;;  %v3829_v61 = vsel %vm3762_vm10, %v6599_v62, 0.0 }
0x17ca   :  { %3830 = vadd.xlane.f32.xlu1 %v3829_v61 }
0x17db   :  { %4237 = vperm.xlu1 %5112, %v4227_v54  }
0x17df   :  { %4242 = vperm.xlu0 %5113, %v4228_v10   ;;  %4247 = vperm.xlu1 %5112, %v4229_v0  }
0x17e3   :  { %4252 = vperm.xlu1 %5112, %v4230_v24  }
0x17e7   :  { %4257 = vperm.xlu1 %5112, %v4231_v21  }
0x17eb   :  { %4262 = vperm.xlu1 %5112, %v4232_v3  }
0x17ef   :  { %4267 = vperm.xlu1 %5112, %v4233_v45  }
0x17f3   :  { %4272 = vperm.xlu1 %5112, %v4234_v44  }
0x183e   :  { %v3816_v56 = vpop.xlane.xlu0 %3815 }
0x183f   :  { %5270 = vrcp.f32 %v3816_v56  ;;  %v3813_v28 = vpop.xlane.xlu1 %3812 }
0x1840   :  { %5272 = vrcp.f32 %v3813_v28 }
0x1846   :  { %v3819_v42 = vpop.xlane.xlu1 %3818 }
0x1847   :  { %5274 = vrcp.f32 %v3819_v42 }
0x1849   :  { %v5271_v30 = vpop.eup %5270 }
0x184a   :  { %v5273_v53 = vpop.eup %5272  ;;  %v3844_v40 = vmul.f32 %v5271_v30, %v6573_v36  ;;  %v3822_v14 = vpop.xlane.xlu0 %3821 }
0x184b   :  { %v3843_v39 = vmul.f32 %v5273_v53, %v6575_v17  ;;  %5276 = vrcp.f32 %v3822_v14 }
0x184c   :  { %3852 = vst.msk [vmem:[%s6756_s11 + $0x8] sm:$0xff] %vm3762_vm10, %v3844_v40  ;;  %v3860_v48 = vpack.c.bf16 %v3844_v40, %v3844_v40 }
0x184d   :  { %3851 = vst.msk [vmem:[%s6756_s11] sm:$0xff] %vm3762_vm10, %v3843_v39  ;;  %v3859_v15 = vpack.c.bf16 %v3843_v39, %v3843_v39 }
0x184e   :  { %4913 = vmatmul.mubr.msk.bf16.vlgmr.msra.gmra.mrb[48].mxu1 %vm3762_vm10, %v3860_v48  ;;  %v3825_v47 = vpop.xlane.xlu1 %3824 }
0x184f   :  { %4923 = vmatpush3.bf16.msra.mxu1 %v4005_v58  ;;  %v3828_v7 = vpop.xlane.xlu0 %3827  ;;  %4907 = vmatmul.mubr.msk.bf16.vlgmr.msra.gmra.mrb[32].mxu0 %vm3762_vm10, %v3859_v15  ;;  %5278 = vrcp.f32 %v3825_v47 }
0x1850   :  { %5280 = vrcp.f32 %v3828_v7  ;;  %4917 = vmatpush3.bf16.msra.mxu0 %v3960_v34  ;;  %4918 = vmatprep.mubr.msk.bf16.mxu0 %vm5287_vm0, %v6830_v38 }
0x1851   :  { %v5275_v41 = vpop.eup %5274  ;;  %4928 = vmatprep.subr.bf16.mxu0 %v6830_v38  ;;  %4924 = vmatprep.mubr.msk.bf16.mxu1 %vm5287_vm0, %v6830_v38 }
0x1852   :  { %v3845_v31 = vmul.f32 %v5275_v41, %v6581_v59  ;;  %4934 = vmatprep.subr.bf16.mxu1 %v6830_v38  ;;  %v4185_v59 = vsel %vm2564_vm5, %v6533_v23, 0 }
0x1854   :  { %3853 = vst.msk [vmem:[%s6756_s11 + $0x10] sm:$0xff] %vm3762_vm10, %v3845_v31  ;;  %v3861_v12 = vpack.c.bf16 %v3845_v31, %v3845_v31 }
0x1855   :  { %v5277_v27 = vpop.eup %5276 }
0x1856   :  { %v3846_v33 = vmul.f32 %v5277_v27, %v6585_v49  ;;  %v3834_v29 = vpop.xlane.xlu0 %3833 }
0x1857   :  { %5282 = vrcp.f32 %v3834_v29  ;;  %4919 = vmatmul.mubr.msk.bf16.vlgmr.msra.gmra.mrb[36].mxu0 %vm3762_vm10, %v3861_v12  ;;  %v3831_v36 = vpop.xlane.xlu1 %3830 }
0x1858   :  { %3854 = vst.msk [vmem:[%s6756_s11 + $0x18] sm:$0xff] %vm3762_vm10, %v3846_v33  ;;  %4929 = vmatpush3.bf16.msra.mxu0 %v4050_v51  ;;  %5284 = vrcp.f32 %v3831_v36  ;;  %v3862_v35 = vpack.c.bf16 %v3846_v33, %v3846_v33  ;;  %4930 = vmatprep.mubr.msk.bf16.mxu0 %vm5287_vm0, %v6830_v38 }
0x1859   :  { %v5279_v17 = vpop.eup %5278  ;;  %4940 = vmatprep.subr.bf16.mxu0 %v6830_v38 }
0x185a   :  { %v5281_v6 = vpop.eup %5280  ;;  %v3847_v18 = vmul.f32 %v5279_v17, %v6589_v46  ;;  %4925 = vmatmul.mubr.msk.bf16.vlgmr.msra.gmra.mrb[52].mxu1 %vm3762_vm10, %v3862_v35 }
0x185b   :  { %v3848_v26 = vmul.f32 %v5281_v6, %v6591_v11  ;;  %4935 = vmatpush3.bf16.msra.mxu1 %v4095_v19  ;;  %4936 = vmatprep.mubr.msk.bf16.mxu1 %vm5287_vm0, %v6830_v38  ;;  %v4238_v43 = vpop.permute.xlu1 %4237 }
0x185c   :  { %3855 = vst.msk [vmem:[%s6756_s11 + $0x20] sm:$0xff] %vm3762_vm10, %v3847_v18  ;;  %v3863_v1 = vpack.c.bf16 %v3847_v18, %v3847_v18  ;;  %4946 = vmatprep.subr.bf16.mxu1 %v6830_v38 }
0x185d   :  { %3856 = vst.msk [vmem:[%s6756_s11 + $0x28] sm:$0xff] %vm3762_vm10, %v3848_v26  ;;  %v3864_v32 = vpack.c.bf16 %v3848_v26, %v3848_v26 }
0x185e   :  { %v4243_v5 = vpop.permute.xlu0 %4242 }
0x185f   :  { %4931 = vmatmul.mubr.msk.bf16.vlgmr.msra.gmra.mrb[40].mxu0 %vm3762_vm10, %v3863_v1  ;;  %v4248_v49 = vpop.permute.xlu1 %4247 }
0x1860   :  { %4941 = vmatpush3.bf16.msra.mxu0 %v4140_v22  ;;  %4942 = vmatprep.mubr.msk.bf16.mxu0 %vm5287_vm0, %v6830_v38 }
0x1861   :  { %v5283_v60 = vpop.eup %5282 }
0x1862   :  { %v5285_v50 = vpop.eup %5284  ;;  %v3850_v4 = vmul.f32 %v5283_v60, %v6597_v16  ;;  %4937 = vmatmul.mubr.msk.bf16.vlgmr.msra.gmra.mrb[56].mxu1 %vm3762_vm10, %v3864_v32  ;;  %v4507_v32 = vld [vmem:[%s6758_s9] ss:$0 sm:$0xff] }
0x1863   :  { %v3849_v13 = vmul.f32 %v5285_v50, %v6599_v62  ;;  %4947 = vmatpush3.bf16.msra.mxu1 %v4185_v59  ;;  %4948 = vmatprep.mubr.msk.bf16.mxu1 %vm5287_vm0, %v6830_v38  ;;  %v5122_v38 = vld [vmem:[%s6757_s8] sm:$0xff]   ;;  %v4253_v63 = vpop.permute.xlu1 %4252 }
0x1864   :  { %3858 = vst.msk [vmem:[%s6756_s11 + $0x38] sm:$0xff] %vm3762_vm10, %v3850_v4  ;;  %v3866_v23 = vpack.c.bf16 %v3850_v4, %v3850_v4  ;;  %4952 = vmatprep.subr.bf16.mxu0 %v5122_v38 }
0x1865   :  { %3857 = vst.msk [vmem:[%s6756_s11 + $0x30] sm:$0xff] %vm3762_vm10, %v3849_v13  ;;  %v3865_v37 = vpack.c.bf16 %v3849_v13, %v3849_v13 }
0x1867   :  { %4943 = vmatmul.mubr.msk.bf16.vlgmr.msra.gmra.mrb[44].mxu0 %vm3762_vm10, %v3865_v37  ;;  %v4258_v10 = vpop.permute.xlu1 %4257 }
0x1868   :  { %4953 = vmatpush3.bf16.msra.mxu0 %v5122_v38 }
0x1869   :  { %4954 = vmatprep.subr.bf16.mxu0 %v5123_v52 }
0x186a   :  { %4949 = vmatmul.mubr.msk.bf16.vlgmr.msra.gmra.mrb[60].mxu1 %vm3762_vm10, %v3866_v23 }
0x186b   :  { %v4263_v30 = vpop.permute.xlu1 %4262 }
0x186c   :  { %4955 = vmatpush3.bf16.msra.mxu0 %v5123_v52 }
0x186d   :  { %4956 = vmatprep.subr.bf16.mxu0 %v5124_v55 }
0x186f   :  { %v4268_v47 = vpop.permute.xlu1 %4267 }
0x1870   :  { %4957 = vmatpush3.bf16.msra.mxu0 %v5124_v55 }
0x1871   :  { %4958 = vmatprep.subr.bf16.mxu0 %v5125_v8 }
0x1873   :  { %v4273_v51 = vpop.permute.xlu1 %4272 }
0x1874   :  { %4959 = vmatpush3.bf16.msra.mxu0 %v5125_v8 }
0x1921   :  { %v3951_v9 = vpop.f32.mrb[48].mxu1 }
0x1922   :  { %v3906_v46 = vpop.f32.mrb[32].mxu0  ;;  %v4276_v11 = vmul.f32 %v4243_v5, %v3951_v9  ;;  %v4914_v25 = vpop.f32.mrb[49].mxu1 }
0x1923   :  { %v4275_v2 = vmul.f32 %v4238_v43, %v3906_v46  ;;  %v4908_v16 = vpop.f32.mrb[33].mxu0  ;;  %v3954_v62 = vpop.f32.mrb[50].mxu1 }
0x1924   :  { %v3909_v20 = vpop.f32.mrb[34].mxu0  ;;  %v4915_v61 = vpop.f32.mrb[51].mxu1 }
0x1925   :  { %v4520_v57 = vpack.c.bf16 %v4276_v11, %v4275_v2  ;;  %v4909_v54 = vpop.f32.mrb[35].mxu0 }
0x1927   :  { %4960 = vmatprep.mubr.msk.bf16.mxu0 %vm3417_vm9, %v4520_v57 }
0x192a   :  { %v3996_v0 = vpop.f32.mrb[36].mxu0 }
0x192b   :  { %v4920_v24 = vpop.f32.mrb[37].mxu0  ;;  %v4277_v44 = vmul.f32 %v4248_v49, %v3996_v0 }
0x192c   :  { %v3999_v21 = vpop.f32.mrb[38].mxu0 }
0x192d   :  { %v4921_v3 = vpop.f32.mrb[39].mxu0  ;;  %v4041_v45 = vpop.f32.mrb[52].mxu1 }
0x192e   :  { %v4278_v56 = vmul.f32 %v4253_v63, %v4041_v45  ;;  %v4926_v28 = vpop.f32.mrb[53].mxu1 }
0x192f   :  { %v4044_v42 = vpop.f32.mrb[54].mxu1 }
0x1930   :  { %v4521_v53 = vpack.c.bf16 %v4278_v56, %v4277_v44  ;;  %v4927_v40 = vpop.f32.mrb[55].mxu1 }
0x1932   :  { %v4086_v14 = vpop.f32.mrb[40].mxu0  ;;  %4961 = vmatmul.mubr.msk.bf16.vlgmr.msra.gmra.mrb[48].mxu0 %vm3417_vm9, %v4521_v53 }
0x1933   :  { %v4932_v39 = vpop.f32.mrb[41].mxu0  ;;  %v4279_v7 = vmul.f32 %v4258_v10, %v4086_v14 }
0x1934   :  { %v4089_v48 = vpop.f32.mrb[42].mxu0 }
0x1935   :  { %v4933_v15 = vpop.f32.mrb[43].mxu0  ;;  %v4131_v58 = vpop.f32.mrb[56].mxu1 }
0x1936   :  { %v4280_v34 = vmul.f32 %v4263_v30, %v4131_v58  ;;  %v4938_v41 = vpop.f32.mrb[57].mxu1 }
0x1937   :  { %v4134_v31 = vpop.f32.mrb[58].mxu1 }
0x1938   :  { %v4522_v12 = vpack.c.bf16 %v4280_v34, %v4279_v7  ;;  %v4939_v27 = vpop.f32.mrb[59].mxu1 }
0x193a   :  { %v4176_v33 = vpop.f32.mrb[44].mxu0  ;;  %4964 = vmatprep.mubr.msk.bf16.mxu0 %vm3417_vm9, %v4522_v12 }
0x193b   :  { %v4944_v29 = vpop.f32.mrb[45].mxu0  ;;  %v4281_v6 = vmul.f32 %v4268_v47, %v4176_v33 }
0x193c   :  { %v4179_v36 = vpop.f32.mrb[46].mxu0 }
0x193d   :  { %v4945_v35 = vpop.f32.mrb[47].mxu0  ;;  %v4221_v17 = vpop.f32.mrb[60].mxu1 }
0x193e   :  { %v4282_v18 = vmul.f32 %v4273_v51, %v4221_v17  ;;  %v4950_v19 = vpop.f32.mrb[61].mxu1 }
0x193f   :  { %v4224_v26 = vpop.f32.mrb[62].mxu1 }
0x1940   :  { %v4523_v1 = vpack.c.bf16 %v4282_v18, %v4281_v6  ;;  %v4951_v22 = vpop.f32.mrb[63].mxu1 }
0x1942   :  { %4965 = vmatmul.mubr.msk.bf16.gmra.mrb[52].mxu0 %vm3417_vm9, %v4523_v1 }
0x1a05   :  { %v4962_v60 = vpop.f32.mrb[48].mxu0 }
0x1a06   :  { %v4405_v50 = vadd.f32 %v4962_v60, %v4507_v32  ;;  %v4396_v4 = vpop.f32.mrb[49].mxu0 }
0x1a07   :  { %v4397_v59 = vadd.f32 %v4507_v32, %v4396_v4  ;;  %v4963_v13 = vpop.f32.mrb[50].mxu0 }
0x1a08   :  { %4429 = vst [vmem:[%s6759_s10 + $0x10] sm:$0xff] %v4405_v50  ;;  %v4408_v37 = vadd.f32 %v4963_v13, %v4507_v32  ;;  %v4399_v23 = vpop.f32.mrb[51].mxu0 }
0x1a09   :  { %4427 = vst [vmem:[%s6759_s10] sm:$0xff] %v4397_v59  ;;  %v4400_v38 = vadd.f32 %v4507_v32, %v4399_v23 }
0x1a0a   :  { %4430 = vst [vmem:[%s6759_s10 + $0x18] sm:$0xff] %v4408_v37 }
0x1a0b   :  { %4428 = vst [vmem:[%s6759_s10 + $0x8] sm:$0xff] %v4400_v38 }
0x1a15   :  { %v4966_v52 = vpop.f32.mrb[52].mxu0 }
0x1a16   :  { %v4421_v55 = vadd.f32 %v4966_v52, %v4507_v32  ;;  %v4412_v8 = vpop.f32.mrb[53].mxu0 }
0x1a17   :  { %v4413_v43 = vadd.f32 %v4507_v32, %v4412_v8  ;;  %v4967_v49 = vpop.f32.mrb[54].mxu0 }
0x1a18   :  { %4433 = vst [vmem:[%s6759_s10 + $0x30] sm:$0xff] %v4421_v55  ;;  %v4424_v5 = vadd.f32 %v4967_v49, %v4507_v32  ;;  %v4415_v63 = vpop.f32.mrb[55].mxu0 }
0x1a19   :  { %4431 = vst [vmem:[%s6759_s10 + $0x20] sm:$0xff] %v4413_v43  ;;  %v4416_v9 = vadd.f32 %v4507_v32, %v4415_v63 }
0x1a1a   :  { %4434 = vst [vmem:[%s6759_s10 + $0x38] sm:$0xff] %v4424_v5 }
0x1a1b   :  { %4432 = vst [vmem:[%s6759_s10 + $0x28] sm:$0xff] %v4416_v9 }

</bundles_post_ra>
